<compile_context>
chip_gen: v7x
topology: tpu7x:2x2x1
jax: 0.10.0
libtpu: 0.0.40
codegen_flags: <defaults>
</compile_context>

<pallas_src>
import functools

import jax
import jax.numpy as jnp
from jax.experimental import pallas as pl
from jax.experimental.pallas import tpu as pltpu


INPUT_SIZE = 128       # stands in for 2048
NUM_CLASSES = 1
MEMORY_SIZE = 64       # stands in for 256
PROJ_DIM = 128
D_STATE = 16
D_CONV = 4

_SCAL_GROUP = 128                    # lane group holding fc + anomaly columns
_SLAB_W = PROJ_DIM + _SCAL_GROUP     # fused (Bp, 256) output slab
_ANOM_COL = PROJ_DIM + NUM_CLASSES   # anomaly column inside the slab


# ---------------------------------------------------------------------------
# Kernel
# ---------------------------------------------------------------------------

def _vad_fwd_kernel(
    # inputs
    x_ref,
    w_ih0_ref, w_hh0_ref, b0_ref,
    w_ih1_ref, w_hh1_ref, b1_ref,
    inx_w_ref, inx_b_ref, ing_w_ref, ing_b_ref,
    conv_w_ref, conv_b_ref,
    q_ref, ssm_c_ref,
    outp_w_ref, outp_b_ref,
    heads_w_ref, heads_b_ref,
    # outputs
    slab_ref,
    # scratch
    gih_ref, lstm0_ref, lstm1_ref, xpart_ref,
    # static
    *, T, Bp,
):
    f32 = jnp.float32
    bf16 = jnp.bfloat16
    H = w_hh0_ref.shape[0]
    dc = conv_w_ref.shape[0]
    last = (T - 1) * Bp                       # row offset of last timestep
    slab_w = slab_ref.shape[1]

    def dot(a, b):
        return jnp.dot(a, b, preferred_element_type=f32)

    def lstm_layer(x_bf, w_ih_ref, w_hh_ref, b_ref, out_ref):
        # Hoisted input projection (one big M=T*Bp matmul) into explicit VMEM
        # scratch; only h @ W_hh stays inside the unrolled recurrence.
        gih_ref[...] = dot(x_bf, w_ih_ref[...]) + b_ref[...]        # (T*Bp, 4H) f32
        h = jnp.zeros((Bp, H), f32)
        c = jnp.zeros((Bp, H), f32)
        for t in range(T):                                          # static unroll
            g = gih_ref[t * Bp:(t + 1) * Bp] + dot(h.astype(bf16), w_hh_ref[...])
            i_g = jax.nn.sigmoid(g[:, 0 * H:1 * H])
            f_g = jax.nn.sigmoid(g[:, 1 * H:2 * H])
            g_g = jnp.tanh(g[:, 2 * H:3 * H])
            o_g = jax.nn.sigmoid(g[:, 3 * H:4 * H])
            c = f_g * c + i_g * g_g
            h = o_g * jnp.tanh(c)
            out_ref[t * Bp:(t + 1) * Bp] = h.astype(out_ref.dtype)  # bf16 store
        return h                                                    # final h, f32

    # ---- 2-layer LSTM ----
    lstm_layer(x_ref[...], w_ih0_ref, w_hh0_ref, b0_ref, lstm0_ref)
    h1_last = lstm_layer(lstm0_ref[...], w_ih1_ref, w_hh1_ref, b1_ref, lstm1_ref)

    # ---- MambaBlock ----
    # in_proj x-part for all timesteps; gate is only needed at the last step.
    xpart_ref[...] = dot(lstm1_ref[...], inx_w_ref[...]) + inx_b_ref[...]   # f32
    gate_last = dot(lstm1_ref[last:], ing_w_ref[...]) + ing_b_ref[...]      # (Bp, H)

    # Causal depthwise conv + SiLU + collapsed selective scan, fused per step.
    conv_taps = [conv_w_ref[k:k + 1] for k in range(dc)]           # hoisted loads
    bias_blk = jnp.zeros((Bp, H), f32) + conv_b_ref[...]           # hoisted bcast
    s_acc = jnp.zeros((Bp, 1), f32) + ssm_c_ref[...]               # scan constant
    x_act_last = None
    for t in range(T):                                             # static unroll
        acc_t = bias_blk
        for k in range(dc):
            src = t - (dc - 1 - k)
            if src >= 0:                                           # skip zero taps
                acc_t = acc_t + conv_taps[k] * xpart_ref[src * Bp:(src + 1) * Bp]
        xa = acc_t * jax.nn.sigmoid(acc_t)                         # SiLU, (Bp, H)
        # collapsed SSM: s_{T-1} = sum_t <x_act_t, q_t> + const
        s_acc = s_acc + jnp.sum(xa * q_ref[t:t + 1, :], axis=-1, keepdims=True)
        if t == T - 1:
            x_act_last = xa

    # gate SiLU + out_proj on the last timestep only (the only one consumed)
    y_last = (s_acc * x_act_last) * (gate_last * jax.nn.sigmoid(gate_last))
    mamba_last = dot(y_last.astype(bf16), outp_w_ref[...]) + outp_b_ref[...]  # (Bp, I)

    # ---- combine + fused heads: [proj | fc | pad | -2*memories] in one pass ----
    f = h1_last + 0.2 * mamba_last                                  # (Bp, I) f32
    fn2 = jnp.sum(f * f, axis=-1, keepdims=True)                    # (Bp, 1)
    r = dot(f, heads_w_ref[...]) + heads_b_ref[...]                 # (Bp, slab_w+2M)
    d2 = jnp.maximum(r[:, slab_w:] + fn2, 0.0)                      # |f-m|^2, f32
    anom = jnp.sqrt(jnp.min(d2, axis=-1, keepdims=True))            # (Bp, 1)
    lane = jax.lax.broadcasted_iota(jnp.int32, (Bp, slab_w), 1)
    slab_ref[...] = jnp.where(lane == _ANOM_COL, anom, r[:, :slab_w])


# ---------------------------------------------------------------------------
# Parameters + forward wrapper
# ---------------------------------------------------------------------------

def init_params(key):
    H = INPUT_SIZE
    I = INPUT_SIZE
    ks = jax.random.split(key, 24)
    r = lambda k, shp: jax.random.normal(k, shp, jnp.float32) * 0.05
    return {
        # LSTM layer 0 (input I -> hidden H), weights stored transposed (in, 4H)
        "w_ih0": r(ks[0], (I, 4 * H)),
        "w_hh0": r(ks[1], (H, 4 * H)),
        "b0":    r(ks[2], (1, 4 * H)),       # b_ih + b_hh pre-summed
        # LSTM layer 1 (input H -> hidden H)
        "w_ih1": r(ks[3], (H, 4 * H)),
        "w_hh1": r(ks[4], (H, 4 * H)),
        "b1":    r(ks[5], (1, 4 * H)),
        # Mamba block
        "in_proj_w":  r(ks[6], (I, 2 * H)),
        "in_proj_b":  r(ks[7], (1, 2 * H)),
        "out_proj_w": r(ks[8], (H, I)),
        "out_proj_b": r(ks[9], (1, I)),
        "ssm_w": r(ks[10], (H, D_STATE)),
        "ssm_b": r(ks[11], (1, D_STATE)),
        "A_T":   r(ks[12], (D_STATE, D_STATE)),   # stores A^T
        "Bv":    r(ks[13], (1, D_STATE)),
        "Cv":    r(ks[14], (1, D_STATE)),
        "conv_w": r(ks[15], (D_CONV, INPUT_SIZE)),  # conv_w[k, c] == torch W[c, 0, k]
        "conv_b": r(ks[16], (1, INPUT_SIZE)),
        # Dual memory network (stored transposed: (I, M))
        "pmem_T": r(ks[17], (I, MEMORY_SIZE)),
        "smem_T": r(ks[18], (I, MEMORY_SIZE)),
        # Heads
        "fc_w":   r(ks[19], (I, NUM_CLASSES)),
        "fc_b":   r(ks[20], (1, NUM_CLASSES)),
        "proj_w": r(ks[21], (I, PROJ_DIM)),
        "proj_b": r(ks[22], (1, PROJ_DIM)),
    }
    # NOTE: Mamba's `D` parameter is unused in the PyTorch forward -> omitted.


@jax.jit
def vad_forward(x, params):
    # x: (B, T, I) float32; 2-D input is treated as seq_len == 1 (like PyTorch)
    if x.ndim == 2:
        x = x[:, None, :]
    B, T, I = x.shape
    Bp = ((B + 15) // 16) * 16              # pad batch to bf16 sublane tile (16)
    x_flat = jnp.transpose(
        jnp.pad(x, ((0, Bp - B), (0, 0), (0, 0))), (1, 0, 2)
    ).reshape(T * Bp, I).astype(jnp.bfloat16)   # time-major, flattened, bf16

    bf = lambda a: a.astype(jnp.bfloat16)
    H = params["w_hh0"].shape[0]

    # split in_proj into x-part (all timesteps) and gate-part (last step only)
    inx_w = bf(params["in_proj_w"][:, :H])
    ing_w = bf(params["in_proj_w"][:, H:])
    inx_b = params["in_proj_b"][:, :H]
    ing_b = params["in_proj_b"][:, H:]

    # Collapsed selective scan (linear recurrence, only last step consumed):
    #   s_{T-1} = sum_t x_act_t @ q_t + const,  q_t = ssm_w @ (B ⊙ (A^T)^{T-1-t} C)
    AT, Bv, Cv = params["A_T"], params["Bv"][0], params["Cv"][0]
    v = Cv
    ws = []
    for _ in range(T):
        ws.append(Bv * v)
        v = AT @ v
    w_stack = jnp.stack(ws[::-1], axis=0)                     # (T, S)
    q = w_stack @ params["ssm_w"].T                            # (T, H)
    ssm_c = jnp.sum(w_stack * params["ssm_b"]).reshape(1, 1)   # scalar constant

    # Fused heads weight: [proj | fc | pad | -2*(primary,secondary memories)]
    # with the (parameter-constant) squared memory norms folded into the bias.
    mem_T = jnp.concatenate([params["pmem_T"], params["smem_T"]], axis=1)  # (I, 2M)
    mem_n2 = jnp.sum(mem_T * mem_T, axis=0, keepdims=True)
    scal_pad = _SCAL_GROUP - NUM_CLASSES
    heads_w = jnp.concatenate(
        [params["proj_w"], params["fc_w"],
         jnp.zeros((I, scal_pad), jnp.float32), -2.0 * mem_T], axis=1)
    heads_b = jnp.concatenate(
        [params["proj_b"], params["fc_b"],
         jnp.zeros((1, scal_pad), jnp.float32), mem_n2], axis=1)

    inputs = (
        x_flat,
        bf(params["w_ih0"]), bf(params["w_hh0"]), params["b0"],
        bf(params["w_ih1"]), bf(params["w_hh1"]), params["b1"],
        inx_w, inx_b, ing_w, ing_b,
        params["conv_w"], params["conv_b"],
        q, ssm_c,
        bf(params["out_proj_w"]), params["out_proj_b"],
        heads_w, heads_b,
    )
    vmem = pl.BlockSpec(memory_space=pltpu.MemorySpace.VMEM)

    slab = pl.pallas_call(
        functools.partial(_vad_fwd_kernel, T=T, Bp=Bp),
        out_shape=jax.ShapeDtypeStruct((Bp, _SLAB_W), jnp.float32),
        in_specs=[vmem] * len(inputs),
        out_specs=vmem,
        scratch_shapes=[
            pltpu.VMEM((T * Bp, 4 * H), jnp.float32),    # gih (shared by both layers)
            pltpu.VMEM((T * Bp, H), jnp.bfloat16),        # LSTM layer-0 out (bf16)
            pltpu.VMEM((T * Bp, H), jnp.bfloat16),        # LSTM layer-1 out (bf16)
            pltpu.VMEM((T * Bp, H), jnp.float32),         # in_proj x-part (conv input)
        ],
        compiler_params=pltpu.CompilerParams(vmem_limit_bytes=32 * 1024 * 1024),
    )(*inputs)

    out = slab[:B, PROJ_DIM:PROJ_DIM + NUM_CLASSES]
    anomaly = slab[:B, _ANOM_COL]
    proj = slab[:B, :PROJ_DIM]
    return out, anomaly, proj


# ---------------------------------------------------------------------------
# Demo
# ---------------------------------------------------------------------------

if __name__ == "__main__":
    key = jax.random.PRNGKey(0)
    pkey, xkey = jax.random.split(key)
    params = init_params(pkey)

    B, T = 2, 8
    x = jax.random.normal(xkey, (B, T, INPUT_SIZE), jnp.float32)

    out, anomaly, proj = vad_forward(x, params)
    jax.block_until_ready((out, anomaly, proj))

    assert out.shape == (B, NUM_CLASSES)
    assert anomaly.shape == (B,)
    assert proj.shape == (B, PROJ_DIM)
    print("KERNEL_OK")
</pallas_src>

<mosaic_0001>
module attributes {stable_mosaic.version = 11 : i64} {
  func.func @_vad_fwd_kernel(%arg0: memref<128x128xbf16, #tpu.memory_space<vmem>>, %arg1: memref<128x512xbf16, #tpu.memory_space<vmem>>, %arg2: memref<128x512xbf16, #tpu.memory_space<vmem>>, %arg3: memref<1x512xf32, #tpu.memory_space<vmem>>, %arg4: memref<128x512xbf16, #tpu.memory_space<vmem>>, %arg5: memref<128x512xbf16, #tpu.memory_space<vmem>>, %arg6: memref<1x512xf32, #tpu.memory_space<vmem>>, %arg7: memref<128x128xbf16, #tpu.memory_space<vmem>>, %arg8: memref<1x128xf32, #tpu.memory_space<vmem>>, %arg9: memref<128x128xbf16, #tpu.memory_space<vmem>>, %arg10: memref<1x128xf32, #tpu.memory_space<vmem>>, %arg11: memref<4x128xf32, #tpu.memory_space<vmem>>, %arg12: memref<1x128xf32, #tpu.memory_space<vmem>>, %arg13: memref<8x128xf32, #tpu.memory_space<vmem>>, %arg14: memref<1x1xf32, #tpu.memory_space<vmem>>, %arg15: memref<128x128xbf16, #tpu.memory_space<vmem>>, %arg16: memref<1x128xf32, #tpu.memory_space<vmem>>, %arg17: memref<128x384xf32, #tpu.memory_space<vmem>>, %arg18: memref<1x384xf32, #tpu.memory_space<vmem>>, %arg19: memref<16x256xf32, #tpu.memory_space<vmem>>, %arg20: memref<128x512xf32, #tpu.memory_space<vmem>>, %arg21: memref<128x128xbf16, #tpu.memory_space<vmem>>, %arg22: memref<128x128xbf16, #tpu.memory_space<vmem>>, %arg23: memref<128x128xf32, #tpu.memory_space<vmem>>) attributes {dimension_semantics = [], scalar_prefetch = 0 : i64, scratch_operands = 4 : i64, tpu.core_type = #tpu.core_type<tc>} {
    %c0 = arith.constant 0 : index
    %c0_0 = arith.constant 0 : index
    %0 = vector.load %arg0[%c0, %c0_0] : memref<128x128xbf16, #tpu.memory_space<vmem>>, vector<128x128xbf16>
    %c0_1 = arith.constant 0 : index
    %c0_2 = arith.constant 0 : index
    %1 = vector.load %arg1[%c0_1, %c0_2] : memref<128x512xbf16, #tpu.memory_space<vmem>>, vector<128x512xbf16>
    %cst = arith.constant dense<0.000000e+00> : vector<128x512xf32>
    %2 = tpu.matmul %0, %1, %cst {dimension_numbers = #tpu.dot_dimension_numbers<[1], [0], [0], [1], [0, 0, 1, 1], [], []>} : vector<128x128xbf16>, vector<128x512xbf16>, vector<128x512xf32> -> vector<128x512xf32>
    %c0_3 = arith.constant 0 : index
    %c0_4 = arith.constant 0 : index
    %3 = vector.load %arg3[%c0_3, %c0_4] : memref<1x512xf32, #tpu.memory_space<vmem>>, vector<1x512xf32>
    %4 = vector.broadcast %3 : vector<1x512xf32> to vector<128x512xf32>
    %5 = arith.addf %2, %4 : vector<128x512xf32>
    %c0_5 = arith.constant 0 : index
    %c0_6 = arith.constant 0 : index
    %6 = vector.load %arg20[%c0_5, %c0_6] : memref<128x512xf32, #tpu.memory_space<vmem>>, vector<128x512xf32>
    tpu.vector_store %arg20[%c0_5, %c0_6], %5 {strides = array<i32>} : memref<128x512xf32, #tpu.memory_space<vmem>>, vector<128x512xf32>,
    %cst_7 = arith.constant 0.000000e+00 : f32
    %7 = vector.broadcast %cst_7 : f32 to vector<16x128xf32>
    %cst_8 = arith.constant 0.000000e+00 : f32
    %8 = vector.broadcast %cst_8 : f32 to vector<16x128xf32>
    %c0_9 = arith.constant 0 : index
    %c0_10 = arith.constant 0 : index
    %9 = vector.load %arg20[%c0_9, %c0_10] : memref<128x512xf32, #tpu.memory_space<vmem>>, vector<16x512xf32>
    %10 = arith.truncf %7 : vector<16x128xf32> to vector<16x128xbf16>
    %c0_11 = arith.constant 0 : index
    %c0_12 = arith.constant 0 : index
    %11 = vector.load %arg2[%c0_11, %c0_12] : memref<128x512xbf16, #tpu.memory_space<vmem>>, vector<128x512xbf16>
    %cst_13 = arith.constant dense<0.000000e+00> : vector<16x512xf32>
    %12 = tpu.matmul %10, %11, %cst_13 {dimension_numbers = #tpu.dot_dimension_numbers<[1], [0], [0], [1], [0, 0, 1, 1], [], []>} : vector<16x128xbf16>, vector<128x512xbf16>, vector<16x512xf32> -> vector<16x512xf32>
    %13 = arith.addf %9, %12 : vector<16x512xf32>
    %14 = vector.extract_strided_slice %13 {offsets = [0, 0], sizes = [16, 128], strides = [1, 1]} : vector<16x512xf32> to vector<16x128xf32>
    %15 = arith.negf %14 : vector<16x128xf32>
    %16 = math.exp %15 : vector<16x128xf32>
    %cst_14 = arith.constant 1.000000e+00 : f32
    %17 = vector.broadcast %cst_14 : f32 to vector<16x128xf32>
    %18 = arith.addf %17, %16 : vector<16x128xf32>
    %19 = arith.divf %17, %18 : vector<16x128xf32>
    %20 = vector.extract_strided_slice %13 {offsets = [0, 128], sizes = [16, 128], strides = [1, 1]} : vector<16x512xf32> to vector<16x128xf32>
    %21 = arith.negf %20 : vector<16x128xf32>
    %22 = math.exp %21 : vector<16x128xf32>
    %cst_15 = arith.constant 1.000000e+00 : f32
    %23 = vector.broadcast %cst_15 : f32 to vector<16x128xf32>
    %24 = arith.addf %23, %22 : vector<16x128xf32>
    %25 = arith.divf %23, %24 : vector<16x128xf32>
    %26 = vector.extract_strided_slice %13 {offsets = [0, 256], sizes = [16, 128], strides = [1, 1]} : vector<16x512xf32> to vector<16x128xf32>
    %27 = math.tanh %26 : vector<16x128xf32>
    %28 = vector.extract_strided_slice %13 {offsets = [0, 384], sizes = [16, 128], strides = [1, 1]} : vector<16x512xf32> to vector<16x128xf32>
    %29 = arith.negf %28 : vector<16x128xf32>
    %30 = math.exp %29 : vector<16x128xf32>
    %cst_16 = arith.constant 1.000000e+00 : f32
    %31 = vector.broadcast %cst_16 : f32 to vector<16x128xf32>
    %32 = arith.addf %31, %30 : vector<16x128xf32>
    %33 = arith.divf %31, %32 : vector<16x128xf32>
    %34 = arith.mulf %25, %8 : vector<16x128xf32>
    %35 = arith.mulf %19, %27 : vector<16x128xf32>
    %36 = arith.addf %34, %35 : vector<16x128xf32>
    %37 = math.tanh %36 : vector<16x128xf32>
    %38 = arith.mulf %33, %37 : vector<16x128xf32>
    %39 = arith.truncf %38 : vector<16x128xf32> to vector<16x128xbf16>
    %c0_17 = arith.constant 0 : index
    %c0_18 = arith.constant 0 : index
    %40 = vector.load %arg21[%c0_17, %c0_18] : memref<128x128xbf16, #tpu.memory_space<vmem>>, vector<16x128xbf16>
    tpu.vector_store %arg21[%c0_17, %c0_18], %39 {strides = array<i32>} : memref<128x128xbf16, #tpu.memory_space<vmem>>, vector<16x128xbf16>,
    %c16 = arith.constant 16 : index
    %c0_19 = arith.constant 0 : index
    %41 = vector.load %arg20[%c16, %c0_19] : memref<128x512xf32, #tpu.memory_space<vmem>>, vector<16x512xf32>
    %42 = arith.truncf %38 : vector<16x128xf32> to vector<16x128xbf16>
    %c0_20 = arith.constant 0 : index
    %c0_21 = arith.constant 0 : index
    %43 = vector.load %arg2[%c0_20, %c0_21] : memref<128x512xbf16, #tpu.memory_space<vmem>>, vector<128x512xbf16>
    %cst_22 = arith.constant dense<0.000000e+00> : vector<16x512xf32>
    %44 = tpu.matmul %42, %43, %cst_22 {dimension_numbers = #tpu.dot_dimension_numbers<[1], [0], [0], [1], [0, 0, 1, 1], [], []>} : vector<16x128xbf16>, vector<128x512xbf16>, vector<16x512xf32> -> vector<16x512xf32>
    %45 = arith.addf %41, %44 : vector<16x512xf32>
    %46 = vector.extract_strided_slice %45 {offsets = [0, 0], sizes = [16, 128], strides = [1, 1]} : vector<16x512xf32> to vector<16x128xf32>
    %47 = arith.negf %46 : vector<16x128xf32>
    %48 = math.exp %47 : vector<16x128xf32>
    %cst_23 = arith.constant 1.000000e+00 : f32
    %49 = vector.broadcast %cst_23 : f32 to vector<16x128xf32>
    %50 = arith.addf %49, %48 : vector<16x128xf32>
    %51 = arith.divf %49, %50 : vector<16x128xf32>
    %52 = vector.extract_strided_slice %45 {offsets = [0, 128], sizes = [16, 128], strides = [1, 1]} : vector<16x512xf32> to vector<16x128xf32>
    %53 = arith.negf %52 : vector<16x128xf32>
    %54 = math.exp %53 : vector<16x128xf32>
    %cst_24 = arith.constant 1.000000e+00 : f32
    %55 = vector.broadcast %cst_24 : f32 to vector<16x128xf32>
    %56 = arith.addf %55, %54 : vector<16x128xf32>
    %57 = arith.divf %55, %56 : vector<16x128xf32>
    %58 = vector.extract_strided_slice %45 {offsets = [0, 256], sizes = [16, 128], strides = [1, 1]} : vector<16x512xf32> to vector<16x128xf32>
    %59 = math.tanh %58 : vector<16x128xf32>
    %60 = vector.extract_strided_slice %45 {offsets = [0, 384], sizes = [16, 128], strides = [1, 1]} : vector<16x512xf32> to vector<16x128xf32>
    %61 = arith.negf %60 : vector<16x128xf32>
    %62 = math.exp %61 : vector<16x128xf32>
    %cst_25 = arith.constant 1.000000e+00 : f32
    %63 = vector.broadcast %cst_25 : f32 to vector<16x128xf32>
    %64 = arith.addf %63, %62 : vector<16x128xf32>
    %65 = arith.divf %63, %64 : vector<16x128xf32>
    %66 = arith.mulf %57, %36 : vector<16x128xf32>
    %67 = arith.mulf %51, %59 : vector<16x128xf32>
    %68 = arith.addf %66, %67 : vector<16x128xf32>
    %69 = math.tanh %68 : vector<16x128xf32>
    %70 = arith.mulf %65, %69 : vector<16x128xf32>
    %71 = arith.truncf %70 : vector<16x128xf32> to vector<16x128xbf16>
    %c16_26 = arith.constant 16 : index
    %c0_27 = arith.constant 0 : index
    %72 = vector.load %arg21[%c16_26, %c0_27] : memref<128x128xbf16, #tpu.memory_space<vmem>>, vector<16x128xbf16>
    tpu.vector_store %arg21[%c16_26, %c0_27], %71 {strides = array<i32>} : memref<128x128xbf16, #tpu.memory_space<vmem>>, vector<16x128xbf16>,
    %c32 = arith.constant 32 : index
    %c0_28 = arith.constant 0 : index
    %73 = vector.load %arg20[%c32, %c0_28] : memref<128x512xf32, #tpu.memory_space<vmem>>, vector<16x512xf32>
    %74 = arith.truncf %70 : vector<16x128xf32> to vector<16x128xbf16>
    %c0_29 = arith.constant 0 : index
    %c0_30 = arith.constant 0 : index
    %75 = vector.load %arg2[%c0_29, %c0_30] : memref<128x512xbf16, #tpu.memory_space<vmem>>, vector<128x512xbf16>
    %cst_31 = arith.constant dense<0.000000e+00> : vector<16x512xf32>
    %76 = tpu.matmul %74, %75, %cst_31 {dimension_numbers = #tpu.dot_dimension_numbers<[1], [0], [0], [1], [0, 0, 1, 1], [], []>} : vector<16x128xbf16>, vector<128x512xbf16>, vector<16x512xf32> -> vector<16x512xf32>
    %77 = arith.addf %73, %76 : vector<16x512xf32>
    %78 = vector.extract_strided_slice %77 {offsets = [0, 0], sizes = [16, 128], strides = [1, 1]} : vector<16x512xf32> to vector<16x128xf32>
    %79 = arith.negf %78 : vector<16x128xf32>
    %80 = math.exp %79 : vector<16x128xf32>
    %cst_32 = arith.constant 1.000000e+00 : f32
    %81 = vector.broadcast %cst_32 : f32 to vector<16x128xf32>
    %82 = arith.addf %81, %80 : vector<16x128xf32>
    %83 = arith.divf %81, %82 : vector<16x128xf32>
    %84 = vector.extract_strided_slice %77 {offsets = [0, 128], sizes = [16, 128], strides = [1, 1]} : vector<16x512xf32> to vector<16x128xf32>
    %85 = arith.negf %84 : vector<16x128xf32>
    %86 = math.exp %85 : vector<16x128xf32>
    %cst_33 = arith.constant 1.000000e+00 : f32
    %87 = vector.broadcast %cst_33 : f32 to vector<16x128xf32>
    %88 = arith.addf %87, %86 : vector<16x128xf32>
    %89 = arith.divf %87, %88 : vector<16x128xf32>
    %90 = vector.extract_strided_slice %77 {offsets = [0, 256], sizes = [16, 128], strides = [1, 1]} : vector<16x512xf32> to vector<16x128xf32>
    %91 = math.tanh %90 : vector<16x128xf32>
    %92 = vector.extract_strided_slice %77 {offsets = [0, 384], sizes = [16, 128], strides = [1, 1]} : vector<16x512xf32> to vector<16x128xf32>
    %93 = arith.negf %92 : vector<16x128xf32>
    %94 = math.exp %93 : vector<16x128xf32>
    %cst_34 = arith.constant 1.000000e+00 : f32
    %95 = vector.broadcast %cst_34 : f32 to vector<16x128xf32>
    %96 = arith.addf %95, %94 : vector<16x128xf32>
    %97 = arith.divf %95, %96 : vector<16x128xf32>
    %98 = arith.mulf %89, %68 : vector<16x128xf32>
    %99 = arith.mulf %83, %91 : vector<16x128xf32>
    %100 = arith.addf %98, %99 : vector<16x128xf32>
    %101 = math.tanh %100 : vector<16x128xf32>
    %102 = arith.mulf %97, %101 : vector<16x128xf32>
    %103 = arith.truncf %102 : vector<16x128xf32> to vector<16x128xbf16>
    %c32_35 = arith.constant 32 : index
    %c0_36 = arith.constant 0 : index
    %104 = vector.load %arg21[%c32_35, %c0_36] : memref<128x128xbf16, #tpu.memory_space<vmem>>, vector<16x128xbf16>
    tpu.vector_store %arg21[%c32_35, %c0_36], %103 {strides = array<i32>} : memref<128x128xbf16, #tpu.memory_space<vmem>>, vector<16x128xbf16>,
    %c48 = arith.constant 48 : index
    %c0_37 = arith.constant 0 : index
    %105 = vector.load %arg20[%c48, %c0_37] : memref<128x512xf32, #tpu.memory_space<vmem>>, vector<16x512xf32>
    %106 = arith.truncf %102 : vector<16x128xf32> to vector<16x128xbf16>
    %c0_38 = arith.constant 0 : index
    %c0_39 = arith.constant 0 : index
    %107 = vector.load %arg2[%c0_38, %c0_39] : memref<128x512xbf16, #tpu.memory_space<vmem>>, vector<128x512xbf16>
    %cst_40 = arith.constant dense<0.000000e+00> : vector<16x512xf32>
    %108 = tpu.matmul %106, %107, %cst_40 {dimension_numbers = #tpu.dot_dimension_numbers<[1], [0], [0], [1], [0, 0, 1, 1], [], []>} : vector<16x128xbf16>, vector<128x512xbf16>, vector<16x512xf32> -> vector<16x512xf32>
    %109 = arith.addf %105, %108 : vector<16x512xf32>
    %110 = vector.extract_strided_slice %109 {offsets = [0, 0], sizes = [16, 128], strides = [1, 1]} : vector<16x512xf32> to vector<16x128xf32>
    %111 = arith.negf %110 : vector<16x128xf32>
    %112 = math.exp %111 : vector<16x128xf32>
    %cst_41 = arith.constant 1.000000e+00 : f32
    %113 = vector.broadcast %cst_41 : f32 to vector<16x128xf32>
    %114 = arith.addf %113, %112 : vector<16x128xf32>
    %115 = arith.divf %113, %114 : vector<16x128xf32>
    %116 = vector.extract_strided_slice %109 {offsets = [0, 128], sizes = [16, 128], strides = [1, 1]} : vector<16x512xf32> to vector<16x128xf32>
    %117 = arith.negf %116 : vector<16x128xf32>
    %118 = math.exp %117 : vector<16x128xf32>
    %cst_42 = arith.constant 1.000000e+00 : f32
    %119 = vector.broadcast %cst_42 : f32 to vector<16x128xf32>
    %120 = arith.addf %119, %118 : vector<16x128xf32>
    %121 = arith.divf %119, %120 : vector<16x128xf32>
    %122 = vector.extract_strided_slice %109 {offsets = [0, 256], sizes = [16, 128], strides = [1, 1]} : vector<16x512xf32> to vector<16x128xf32>
    %123 = math.tanh %122 : vector<16x128xf32>
    %124 = vector.extract_strided_slice %109 {offsets = [0, 384], sizes = [16, 128], strides = [1, 1]} : vector<16x512xf32> to vector<16x128xf32>
    %125 = arith.negf %124 : vector<16x128xf32>
    %126 = math.exp %125 : vector<16x128xf32>
    %cst_43 = arith.constant 1.000000e+00 : f32
    %127 = vector.broadcast %cst_43 : f32 to vector<16x128xf32>
    %128 = arith.addf %127, %126 : vector<16x128xf32>
    %129 = arith.divf %127, %128 : vector<16x128xf32>
    %130 = arith.mulf %121, %100 : vector<16x128xf32>
    %131 = arith.mulf %115, %123 : vector<16x128xf32>
    %132 = arith.addf %130, %131 : vector<16x128xf32>
    %133 = math.tanh %132 : vector<16x128xf32>
    %134 = arith.mulf %129, %133 : vector<16x128xf32>
    %135 = arith.truncf %134 : vector<16x128xf32> to vector<16x128xbf16>
    %c48_44 = arith.constant 48 : index
    %c0_45 = arith.constant 0 : index
    %136 = vector.load %arg21[%c48_44, %c0_45] : memref<128x128xbf16, #tpu.memory_space<vmem>>, vector<16x128xbf16>
    tpu.vector_store %arg21[%c48_44, %c0_45], %135 {strides = array<i32>} : memref<128x128xbf16, #tpu.memory_space<vmem>>, vector<16x128xbf16>,
    %c64 = arith.constant 64 : index
    %c0_46 = arith.constant 0 : index
    %137 = vector.load %arg20[%c64, %c0_46] : memref<128x512xf32, #tpu.memory_space<vmem>>, vector<16x512xf32>
    %138 = arith.truncf %134 : vector<16x128xf32> to vector<16x128xbf16>
    %c0_47 = arith.constant 0 : index
    %c0_48 = arith.constant 0 : index
    %139 = vector.load %arg2[%c0_47, %c0_48] : memref<128x512xbf16, #tpu.memory_space<vmem>>, vector<128x512xbf16>
    %cst_49 = arith.constant dense<0.000000e+00> : vector<16x512xf32>
    %140 = tpu.matmul %138, %139, %cst_49 {dimension_numbers = #tpu.dot_dimension_numbers<[1], [0], [0], [1], [0, 0, 1, 1], [], []>} : vector<16x128xbf16>, vector<128x512xbf16>, vector<16x512xf32> -> vector<16x512xf32>
    %141 = arith.addf %137, %140 : vector<16x512xf32>
    %142 = vector.extract_strided_slice %141 {offsets = [0, 0], sizes = [16, 128], strides = [1, 1]} : vector<16x512xf32> to vector<16x128xf32>
    %143 = arith.negf %142 : vector<16x128xf32>
    %144 = math.exp %143 : vector<16x128xf32>
    %cst_50 = arith.constant 1.000000e+00 : f32
    %145 = vector.broadcast %cst_50 : f32 to vector<16x128xf32>
    %146 = arith.addf %145, %144 : vector<16x128xf32>
    %147 = arith.divf %145, %146 : vector<16x128xf32>
    %148 = vector.extract_strided_slice %141 {offsets = [0, 128], sizes = [16, 128], strides = [1, 1]} : vector<16x512xf32> to vector<16x128xf32>
    %149 = arith.negf %148 : vector<16x128xf32>
    %150 = math.exp %149 : vector<16x128xf32>
    %cst_51 = arith.constant 1.000000e+00 : f32
    %151 = vector.broadcast %cst_51 : f32 to vector<16x128xf32>
    %152 = arith.addf %151, %150 : vector<16x128xf32>
    %153 = arith.divf %151, %152 : vector<16x128xf32>
    %154 = vector.extract_strided_slice %141 {offsets = [0, 256], sizes = [16, 128], strides = [1, 1]} : vector<16x512xf32> to vector<16x128xf32>
    %155 = math.tanh %154 : vector<16x128xf32>
    %156 = vector.extract_strided_slice %141 {offsets = [0, 384], sizes = [16, 128], strides = [1, 1]} : vector<16x512xf32> to vector<16x128xf32>
    %157 = arith.negf %156 : vector<16x128xf32>
    %158 = math.exp %157 : vector<16x128xf32>
    %cst_52 = arith.constant 1.000000e+00 : f32
    %159 = vector.broadcast %cst_52 : f32 to vector<16x128xf32>
    %160 = arith.addf %159, %158 : vector<16x128xf32>
    %161 = arith.divf %159, %160 : vector<16x128xf32>
    %162 = arith.mulf %153, %132 : vector<16x128xf32>
    %163 = arith.mulf %147, %155 : vector<16x128xf32>
    %164 = arith.addf %162, %163 : vector<16x128xf32>
    %165 = math.tanh %164 : vector<16x128xf32>
    %166 = arith.mulf %161, %165 : vector<16x128xf32>
    %167 = arith.truncf %166 : vector<16x128xf32> to vector<16x128xbf16>
    %c64_53 = arith.constant 64 : index
    %c0_54 = arith.constant 0 : index
    %168 = vector.load %arg21[%c64_53, %c0_54] : memref<128x128xbf16, #tpu.memory_space<vmem>>, vector<16x128xbf16>
    tpu.vector_store %arg21[%c64_53, %c0_54], %167 {strides = array<i32>} : memref<128x128xbf16, #tpu.memory_space<vmem>>, vector<16x128xbf16>,
    %c80 = arith.constant 80 : index
    %c0_55 = arith.constant 0 : index
    %169 = vector.load %arg20[%c80, %c0_55] : memref<128x512xf32, #tpu.memory_space<vmem>>, vector<16x512xf32>
    %170 = arith.truncf %166 : vector<16x128xf32> to vector<16x128xbf16>
    %c0_56 = arith.constant 0 : index
    %c0_57 = arith.constant 0 : index
    %171 = vector.load %arg2[%c0_56, %c0_57] : memref<128x512xbf16, #tpu.memory_space<vmem>>, vector<128x512xbf16>
    %cst_58 = arith.constant dense<0.000000e+00> : vector<16x512xf32>
    %172 = tpu.matmul %170, %171, %cst_58 {dimension_numbers = #tpu.dot_dimension_numbers<[1], [0], [0], [1], [0, 0, 1, 1], [], []>} : vector<16x128xbf16>, vector<128x512xbf16>, vector<16x512xf32> -> vector<16x512xf32>
    %173 = arith.addf %169, %172 : vector<16x512xf32>
    %174 = vector.extract_strided_slice %173 {offsets = [0, 0], sizes = [16, 128], strides = [1, 1]} : vector<16x512xf32> to vector<16x128xf32>
    %175 = arith.negf %174 : vector<16x128xf32>
    %176 = math.exp %175 : vector<16x128xf32>
    %cst_59 = arith.constant 1.000000e+00 : f32
    %177 = vector.broadcast %cst_59 : f32 to vector<16x128xf32>
    %178 = arith.addf %177, %176 : vector<16x128xf32>
    %179 = arith.divf %177, %178 : vector<16x128xf32>
    %180 = vector.extract_strided_slice %173 {offsets = [0, 128], sizes = [16, 128], strides = [1, 1]} : vector<16x512xf32> to vector<16x128xf32>
    %181 = arith.negf %180 : vector<16x128xf32>
    %182 = math.exp %181 : vector<16x128xf32>
    %cst_60 = arith.constant 1.000000e+00 : f32
    %183 = vector.broadcast %cst_60 : f32 to vector<16x128xf32>
    %184 = arith.addf %183, %182 : vector<16x128xf32>
    %185 = arith.divf %183, %184 : vector<16x128xf32>
    %186 = vector.extract_strided_slice %173 {offsets = [0, 256], sizes = [16, 128], strides = [1, 1]} : vector<16x512xf32> to vector<16x128xf32>
    %187 = math.tanh %186 : vector<16x128xf32>
    %188 = vector.extract_strided_slice %173 {offsets = [0, 384], sizes = [16, 128], strides = [1, 1]} : vector<16x512xf32> to vector<16x128xf32>
    %189 = arith.negf %188 : vector<16x128xf32>
    %190 = math.exp %189 : vector<16x128xf32>
    %cst_61 = arith.constant 1.000000e+00 : f32
    %191 = vector.broadcast %cst_61 : f32 to vector<16x128xf32>
    %192 = arith.addf %191, %190 : vector<16x128xf32>
    %193 = arith.divf %191, %192 : vector<16x128xf32>
    %194 = arith.mulf %185, %164 : vector<16x128xf32>
    %195 = arith.mulf %179, %187 : vector<16x128xf32>
    %196 = arith.addf %194, %195 : vector<16x128xf32>
    %197 = math.tanh %196 : vector<16x128xf32>
    %198 = arith.mulf %193, %197 : vector<16x128xf32>
    %199 = arith.truncf %198 : vector<16x128xf32> to vector<16x128xbf16>
    %c80_62 = arith.constant 80 : index
    %c0_63 = arith.constant 0 : index
    %200 = vector.load %arg21[%c80_62, %c0_63] : memref<128x128xbf16, #tpu.memory_space<vmem>>, vector<16x128xbf16>
    tpu.vector_store %arg21[%c80_62, %c0_63], %199 {strides = array<i32>} : memref<128x128xbf16, #tpu.memory_space<vmem>>, vector<16x128xbf16>,
    %c96 = arith.constant 96 : index
    %c0_64 = arith.constant 0 : index
    %201 = vector.load %arg20[%c96, %c0_64] : memref<128x512xf32, #tpu.memory_space<vmem>>, vector<16x512xf32>
    %202 = arith.truncf %198 : vector<16x128xf32> to vector<16x128xbf16>
    %c0_65 = arith.constant 0 : index
    %c0_66 = arith.constant 0 : index
    %203 = vector.load %arg2[%c0_65, %c0_66] : memref<128x512xbf16, #tpu.memory_space<vmem>>, vector<128x512xbf16>
    %cst_67 = arith.constant dense<0.000000e+00> : vector<16x512xf32>
    %204 = tpu.matmul %202, %203, %cst_67 {dimension_numbers = #tpu.dot_dimension_numbers<[1], [0], [0], [1], [0, 0, 1, 1], [], []>} : vector<16x128xbf16>, vector<128x512xbf16>, vector<16x512xf32> -> vector<16x512xf32>
    %205 = arith.addf %201, %204 : vector<16x512xf32>
    %206 = vector.extract_strided_slice %205 {offsets = [0, 0], sizes = [16, 128], strides = [1, 1]} : vector<16x512xf32> to vector<16x128xf32>
    %207 = arith.negf %206 : vector<16x128xf32>
    %208 = math.exp %207 : vector<16x128xf32>
    %cst_68 = arith.constant 1.000000e+00 : f32
    %209 = vector.broadcast %cst_68 : f32 to vector<16x128xf32>
    %210 = arith.addf %209, %208 : vector<16x128xf32>
    %211 = arith.divf %209, %210 : vector<16x128xf32>
    %212 = vector.extract_strided_slice %205 {offsets = [0, 128], sizes = [16, 128], strides = [1, 1]} : vector<16x512xf32> to vector<16x128xf32>
    %213 = arith.negf %212 : vector<16x128xf32>
    %214 = math.exp %213 : vector<16x128xf32>
    %cst_69 = arith.constant 1.000000e+00 : f32
    %215 = vector.broadcast %cst_69 : f32 to vector<16x128xf32>
    %216 = arith.addf %215, %214 : vector<16x128xf32>
    %217 = arith.divf %215, %216 : vector<16x128xf32>
    %218 = vector.extract_strided_slice %205 {offsets = [0, 256], sizes = [16, 128], strides = [1, 1]} : vector<16x512xf32> to vector<16x128xf32>
    %219 = math.tanh %218 : vector<16x128xf32>
    %220 = vector.extract_strided_slice %205 {offsets = [0, 384], sizes = [16, 128], strides = [1, 1]} : vector<16x512xf32> to vector<16x128xf32>
    %221 = arith.negf %220 : vector<16x128xf32>
    %222 = math.exp %221 : vector<16x128xf32>
    %cst_70 = arith.constant 1.000000e+00 : f32
    %223 = vector.broadcast %cst_70 : f32 to vector<16x128xf32>
    %224 = arith.addf %223, %222 : vector<16x128xf32>
    %225 = arith.divf %223, %224 : vector<16x128xf32>
    %226 = arith.mulf %217, %196 : vector<16x128xf32>
    %227 = arith.mulf %211, %219 : vector<16x128xf32>
    %228 = arith.addf %226, %227 : vector<16x128xf32>
    %229 = math.tanh %228 : vector<16x128xf32>
    %230 = arith.mulf %225, %229 : vector<16x128xf32>
    %231 = arith.truncf %230 : vector<16x128xf32> to vector<16x128xbf16>
    %c96_71 = arith.constant 96 : index
    %c0_72 = arith.constant 0 : index
    %232 = vector.load %arg21[%c96_71, %c0_72] : memref<128x128xbf16, #tpu.memory_space<vmem>>, vector<16x128xbf16>
    tpu.vector_store %arg21[%c96_71, %c0_72], %231 {strides = array<i32>} : memref<128x128xbf16, #tpu.memory_space<vmem>>, vector<16x128xbf16>,
    %c112 = arith.constant 112 : index
    %c0_73 = arith.constant 0 : index
    %233 = vector.load %arg20[%c112, %c0_73] : memref<128x512xf32, #tpu.memory_space<vmem>>, vector<16x512xf32>
    %234 = arith.truncf %230 : vector<16x128xf32> to vector<16x128xbf16>
    %c0_74 = arith.constant 0 : index
    %c0_75 = arith.constant 0 : index
    %235 = vector.load %arg2[%c0_74, %c0_75] : memref<128x512xbf16, #tpu.memory_space<vmem>>, vector<128x512xbf16>
    %cst_76 = arith.constant dense<0.000000e+00> : vector<16x512xf32>
    %236 = tpu.matmul %234, %235, %cst_76 {dimension_numbers = #tpu.dot_dimension_numbers<[1], [0], [0], [1], [0, 0, 1, 1], [], []>} : vector<16x128xbf16>, vector<128x512xbf16>, vector<16x512xf32> -> vector<16x512xf32>
    %237 = arith.addf %233, %236 : vector<16x512xf32>
    %238 = vector.extract_strided_slice %237 {offsets = [0, 0], sizes = [16, 128], strides = [1, 1]} : vector<16x512xf32> to vector<16x128xf32>
    %239 = arith.negf %238 : vector<16x128xf32>
    %240 = math.exp %239 : vector<16x128xf32>
    %cst_77 = arith.constant 1.000000e+00 : f32
    %241 = vector.broadcast %cst_77 : f32 to vector<16x128xf32>
    %242 = arith.addf %241, %240 : vector<16x128xf32>
    %243 = arith.divf %241, %242 : vector<16x128xf32>
    %244 = vector.extract_strided_slice %237 {offsets = [0, 128], sizes = [16, 128], strides = [1, 1]} : vector<16x512xf32> to vector<16x128xf32>
    %245 = arith.negf %244 : vector<16x128xf32>
    %246 = math.exp %245 : vector<16x128xf32>
    %cst_78 = arith.constant 1.000000e+00 : f32
    %247 = vector.broadcast %cst_78 : f32 to vector<16x128xf32>
    %248 = arith.addf %247, %246 : vector<16x128xf32>
    %249 = arith.divf %247, %248 : vector<16x128xf32>
    %250 = vector.extract_strided_slice %237 {offsets = [0, 256], sizes = [16, 128], strides = [1, 1]} : vector<16x512xf32> to vector<16x128xf32>
    %251 = math.tanh %250 : vector<16x128xf32>
    %252 = vector.extract_strided_slice %237 {offsets = [0, 384], sizes = [16, 128], strides = [1, 1]} : vector<16x512xf32> to vector<16x128xf32>
    %253 = arith.negf %252 : vector<16x128xf32>
    %254 = math.exp %253 : vector<16x128xf32>
    %cst_79 = arith.constant 1.000000e+00 : f32
    %255 = vector.broadcast %cst_79 : f32 to vector<16x128xf32>
    %256 = arith.addf %255, %254 : vector<16x128xf32>
    %257 = arith.divf %255, %256 : vector<16x128xf32>
    %258 = arith.mulf %249, %228 : vector<16x128xf32>
    %259 = arith.mulf %243, %251 : vector<16x128xf32>
    %260 = arith.addf %258, %259 : vector<16x128xf32>
    %261 = math.tanh %260 : vector<16x128xf32>
    %262 = arith.mulf %257, %261 : vector<16x128xf32>
    %263 = arith.truncf %262 : vector<16x128xf32> to vector<16x128xbf16>
    %c112_80 = arith.constant 112 : index
    %c0_81 = arith.constant 0 : index
    %264 = vector.load %arg21[%c112_80, %c0_81] : memref<128x128xbf16, #tpu.memory_space<vmem>>, vector<16x128xbf16>
    tpu.vector_store %arg21[%c112_80, %c0_81], %263 {strides = array<i32>} : memref<128x128xbf16, #tpu.memory_space<vmem>>, vector<16x128xbf16>,
    %c0_82 = arith.constant 0 : index
    %c0_83 = arith.constant 0 : index
    %265 = vector.load %arg21[%c0_82, %c0_83] : memref<128x128xbf16, #tpu.memory_space<vmem>>, vector<128x128xbf16>
    %c0_84 = arith.constant 0 : index
    %c0_85 = arith.constant 0 : index
    %266 = vector.load %arg4[%c0_84, %c0_85] : memref<128x512xbf16, #tpu.memory_space<vmem>>, vector<128x512xbf16>
    %cst_86 = arith.constant dense<0.000000e+00> : vector<128x512xf32>
    %267 = tpu.matmul %265, %266, %cst_86 {dimension_numbers = #tpu.dot_dimension_numbers<[1], [0], [0], [1], [0, 0, 1, 1], [], []>} : vector<128x128xbf16>, vector<128x512xbf16>, vector<128x512xf32> -> vector<128x512xf32>
    %c0_87 = arith.constant 0 : index
    %c0_88 = arith.constant 0 : index
    %268 = vector.load %arg6[%c0_87, %c0_88] : memref<1x512xf32, #tpu.memory_space<vmem>>, vector<1x512xf32>
    %269 = vector.broadcast %268 : vector<1x512xf32> to vector<128x512xf32>
    %270 = arith.addf %267, %269 : vector<128x512xf32>
    %c0_89 = arith.constant 0 : index
    %c0_90 = arith.constant 0 : index
    %271 = vector.load %arg20[%c0_89, %c0_90] : memref<128x512xf32, #tpu.memory_space<vmem>>, vector<128x512xf32>
    tpu.vector_store %arg20[%c0_89, %c0_90], %270 {strides = array<i32>} : memref<128x512xf32, #tpu.memory_space<vmem>>, vector<128x512xf32>,
    %cst_91 = arith.constant 0.000000e+00 : f32
    %272 = vector.broadcast %cst_91 : f32 to vector<16x128xf32>
    %cst_92 = arith.constant 0.000000e+00 : f32
    %273 = vector.broadcast %cst_92 : f32 to vector<16x128xf32>
    %c0_93 = arith.constant 0 : index
    %c0_94 = arith.constant 0 : index
    %274 = vector.load %arg20[%c0_93, %c0_94] : memref<128x512xf32, #tpu.memory_space<vmem>>, vector<16x512xf32>
    %275 = arith.truncf %272 : vector<16x128xf32> to vector<16x128xbf16>
    %c0_95 = arith.constant 0 : index
    %c0_96 = arith.constant 0 : index
    %276 = vector.load %arg5[%c0_95, %c0_96] : memref<128x512xbf16, #tpu.memory_space<vmem>>, vector<128x512xbf16>
    %cst_97 = arith.constant dense<0.000000e+00> : vector<16x512xf32>
    %277 = tpu.matmul %275, %276, %cst_97 {dimension_numbers = #tpu.dot_dimension_numbers<[1], [0], [0], [1], [0, 0, 1, 1], [], []>} : vector<16x128xbf16>, vector<128x512xbf16>, vector<16x512xf32> -> vector<16x512xf32>
    %278 = arith.addf %274, %277 : vector<16x512xf32>
    %279 = vector.extract_strided_slice %278 {offsets = [0, 0], sizes = [16, 128], strides = [1, 1]} : vector<16x512xf32> to vector<16x128xf32>
    %280 = arith.negf %279 : vector<16x128xf32>
    %281 = math.exp %280 : vector<16x128xf32>
    %cst_98 = arith.constant 1.000000e+00 : f32
    %282 = vector.broadcast %cst_98 : f32 to vector<16x128xf32>
    %283 = arith.addf %282, %281 : vector<16x128xf32>
    %284 = arith.divf %282, %283 : vector<16x128xf32>
    %285 = vector.extract_strided_slice %278 {offsets = [0, 128], sizes = [16, 128], strides = [1, 1]} : vector<16x512xf32> to vector<16x128xf32>
    %286 = arith.negf %285 : vector<16x128xf32>
    %287 = math.exp %286 : vector<16x128xf32>
    %cst_99 = arith.constant 1.000000e+00 : f32
    %288 = vector.broadcast %cst_99 : f32 to vector<16x128xf32>
    %289 = arith.addf %288, %287 : vector<16x128xf32>
    %290 = arith.divf %288, %289 : vector<16x128xf32>
    %291 = vector.extract_strided_slice %278 {offsets = [0, 256], sizes = [16, 128], strides = [1, 1]} : vector<16x512xf32> to vector<16x128xf32>
    %292 = math.tanh %291 : vector<16x128xf32>
    %293 = vector.extract_strided_slice %278 {offsets = [0, 384], sizes = [16, 128], strides = [1, 1]} : vector<16x512xf32> to vector<16x128xf32>
    %294 = arith.negf %293 : vector<16x128xf32>
    %295 = math.exp %294 : vector<16x128xf32>
    %cst_100 = arith.constant 1.000000e+00 : f32
    %296 = vector.broadcast %cst_100 : f32 to vector<16x128xf32>
    %297 = arith.addf %296, %295 : vector<16x128xf32>
    %298 = arith.divf %296, %297 : vector<16x128xf32>
    %299 = arith.mulf %290, %273 : vector<16x128xf32>
    %300 = arith.mulf %284, %292 : vector<16x128xf32>
    %301 = arith.addf %299, %300 : vector<16x128xf32>
    %302 = math.tanh %301 : vector<16x128xf32>
    %303 = arith.mulf %298, %302 : vector<16x128xf32>
    %304 = arith.truncf %303 : vector<16x128xf32> to vector<16x128xbf16>
    %c0_101 = arith.constant 0 : index
    %c0_102 = arith.constant 0 : index
    %305 = vector.load %arg22[%c0_101, %c0_102] : memref<128x128xbf16, #tpu.memory_space<vmem>>, vector<16x128xbf16>
    tpu.vector_store %arg22[%c0_101, %c0_102], %304 {strides = array<i32>} : memref<128x128xbf16, #tpu.memory_space<vmem>>, vector<16x128xbf16>,
    %c16_103 = arith.constant 16 : index
    %c0_104 = arith.constant 0 : index
    %306 = vector.load %arg20[%c16_103, %c0_104] : memref<128x512xf32, #tpu.memory_space<vmem>>, vector<16x512xf32>
    %307 = arith.truncf %303 : vector<16x128xf32> to vector<16x128xbf16>
    %c0_105 = arith.constant 0 : index
    %c0_106 = arith.constant 0 : index
    %308 = vector.load %arg5[%c0_105, %c0_106] : memref<128x512xbf16, #tpu.memory_space<vmem>>, vector<128x512xbf16>
    %cst_107 = arith.constant dense<0.000000e+00> : vector<16x512xf32>
    %309 = tpu.matmul %307, %308, %cst_107 {dimension_numbers = #tpu.dot_dimension_numbers<[1], [0], [0], [1], [0, 0, 1, 1], [], []>} : vector<16x128xbf16>, vector<128x512xbf16>, vector<16x512xf32> -> vector<16x512xf32>
    %310 = arith.addf %306, %309 : vector<16x512xf32>
    %311 = vector.extract_strided_slice %310 {offsets = [0, 0], sizes = [16, 128], strides = [1, 1]} : vector<16x512xf32> to vector<16x128xf32>
    %312 = arith.negf %311 : vector<16x128xf32>
    %313 = math.exp %312 : vector<16x128xf32>
    %cst_108 = arith.constant 1.000000e+00 : f32
    %314 = vector.broadcast %cst_108 : f32 to vector<16x128xf32>
    %315 = arith.addf %314, %313 : vector<16x128xf32>
    %316 = arith.divf %314, %315 : vector<16x128xf32>
    %317 = vector.extract_strided_slice %310 {offsets = [0, 128], sizes = [16, 128], strides = [1, 1]} : vector<16x512xf32> to vector<16x128xf32>
    %318 = arith.negf %317 : vector<16x128xf32>
    %319 = math.exp %318 : vector<16x128xf32>
    %cst_109 = arith.constant 1.000000e+00 : f32
    %320 = vector.broadcast %cst_109 : f32 to vector<16x128xf32>
    %321 = arith.addf %320, %319 : vector<16x128xf32>
    %322 = arith.divf %320, %321 : vector<16x128xf32>
    %323 = vector.extract_strided_slice %310 {offsets = [0, 256], sizes = [16, 128], strides = [1, 1]} : vector<16x512xf32> to vector<16x128xf32>
    %324 = math.tanh %323 : vector<16x128xf32>
    %325 = vector.extract_strided_slice %310 {offsets = [0, 384], sizes = [16, 128], strides = [1, 1]} : vector<16x512xf32> to vector<16x128xf32>
    %326 = arith.negf %325 : vector<16x128xf32>
    %327 = math.exp %326 : vector<16x128xf32>
    %cst_110 = arith.constant 1.000000e+00 : f32
    %328 = vector.broadcast %cst_110 : f32 to vector<16x128xf32>
    %329 = arith.addf %328, %327 : vector<16x128xf32>
    %330 = arith.divf %328, %329 : vector<16x128xf32>
    %331 = arith.mulf %322, %301 : vector<16x128xf32>
    %332 = arith.mulf %316, %324 : vector<16x128xf32>
    %333 = arith.addf %331, %332 : vector<16x128xf32>
    %334 = math.tanh %333 : vector<16x128xf32>
    %335 = arith.mulf %330, %334 : vector<16x128xf32>
    %336 = arith.truncf %335 : vector<16x128xf32> to vector<16x128xbf16>
    %c16_111 = arith.constant 16 : index
    %c0_112 = arith.constant 0 : index
    %337 = vector.load %arg22[%c16_111, %c0_112] : memref<128x128xbf16, #tpu.memory_space<vmem>>, vector<16x128xbf16>
    tpu.vector_store %arg22[%c16_111, %c0_112], %336 {strides = array<i32>} : memref<128x128xbf16, #tpu.memory_space<vmem>>, vector<16x128xbf16>,
    %c32_113 = arith.constant 32 : index
    %c0_114 = arith.constant 0 : index
    %338 = vector.load %arg20[%c32_113, %c0_114] : memref<128x512xf32, #tpu.memory_space<vmem>>, vector<16x512xf32>
    %339 = arith.truncf %335 : vector<16x128xf32> to vector<16x128xbf16>
    %c0_115 = arith.constant 0 : index
    %c0_116 = arith.constant 0 : index
    %340 = vector.load %arg5[%c0_115, %c0_116] : memref<128x512xbf16, #tpu.memory_space<vmem>>, vector<128x512xbf16>
    %cst_117 = arith.constant dense<0.000000e+00> : vector<16x512xf32>
    %341 = tpu.matmul %339, %340, %cst_117 {dimension_numbers = #tpu.dot_dimension_numbers<[1], [0], [0], [1], [0, 0, 1, 1], [], []>} : vector<16x128xbf16>, vector<128x512xbf16>, vector<16x512xf32> -> vector<16x512xf32>
    %342 = arith.addf %338, %341 : vector<16x512xf32>
    %343 = vector.extract_strided_slice %342 {offsets = [0, 0], sizes = [16, 128], strides = [1, 1]} : vector<16x512xf32> to vector<16x128xf32>
    %344 = arith.negf %343 : vector<16x128xf32>
    %345 = math.exp %344 : vector<16x128xf32>
    %cst_118 = arith.constant 1.000000e+00 : f32
    %346 = vector.broadcast %cst_118 : f32 to vector<16x128xf32>
    %347 = arith.addf %346, %345 : vector<16x128xf32>
    %348 = arith.divf %346, %347 : vector<16x128xf32>
    %349 = vector.extract_strided_slice %342 {offsets = [0, 128], sizes = [16, 128], strides = [1, 1]} : vector<16x512xf32> to vector<16x128xf32>
    %350 = arith.negf %349 : vector<16x128xf32>
    %351 = math.exp %350 : vector<16x128xf32>
    %cst_119 = arith.constant 1.000000e+00 : f32
    %352 = vector.broadcast %cst_119 : f32 to vector<16x128xf32>
    %353 = arith.addf %352, %351 : vector<16x128xf32>
    %354 = arith.divf %352, %353 : vector<16x128xf32>
    %355 = vector.extract_strided_slice %342 {offsets = [0, 256], sizes = [16, 128], strides = [1, 1]} : vector<16x512xf32> to vector<16x128xf32>
    %356 = math.tanh %355 : vector<16x128xf32>
    %357 = vector.extract_strided_slice %342 {offsets = [0, 384], sizes = [16, 128], strides = [1, 1]} : vector<16x512xf32> to vector<16x128xf32>
    %358 = arith.negf %357 : vector<16x128xf32>
    %359 = math.exp %358 : vector<16x128xf32>
    %cst_120 = arith.constant 1.000000e+00 : f32
    %360 = vector.broadcast %cst_120 : f32 to vector<16x128xf32>
    %361 = arith.addf %360, %359 : vector<16x128xf32>
    %362 = arith.divf %360, %361 : vector<16x128xf32>
    %363 = arith.mulf %354, %333 : vector<16x128xf32>
    %364 = arith.mulf %348, %356 : vector<16x128xf32>
    %365 = arith.addf %363, %364 : vector<16x128xf32>
    %366 = math.tanh %365 : vector<16x128xf32>
    %367 = arith.mulf %362, %366 : vector<16x128xf32>
    %368 = arith.truncf %367 : vector<16x128xf32> to vector<16x128xbf16>
    %c32_121 = arith.constant 32 : index
    %c0_122 = arith.constant 0 : index
    %369 = vector.load %arg22[%c32_121, %c0_122] : memref<128x128xbf16, #tpu.memory_space<vmem>>, vector<16x128xbf16>
    tpu.vector_store %arg22[%c32_121, %c0_122], %368 {strides = array<i32>} : memref<128x128xbf16, #tpu.memory_space<vmem>>, vector<16x128xbf16>,
    %c48_123 = arith.constant 48 : index
    %c0_124 = arith.constant 0 : index
    %370 = vector.load %arg20[%c48_123, %c0_124] : memref<128x512xf32, #tpu.memory_space<vmem>>, vector<16x512xf32>
    %371 = arith.truncf %367 : vector<16x128xf32> to vector<16x128xbf16>
    %c0_125 = arith.constant 0 : index
    %c0_126 = arith.constant 0 : index
    %372 = vector.load %arg5[%c0_125, %c0_126] : memref<128x512xbf16, #tpu.memory_space<vmem>>, vector<128x512xbf16>
    %cst_127 = arith.constant dense<0.000000e+00> : vector<16x512xf32>
    %373 = tpu.matmul %371, %372, %cst_127 {dimension_numbers = #tpu.dot_dimension_numbers<[1], [0], [0], [1], [0, 0, 1, 1], [], []>} : vector<16x128xbf16>, vector<128x512xbf16>, vector<16x512xf32> -> vector<16x512xf32>
    %374 = arith.addf %370, %373 : vector<16x512xf32>
    %375 = vector.extract_strided_slice %374 {offsets = [0, 0], sizes = [16, 128], strides = [1, 1]} : vector<16x512xf32> to vector<16x128xf32>
    %376 = arith.negf %375 : vector<16x128xf32>
    %377 = math.exp %376 : vector<16x128xf32>
    %cst_128 = arith.constant 1.000000e+00 : f32
    %378 = vector.broadcast %cst_128 : f32 to vector<16x128xf32>
    %379 = arith.addf %378, %377 : vector<16x128xf32>
    %380 = arith.divf %378, %379 : vector<16x128xf32>
    %381 = vector.extract_strided_slice %374 {offsets = [0, 128], sizes = [16, 128], strides = [1, 1]} : vector<16x512xf32> to vector<16x128xf32>
    %382 = arith.negf %381 : vector<16x128xf32>
    %383 = math.exp %382 : vector<16x128xf32>
    %cst_129 = arith.constant 1.000000e+00 : f32
    %384 = vector.broadcast %cst_129 : f32 to vector<16x128xf32>
    %385 = arith.addf %384, %383 : vector<16x128xf32>
    %386 = arith.divf %384, %385 : vector<16x128xf32>
    %387 = vector.extract_strided_slice %374 {offsets = [0, 256], sizes = [16, 128], strides = [1, 1]} : vector<16x512xf32> to vector<16x128xf32>
    %388 = math.tanh %387 : vector<16x128xf32>
    %389 = vector.extract_strided_slice %374 {offsets = [0, 384], sizes = [16, 128], strides = [1, 1]} : vector<16x512xf32> to vector<16x128xf32>
    %390 = arith.negf %389 : vector<16x128xf32>
    %391 = math.exp %390 : vector<16x128xf32>
    %cst_130 = arith.constant 1.000000e+00 : f32
    %392 = vector.broadcast %cst_130 : f32 to vector<16x128xf32>
    %393 = arith.addf %392, %391 : vector<16x128xf32>
    %394 = arith.divf %392, %393 : vector<16x128xf32>
    %395 = arith.mulf %386, %365 : vector<16x128xf32>
    %396 = arith.mulf %380, %388 : vector<16x128xf32>
    %397 = arith.addf %395, %396 : vector<16x128xf32>
    %398 = math.tanh %397 : vector<16x128xf32>
    %399 = arith.mulf %394, %398 : vector<16x128xf32>
    %400 = arith.truncf %399 : vector<16x128xf32> to vector<16x128xbf16>
    %c48_131 = arith.constant 48 : index
    %c0_132 = arith.constant 0 : index
    %401 = vector.load %arg22[%c48_131, %c0_132] : memref<128x128xbf16, #tpu.memory_space<vmem>>, vector<16x128xbf16>
    tpu.vector_store %arg22[%c48_131, %c0_132], %400 {strides = array<i32>} : memref<128x128xbf16, #tpu.memory_space<vmem>>, vector<16x128xbf16>,
    %c64_133 = arith.constant 64 : index
    %c0_134 = arith.constant 0 : index
    %402 = vector.load %arg20[%c64_133, %c0_134] : memref<128x512xf32, #tpu.memory_space<vmem>>, vector<16x512xf32>
    %403 = arith.truncf %399 : vector<16x128xf32> to vector<16x128xbf16>
    %c0_135 = arith.constant 0 : index
    %c0_136 = arith.constant 0 : index
    %404 = vector.load %arg5[%c0_135, %c0_136] : memref<128x512xbf16, #tpu.memory_space<vmem>>, vector<128x512xbf16>
    %cst_137 = arith.constant dense<0.000000e+00> : vector<16x512xf32>
    %405 = tpu.matmul %403, %404, %cst_137 {dimension_numbers = #tpu.dot_dimension_numbers<[1], [0], [0], [1], [0, 0, 1, 1], [], []>} : vector<16x128xbf16>, vector<128x512xbf16>, vector<16x512xf32> -> vector<16x512xf32>
    %406 = arith.addf %402, %405 : vector<16x512xf32>
    %407 = vector.extract_strided_slice %406 {offsets = [0, 0], sizes = [16, 128], strides = [1, 1]} : vector<16x512xf32> to vector<16x128xf32>
    %408 = arith.negf %407 : vector<16x128xf32>
    %409 = math.exp %408 : vector<16x128xf32>
    %cst_138 = arith.constant 1.000000e+00 : f32
    %410 = vector.broadcast %cst_138 : f32 to vector<16x128xf32>
    %411 = arith.addf %410, %409 : vector<16x128xf32>
    %412 = arith.divf %410, %411 : vector<16x128xf32>
    %413 = vector.extract_strided_slice %406 {offsets = [0, 128], sizes = [16, 128], strides = [1, 1]} : vector<16x512xf32> to vector<16x128xf32>
    %414 = arith.negf %413 : vector<16x128xf32>
    %415 = math.exp %414 : vector<16x128xf32>
    %cst_139 = arith.constant 1.000000e+00 : f32
    %416 = vector.broadcast %cst_139 : f32 to vector<16x128xf32>
    %417 = arith.addf %416, %415 : vector<16x128xf32>
    %418 = arith.divf %416, %417 : vector<16x128xf32>
    %419 = vector.extract_strided_slice %406 {offsets = [0, 256], sizes = [16, 128], strides = [1, 1]} : vector<16x512xf32> to vector<16x128xf32>
    %420 = math.tanh %419 : vector<16x128xf32>
    %421 = vector.extract_strided_slice %406 {offsets = [0, 384], sizes = [16, 128], strides = [1, 1]} : vector<16x512xf32> to vector<16x128xf32>
    %422 = arith.negf %421 : vector<16x128xf32>
    %423 = math.exp %422 : vector<16x128xf32>
    %cst_140 = arith.constant 1.000000e+00 : f32
    %424 = vector.broadcast %cst_140 : f32 to vector<16x128xf32>
    %425 = arith.addf %424, %423 : vector<16x128xf32>
    %426 = arith.divf %424, %425 : vector<16x128xf32>
    %427 = arith.mulf %418, %397 : vector<16x128xf32>
    %428 = arith.mulf %412, %420 : vector<16x128xf32>
    %429 = arith.addf %427, %428 : vector<16x128xf32>
    %430 = math.tanh %429 : vector<16x128xf32>
    %431 = arith.mulf %426, %430 : vector<16x128xf32>
    %432 = arith.truncf %431 : vector<16x128xf32> to vector<16x128xbf16>
    %c64_141 = arith.constant 64 : index
    %c0_142 = arith.constant 0 : index
    %433 = vector.load %arg22[%c64_141, %c0_142] : memref<128x128xbf16, #tpu.memory_space<vmem>>, vector<16x128xbf16>
    tpu.vector_store %arg22[%c64_141, %c0_142], %432 {strides = array<i32>} : memref<128x128xbf16, #tpu.memory_space<vmem>>, vector<16x128xbf16>,
    %c80_143 = arith.constant 80 : index
    %c0_144 = arith.constant 0 : index
    %434 = vector.load %arg20[%c80_143, %c0_144] : memref<128x512xf32, #tpu.memory_space<vmem>>, vector<16x512xf32>
    %435 = arith.truncf %431 : vector<16x128xf32> to vector<16x128xbf16>
    %c0_145 = arith.constant 0 : index
    %c0_146 = arith.constant 0 : index
    %436 = vector.load %arg5[%c0_145, %c0_146] : memref<128x512xbf16, #tpu.memory_space<vmem>>, vector<128x512xbf16>
    %cst_147 = arith.constant dense<0.000000e+00> : vector<16x512xf32>
    %437 = tpu.matmul %435, %436, %cst_147 {dimension_numbers = #tpu.dot_dimension_numbers<[1], [0], [0], [1], [0, 0, 1, 1], [], []>} : vector<16x128xbf16>, vector<128x512xbf16>, vector<16x512xf32> -> vector<16x512xf32>
    %438 = arith.addf %434, %437 : vector<16x512xf32>
    %439 = vector.extract_strided_slice %438 {offsets = [0, 0], sizes = [16, 128], strides = [1, 1]} : vector<16x512xf32> to vector<16x128xf32>
    %440 = arith.negf %439 : vector<16x128xf32>
    %441 = math.exp %440 : vector<16x128xf32>
    %cst_148 = arith.constant 1.000000e+00 : f32
    %442 = vector.broadcast %cst_148 : f32 to vector<16x128xf32>
    %443 = arith.addf %442, %441 : vector<16x128xf32>
    %444 = arith.divf %442, %443 : vector<16x128xf32>
    %445 = vector.extract_strided_slice %438 {offsets = [0, 128], sizes = [16, 128], strides = [1, 1]} : vector<16x512xf32> to vector<16x128xf32>
    %446 = arith.negf %445 : vector<16x128xf32>
    %447 = math.exp %446 : vector<16x128xf32>
    %cst_149 = arith.constant 1.000000e+00 : f32
    %448 = vector.broadcast %cst_149 : f32 to vector<16x128xf32>
    %449 = arith.addf %448, %447 : vector<16x128xf32>
    %450 = arith.divf %448, %449 : vector<16x128xf32>
    %451 = vector.extract_strided_slice %438 {offsets = [0, 256], sizes = [16, 128], strides = [1, 1]} : vector<16x512xf32> to vector<16x128xf32>
    %452 = math.tanh %451 : vector<16x128xf32>
    %453 = vector.extract_strided_slice %438 {offsets = [0, 384], sizes = [16, 128], strides = [1, 1]} : vector<16x512xf32> to vector<16x128xf32>
    %454 = arith.negf %453 : vector<16x128xf32>
    %455 = math.exp %454 : vector<16x128xf32>
    %cst_150 = arith.constant 1.000000e+00 : f32
    %456 = vector.broadcast %cst_150 : f32 to vector<16x128xf32>
    %457 = arith.addf %456, %455 : vector<16x128xf32>
    %458 = arith.divf %456, %457 : vector<16x128xf32>
    %459 = arith.mulf %450, %429 : vector<16x128xf32>
    %460 = arith.mulf %444, %452 : vector<16x128xf32>
    %461 = arith.addf %459, %460 : vector<16x128xf32>
    %462 = math.tanh %461 : vector<16x128xf32>
    %463 = arith.mulf %458, %462 : vector<16x128xf32>
    %464 = arith.truncf %463 : vector<16x128xf32> to vector<16x128xbf16>
    %c80_151 = arith.constant 80 : index
    %c0_152 = arith.constant 0 : index
    %465 = vector.load %arg22[%c80_151, %c0_152] : memref<128x128xbf16, #tpu.memory_space<vmem>>, vector<16x128xbf16>
    tpu.vector_store %arg22[%c80_151, %c0_152], %464 {strides = array<i32>} : memref<128x128xbf16, #tpu.memory_space<vmem>>, vector<16x128xbf16>,
    %c96_153 = arith.constant 96 : index
    %c0_154 = arith.constant 0 : index
    %466 = vector.load %arg20[%c96_153, %c0_154] : memref<128x512xf32, #tpu.memory_space<vmem>>, vector<16x512xf32>
    %467 = arith.truncf %463 : vector<16x128xf32> to vector<16x128xbf16>
    %c0_155 = arith.constant 0 : index
    %c0_156 = arith.constant 0 : index
    %468 = vector.load %arg5[%c0_155, %c0_156] : memref<128x512xbf16, #tpu.memory_space<vmem>>, vector<128x512xbf16>
    %cst_157 = arith.constant dense<0.000000e+00> : vector<16x512xf32>
    %469 = tpu.matmul %467, %468, %cst_157 {dimension_numbers = #tpu.dot_dimension_numbers<[1], [0], [0], [1], [0, 0, 1, 1], [], []>} : vector<16x128xbf16>, vector<128x512xbf16>, vector<16x512xf32> -> vector<16x512xf32>
    %470 = arith.addf %466, %469 : vector<16x512xf32>
    %471 = vector.extract_strided_slice %470 {offsets = [0, 0], sizes = [16, 128], strides = [1, 1]} : vector<16x512xf32> to vector<16x128xf32>
    %472 = arith.negf %471 : vector<16x128xf32>
    %473 = math.exp %472 : vector<16x128xf32>
    %cst_158 = arith.constant 1.000000e+00 : f32
    %474 = vector.broadcast %cst_158 : f32 to vector<16x128xf32>
    %475 = arith.addf %474, %473 : vector<16x128xf32>
    %476 = arith.divf %474, %475 : vector<16x128xf32>
    %477 = vector.extract_strided_slice %470 {offsets = [0, 128], sizes = [16, 128], strides = [1, 1]} : vector<16x512xf32> to vector<16x128xf32>
    %478 = arith.negf %477 : vector<16x128xf32>
    %479 = math.exp %478 : vector<16x128xf32>
    %cst_159 = arith.constant 1.000000e+00 : f32
    %480 = vector.broadcast %cst_159 : f32 to vector<16x128xf32>
    %481 = arith.addf %480, %479 : vector<16x128xf32>
    %482 = arith.divf %480, %481 : vector<16x128xf32>
    %483 = vector.extract_strided_slice %470 {offsets = [0, 256], sizes = [16, 128], strides = [1, 1]} : vector<16x512xf32> to vector<16x128xf32>
    %484 = math.tanh %483 : vector<16x128xf32>
    %485 = vector.extract_strided_slice %470 {offsets = [0, 384], sizes = [16, 128], strides = [1, 1]} : vector<16x512xf32> to vector<16x128xf32>
    %486 = arith.negf %485 : vector<16x128xf32>
    %487 = math.exp %486 : vector<16x128xf32>
    %cst_160 = arith.constant 1.000000e+00 : f32
    %488 = vector.broadcast %cst_160 : f32 to vector<16x128xf32>
    %489 = arith.addf %488, %487 : vector<16x128xf32>
    %490 = arith.divf %488, %489 : vector<16x128xf32>
    %491 = arith.mulf %482, %461 : vector<16x128xf32>
    %492 = arith.mulf %476, %484 : vector<16x128xf32>
    %493 = arith.addf %491, %492 : vector<16x128xf32>
    %494 = math.tanh %493 : vector<16x128xf32>
    %495 = arith.mulf %490, %494 : vector<16x128xf32>
    %496 = arith.truncf %495 : vector<16x128xf32> to vector<16x128xbf16>
    %c96_161 = arith.constant 96 : index
    %c0_162 = arith.constant 0 : index
    %497 = vector.load %arg22[%c96_161, %c0_162] : memref<128x128xbf16, #tpu.memory_space<vmem>>, vector<16x128xbf16>
    tpu.vector_store %arg22[%c96_161, %c0_162], %496 {strides = array<i32>} : memref<128x128xbf16, #tpu.memory_space<vmem>>, vector<16x128xbf16>,
    %c112_163 = arith.constant 112 : index
    %c0_164 = arith.constant 0 : index
    %498 = vector.load %arg20[%c112_163, %c0_164] : memref<128x512xf32, #tpu.memory_space<vmem>>, vector<16x512xf32>
    %499 = arith.truncf %495 : vector<16x128xf32> to vector<16x128xbf16>
    %c0_165 = arith.constant 0 : index
    %c0_166 = arith.constant 0 : index
    %500 = vector.load %arg5[%c0_165, %c0_166] : memref<128x512xbf16, #tpu.memory_space<vmem>>, vector<128x512xbf16>
    %cst_167 = arith.constant dense<0.000000e+00> : vector<16x512xf32>
    %501 = tpu.matmul %499, %500, %cst_167 {dimension_numbers = #tpu.dot_dimension_numbers<[1], [0], [0], [1], [0, 0, 1, 1], [], []>} : vector<16x128xbf16>, vector<128x512xbf16>, vector<16x512xf32> -> vector<16x512xf32>
    %502 = arith.addf %498, %501 : vector<16x512xf32>
    %503 = vector.extract_strided_slice %502 {offsets = [0, 0], sizes = [16, 128], strides = [1, 1]} : vector<16x512xf32> to vector<16x128xf32>
    %504 = arith.negf %503 : vector<16x128xf32>
    %505 = math.exp %504 : vector<16x128xf32>
    %cst_168 = arith.constant 1.000000e+00 : f32
    %506 = vector.broadcast %cst_168 : f32 to vector<16x128xf32>
    %507 = arith.addf %506, %505 : vector<16x128xf32>
    %508 = arith.divf %506, %507 : vector<16x128xf32>
    %509 = vector.extract_strided_slice %502 {offsets = [0, 128], sizes = [16, 128], strides = [1, 1]} : vector<16x512xf32> to vector<16x128xf32>
    %510 = arith.negf %509 : vector<16x128xf32>
    %511 = math.exp %510 : vector<16x128xf32>
    %cst_169 = arith.constant 1.000000e+00 : f32
    %512 = vector.broadcast %cst_169 : f32 to vector<16x128xf32>
    %513 = arith.addf %512, %511 : vector<16x128xf32>
    %514 = arith.divf %512, %513 : vector<16x128xf32>
    %515 = vector.extract_strided_slice %502 {offsets = [0, 256], sizes = [16, 128], strides = [1, 1]} : vector<16x512xf32> to vector<16x128xf32>
    %516 = math.tanh %515 : vector<16x128xf32>
    %517 = vector.extract_strided_slice %502 {offsets = [0, 384], sizes = [16, 128], strides = [1, 1]} : vector<16x512xf32> to vector<16x128xf32>
    %518 = arith.negf %517 : vector<16x128xf32>
    %519 = math.exp %518 : vector<16x128xf32>
    %cst_170 = arith.constant 1.000000e+00 : f32
    %520 = vector.broadcast %cst_170 : f32 to vector<16x128xf32>
    %521 = arith.addf %520, %519 : vector<16x128xf32>
    %522 = arith.divf %520, %521 : vector<16x128xf32>
    %523 = arith.mulf %514, %493 : vector<16x128xf32>
    %524 = arith.mulf %508, %516 : vector<16x128xf32>
    %525 = arith.addf %523, %524 : vector<16x128xf32>
    %526 = math.tanh %525 : vector<16x128xf32>
    %527 = arith.mulf %522, %526 : vector<16x128xf32>
    %528 = arith.truncf %527 : vector<16x128xf32> to vector<16x128xbf16>
    %c112_171 = arith.constant 112 : index
    %c0_172 = arith.constant 0 : index
    %529 = vector.load %arg22[%c112_171, %c0_172] : memref<128x128xbf16, #tpu.memory_space<vmem>>, vector<16x128xbf16>
    tpu.vector_store %arg22[%c112_171, %c0_172], %528 {strides = array<i32>} : memref<128x128xbf16, #tpu.memory_space<vmem>>, vector<16x128xbf16>,
    %c0_173 = arith.constant 0 : index
    %c0_174 = arith.constant 0 : index
    %530 = vector.load %arg22[%c0_173, %c0_174] : memref<128x128xbf16, #tpu.memory_space<vmem>>, vector<128x128xbf16>
    %c0_175 = arith.constant 0 : index
    %c0_176 = arith.constant 0 : index
    %531 = vector.load %arg7[%c0_175, %c0_176] : memref<128x128xbf16, #tpu.memory_space<vmem>>, vector<128x128xbf16>
    %cst_177 = arith.constant dense<0.000000e+00> : vector<128x128xf32>
    %532 = tpu.matmul %530, %531, %cst_177 {dimension_numbers = #tpu.dot_dimension_numbers<[1], [0], [0], [1], [0, 0, 1, 1], [], []>} : vector<128x128xbf16>, vector<128x128xbf16>, vector<128x128xf32> -> vector<128x128xf32>
    %c0_178 = arith.constant 0 : index
    %c0_179 = arith.constant 0 : index
    %533 = vector.load %arg8[%c0_178, %c0_179] : memref<1x128xf32, #tpu.memory_space<vmem>>, vector<1x128xf32>
    %534 = vector.broadcast %533 : vector<1x128xf32> to vector<128x128xf32>
    %535 = arith.addf %532, %534 : vector<128x128xf32>
    %c0_180 = arith.constant 0 : index
    %c0_181 = arith.constant 0 : index
    %536 = vector.load %arg23[%c0_180, %c0_181] : memref<128x128xf32, #tpu.memory_space<vmem>>, vector<128x128xf32>
    tpu.vector_store %arg23[%c0_180, %c0_181], %535 {strides = array<i32>} : memref<128x128xf32, #tpu.memory_space<vmem>>, vector<128x128xf32>,
    %c112_182 = arith.constant 112 : index
    %c0_183 = arith.constant 0 : index
    %537 = vector.load %arg22[%c112_182, %c0_183] : memref<128x128xbf16, #tpu.memory_space<vmem>>, vector<16x128xbf16>
    %c0_184 = arith.constant 0 : index
    %c0_185 = arith.constant 0 : index
    %538 = vector.load %arg9[%c0_184, %c0_185] : memref<128x128xbf16, #tpu.memory_space<vmem>>, vector<128x128xbf16>
    %cst_186 = arith.constant dense<0.000000e+00> : vector<16x128xf32>
    %539 = tpu.matmul %537, %538, %cst_186 {dimension_numbers = #tpu.dot_dimension_numbers<[1], [0], [0], [1], [0, 0, 1, 1], [], []>} : vector<16x128xbf16>, vector<128x128xbf16>, vector<16x128xf32> -> vector<16x128xf32>
    %c0_187 = arith.constant 0 : index
    %c0_188 = arith.constant 0 : index
    %540 = vector.load %arg10[%c0_187, %c0_188] : memref<1x128xf32, #tpu.memory_space<vmem>>, vector<1x128xf32>
    %541 = vector.broadcast %540 : vector<1x128xf32> to vector<16x128xf32>
    %542 = arith.addf %539, %541 : vector<16x128xf32>
    %c0_189 = arith.constant 0 : index
    %c0_190 = arith.constant 0 : index
    %543 = vector.load %arg11[%c0_189, %c0_190] : memref<4x128xf32, #tpu.memory_space<vmem>>, vector<1x128xf32>
    %c1 = arith.constant 1 : index
    %c0_191 = arith.constant 0 : index
    %544 = vector.load %arg11[%c1, %c0_191] : memref<4x128xf32, #tpu.memory_space<vmem>>, vector<1x128xf32>
    %c2 = arith.constant 2 : index
    %c0_192 = arith.constant 0 : index
    %545 = vector.load %arg11[%c2, %c0_192] : memref<4x128xf32, #tpu.memory_space<vmem>>, vector<1x128xf32>
    %c3 = arith.constant 3 : index
    %c0_193 = arith.constant 0 : index
    %546 = vector.load %arg11[%c3, %c0_193] : memref<4x128xf32, #tpu.memory_space<vmem>>, vector<1x128xf32>
    %cst_194 = arith.constant 0.000000e+00 : f32
    %547 = vector.broadcast %cst_194 : f32 to vector<16x128xf32>
    %c0_195 = arith.constant 0 : index
    %c0_196 = arith.constant 0 : index
    %548 = vector.load %arg12[%c0_195, %c0_196] : memref<1x128xf32, #tpu.memory_space<vmem>>, vector<1x128xf32>
    %549 = vector.broadcast %548 : vector<1x128xf32> to vector<16x128xf32>
    %550 = arith.addf %547, %549 : vector<16x128xf32>
    %cst_197 = arith.constant 0.000000e+00 : f32
    %551 = vector.broadcast %cst_197 : f32 to vector<16x1xf32>
    %c0_198 = arith.constant 0 : index
    %c0_199 = arith.constant 0 : index
    %552 = vector.load %arg14[%c0_198, %c0_199] : memref<1x1xf32, #tpu.memory_space<vmem>>, vector<1x1xf32>
    %553 = vector.broadcast %552 : vector<1x1xf32> to vector<16x1xf32>
    %554 = arith.addf %551, %553 : vector<16x1xf32>
    %c0_200 = arith.constant 0 : index
    %c0_201 = arith.constant 0 : index
    %555 = vector.load %arg23[%c0_200, %c0_201] : memref<128x128xf32, #tpu.memory_space<vmem>>, vector<16x128xf32>
    %556 = vector.broadcast %546 : vector<1x128xf32> to vector<16x128xf32>
    %557 = arith.mulf %556, %555 : vector<16x128xf32>
    %558 = arith.addf %550, %557 : vector<16x128xf32>
    %559 = arith.negf %558 : vector<16x128xf32>
    %560 = math.exp %559 : vector<16x128xf32>
    %cst_202 = arith.constant 1.000000e+00 : f32
    %561 = vector.broadcast %cst_202 : f32 to vector<16x128xf32>
    %562 = arith.addf %561, %560 : vector<16x128xf32>
    %563 = arith.divf %561, %562 : vector<16x128xf32>
    %564 = arith.mulf %558, %563 : vector<16x128xf32>
    %c0_203 = arith.constant 0 : index
    %c0_204 = arith.constant 0 : index
    %565 = vector.load %arg13[%c0_203, %c0_204] : memref<8x128xf32, #tpu.memory_space<vmem>>, vector<1x128xf32>
    %566 = vector.broadcast %565 : vector<1x128xf32> to vector<16x128xf32>
    %567 = arith.mulf %564, %566 : vector<16x128xf32>
    %cst_205 = arith.constant dense<0.000000e+00> : vector<16xf32>
    %568 = vector.multi_reduction <add>, %567, %cst_205 [1] : vector<16x128xf32> to vector<16xf32>
    %569 = vector.shape_cast %568 : vector<16xf32> to vector<16x1xf32>
    %570 = arith.addf %554, %569 : vector<16x1xf32>
    %c0_206 = arith.constant 0 : index
    %c0_207 = arith.constant 0 : index
    %571 = vector.load %arg23[%c0_206, %c0_207] : memref<128x128xf32, #tpu.memory_space<vmem>>, vector<16x128xf32>
    %572 = vector.broadcast %545 : vector<1x128xf32> to vector<16x128xf32>
    %573 = arith.mulf %572, %571 : vector<16x128xf32>
    %574 = arith.addf %550, %573 : vector<16x128xf32>
    %c16_208 = arith.constant 16 : index
    %c0_209 = arith.constant 0 : index
    %575 = vector.load %arg23[%c16_208, %c0_209] : memref<128x128xf32, #tpu.memory_space<vmem>>, vector<16x128xf32>
    %576 = vector.broadcast %546 : vector<1x128xf32> to vector<16x128xf32>
    %577 = arith.mulf %576, %575 : vector<16x128xf32>
    %578 = arith.addf %574, %577 : vector<16x128xf32>
    %579 = arith.negf %578 : vector<16x128xf32>
    %580 = math.exp %579 : vector<16x128xf32>
    %cst_210 = arith.constant 1.000000e+00 : f32
    %581 = vector.broadcast %cst_210 : f32 to vector<16x128xf32>
    %582 = arith.addf %581, %580 : vector<16x128xf32>
    %583 = arith.divf %581, %582 : vector<16x128xf32>
    %584 = arith.mulf %578, %583 : vector<16x128xf32>
    %c1_211 = arith.constant 1 : index
    %c0_212 = arith.constant 0 : index
    %585 = vector.load %arg13[%c1_211, %c0_212] : memref<8x128xf32, #tpu.memory_space<vmem>>, vector<1x128xf32>
    %586 = vector.broadcast %585 : vector<1x128xf32> to vector<16x128xf32>
    %587 = arith.mulf %584, %586 : vector<16x128xf32>
    %cst_213 = arith.constant dense<0.000000e+00> : vector<16xf32>
    %588 = vector.multi_reduction <add>, %587, %cst_213 [1] : vector<16x128xf32> to vector<16xf32>
    %589 = vector.shape_cast %588 : vector<16xf32> to vector<16x1xf32>
    %590 = arith.addf %570, %589 : vector<16x1xf32>
    %c0_214 = arith.constant 0 : index
    %c0_215 = arith.constant 0 : index
    %591 = vector.load %arg23[%c0_214, %c0_215] : memref<128x128xf32, #tpu.memory_space<vmem>>, vector<16x128xf32>
    %592 = vector.broadcast %544 : vector<1x128xf32> to vector<16x128xf32>
    %593 = arith.mulf %592, %591 : vector<16x128xf32>
    %594 = arith.addf %550, %593 : vector<16x128xf32>
    %c16_216 = arith.constant 16 : index
    %c0_217 = arith.constant 0 : index
    %595 = vector.load %arg23[%c16_216, %c0_217] : memref<128x128xf32, #tpu.memory_space<vmem>>, vector<16x128xf32>
    %596 = vector.broadcast %545 : vector<1x128xf32> to vector<16x128xf32>
    %597 = arith.mulf %596, %595 : vector<16x128xf32>
    %598 = arith.addf %594, %597 : vector<16x128xf32>
    %c32_218 = arith.constant 32 : index
    %c0_219 = arith.constant 0 : index
    %599 = vector.load %arg23[%c32_218, %c0_219] : memref<128x128xf32, #tpu.memory_space<vmem>>, vector<16x128xf32>
    %600 = vector.broadcast %546 : vector<1x128xf32> to vector<16x128xf32>
    %601 = arith.mulf %600, %599 : vector<16x128xf32>
    %602 = arith.addf %598, %601 : vector<16x128xf32>
    %603 = arith.negf %602 : vector<16x128xf32>
    %604 = math.exp %603 : vector<16x128xf32>
    %cst_220 = arith.constant 1.000000e+00 : f32
    %605 = vector.broadcast %cst_220 : f32 to vector<16x128xf32>
    %606 = arith.addf %605, %604 : vector<16x128xf32>
    %607 = arith.divf %605, %606 : vector<16x128xf32>
    %608 = arith.mulf %602, %607 : vector<16x128xf32>
    %c2_221 = arith.constant 2 : index
    %c0_222 = arith.constant 0 : index
    %609 = vector.load %arg13[%c2_221, %c0_222] : memref<8x128xf32, #tpu.memory_space<vmem>>, vector<1x128xf32>
    %610 = vector.broadcast %609 : vector<1x128xf32> to vector<16x128xf32>
    %611 = arith.mulf %608, %610 : vector<16x128xf32>
    %cst_223 = arith.constant dense<0.000000e+00> : vector<16xf32>
    %612 = vector.multi_reduction <add>, %611, %cst_223 [1] : vector<16x128xf32> to vector<16xf32>
    %613 = vector.shape_cast %612 : vector<16xf32> to vector<16x1xf32>
    %614 = arith.addf %590, %613 : vector<16x1xf32>
    %c0_224 = arith.constant 0 : index
    %c0_225 = arith.constant 0 : index
    %615 = vector.load %arg23[%c0_224, %c0_225] : memref<128x128xf32, #tpu.memory_space<vmem>>, vector<16x128xf32>
    %616 = vector.broadcast %543 : vector<1x128xf32> to vector<16x128xf32>
    %617 = arith.mulf %616, %615 : vector<16x128xf32>
    %618 = arith.addf %550, %617 : vector<16x128xf32>
    %c16_226 = arith.constant 16 : index
    %c0_227 = arith.constant 0 : index
    %619 = vector.load %arg23[%c16_226, %c0_227] : memref<128x128xf32, #tpu.memory_space<vmem>>, vector<16x128xf32>
    %620 = vector.broadcast %544 : vector<1x128xf32> to vector<16x128xf32>
    %621 = arith.mulf %620, %619 : vector<16x128xf32>
    %622 = arith.addf %618, %621 : vector<16x128xf32>
    %c32_228 = arith.constant 32 : index
    %c0_229 = arith.constant 0 : index
    %623 = vector.load %arg23[%c32_228, %c0_229] : memref<128x128xf32, #tpu.memory_space<vmem>>, vector<16x128xf32>
    %624 = vector.broadcast %545 : vector<1x128xf32> to vector<16x128xf32>
    %625 = arith.mulf %624, %623 : vector<16x128xf32>
    %626 = arith.addf %622, %625 : vector<16x128xf32>
    %c48_230 = arith.constant 48 : index
    %c0_231 = arith.constant 0 : index
    %627 = vector.load %arg23[%c48_230, %c0_231] : memref<128x128xf32, #tpu.memory_space<vmem>>, vector<16x128xf32>
    %628 = vector.broadcast %546 : vector<1x128xf32> to vector<16x128xf32>
    %629 = arith.mulf %628, %627 : vector<16x128xf32>
    %630 = arith.addf %626, %629 : vector<16x128xf32>
    %631 = arith.negf %630 : vector<16x128xf32>
    %632 = math.exp %631 : vector<16x128xf32>
    %cst_232 = arith.constant 1.000000e+00 : f32
    %633 = vector.broadcast %cst_232 : f32 to vector<16x128xf32>
    %634 = arith.addf %633, %632 : vector<16x128xf32>
    %635 = arith.divf %633, %634 : vector<16x128xf32>
    %636 = arith.mulf %630, %635 : vector<16x128xf32>
    %c3_233 = arith.constant 3 : index
    %c0_234 = arith.constant 0 : index
    %637 = vector.load %arg13[%c3_233, %c0_234] : memref<8x128xf32, #tpu.memory_space<vmem>>, vector<1x128xf32>
    %638 = vector.broadcast %637 : vector<1x128xf32> to vector<16x128xf32>
    %639 = arith.mulf %636, %638 : vector<16x128xf32>
    %cst_235 = arith.constant dense<0.000000e+00> : vector<16xf32>
    %640 = vector.multi_reduction <add>, %639, %cst_235 [1] : vector<16x128xf32> to vector<16xf32>
    %641 = vector.shape_cast %640 : vector<16xf32> to vector<16x1xf32>
    %642 = arith.addf %614, %641 : vector<16x1xf32>
    %c16_236 = arith.constant 16 : index
    %c0_237 = arith.constant 0 : index
    %643 = vector.load %arg23[%c16_236, %c0_237] : memref<128x128xf32, #tpu.memory_space<vmem>>, vector<16x128xf32>
    %644 = vector.broadcast %543 : vector<1x128xf32> to vector<16x128xf32>
    %645 = arith.mulf %644, %643 : vector<16x128xf32>
    %646 = arith.addf %550, %645 : vector<16x128xf32>
    %c32_238 = arith.constant 32 : index
    %c0_239 = arith.constant 0 : index
    %647 = vector.load %arg23[%c32_238, %c0_239] : memref<128x128xf32, #tpu.memory_space<vmem>>, vector<16x128xf32>
    %648 = vector.broadcast %544 : vector<1x128xf32> to vector<16x128xf32>
    %649 = arith.mulf %648, %647 : vector<16x128xf32>
    %650 = arith.addf %646, %649 : vector<16x128xf32>
    %c48_240 = arith.constant 48 : index
    %c0_241 = arith.constant 0 : index
    %651 = vector.load %arg23[%c48_240, %c0_241] : memref<128x128xf32, #tpu.memory_space<vmem>>, vector<16x128xf32>
    %652 = vector.broadcast %545 : vector<1x128xf32> to vector<16x128xf32>
    %653 = arith.mulf %652, %651 : vector<16x128xf32>
    %654 = arith.addf %650, %653 : vector<16x128xf32>
    %c64_242 = arith.constant 64 : index
    %c0_243 = arith.constant 0 : index
    %655 = vector.load %arg23[%c64_242, %c0_243] : memref<128x128xf32, #tpu.memory_space<vmem>>, vector<16x128xf32>
    %656 = vector.broadcast %546 : vector<1x128xf32> to vector<16x128xf32>
    %657 = arith.mulf %656, %655 : vector<16x128xf32>
    %658 = arith.addf %654, %657 : vector<16x128xf32>
    %659 = arith.negf %658 : vector<16x128xf32>
    %660 = math.exp %659 : vector<16x128xf32>
    %cst_244 = arith.constant 1.000000e+00 : f32
    %661 = vector.broadcast %cst_244 : f32 to vector<16x128xf32>
    %662 = arith.addf %661, %660 : vector<16x128xf32>
    %663 = arith.divf %661, %662 : vector<16x128xf32>
    %664 = arith.mulf %658, %663 : vector<16x128xf32>
    %c4 = arith.constant 4 : index
    %c0_245 = arith.constant 0 : index
    %665 = vector.load %arg13[%c4, %c0_245] : memref<8x128xf32, #tpu.memory_space<vmem>>, vector<1x128xf32>
    %666 = vector.broadcast %665 : vector<1x128xf32> to vector<16x128xf32>
    %667 = arith.mulf %664, %666 : vector<16x128xf32>
    %cst_246 = arith.constant dense<0.000000e+00> : vector<16xf32>
    %668 = vector.multi_reduction <add>, %667, %cst_246 [1] : vector<16x128xf32> to vector<16xf32>
    %669 = vector.shape_cast %668 : vector<16xf32> to vector<16x1xf32>
    %670 = arith.addf %642, %669 : vector<16x1xf32>
    %c32_247 = arith.constant 32 : index
    %c0_248 = arith.constant 0 : index
    %671 = vector.load %arg23[%c32_247, %c0_248] : memref<128x128xf32, #tpu.memory_space<vmem>>, vector<16x128xf32>
    %672 = vector.broadcast %543 : vector<1x128xf32> to vector<16x128xf32>
    %673 = arith.mulf %672, %671 : vector<16x128xf32>
    %674 = arith.addf %550, %673 : vector<16x128xf32>
    %c48_249 = arith.constant 48 : index
    %c0_250 = arith.constant 0 : index
    %675 = vector.load %arg23[%c48_249, %c0_250] : memref<128x128xf32, #tpu.memory_space<vmem>>, vector<16x128xf32>
    %676 = vector.broadcast %544 : vector<1x128xf32> to vector<16x128xf32>
    %677 = arith.mulf %676, %675 : vector<16x128xf32>
    %678 = arith.addf %674, %677 : vector<16x128xf32>
    %c64_251 = arith.constant 64 : index
    %c0_252 = arith.constant 0 : index
    %679 = vector.load %arg23[%c64_251, %c0_252] : memref<128x128xf32, #tpu.memory_space<vmem>>, vector<16x128xf32>
    %680 = vector.broadcast %545 : vector<1x128xf32> to vector<16x128xf32>
    %681 = arith.mulf %680, %679 : vector<16x128xf32>
    %682 = arith.addf %678, %681 : vector<16x128xf32>
    %c80_253 = arith.constant 80 : index
    %c0_254 = arith.constant 0 : index
    %683 = vector.load %arg23[%c80_253, %c0_254] : memref<128x128xf32, #tpu.memory_space<vmem>>, vector<16x128xf32>
    %684 = vector.broadcast %546 : vector<1x128xf32> to vector<16x128xf32>
    %685 = arith.mulf %684, %683 : vector<16x128xf32>
    %686 = arith.addf %682, %685 : vector<16x128xf32>
    %687 = arith.negf %686 : vector<16x128xf32>
    %688 = math.exp %687 : vector<16x128xf32>
    %cst_255 = arith.constant 1.000000e+00 : f32
    %689 = vector.broadcast %cst_255 : f32 to vector<16x128xf32>
    %690 = arith.addf %689, %688 : vector<16x128xf32>
    %691 = arith.divf %689, %690 : vector<16x128xf32>
    %692 = arith.mulf %686, %691 : vector<16x128xf32>
    %c5 = arith.constant 5 : index
    %c0_256 = arith.constant 0 : index
    %693 = vector.load %arg13[%c5, %c0_256] : memref<8x128xf32, #tpu.memory_space<vmem>>, vector<1x128xf32>
    %694 = vector.broadcast %693 : vector<1x128xf32> to vector<16x128xf32>
    %695 = arith.mulf %692, %694 : vector<16x128xf32>
    %cst_257 = arith.constant dense<0.000000e+00> : vector<16xf32>
    %696 = vector.multi_reduction <add>, %695, %cst_257 [1] : vector<16x128xf32> to vector<16xf32>
    %697 = vector.shape_cast %696 : vector<16xf32> to vector<16x1xf32>
    %698 = arith.addf %670, %697 : vector<16x1xf32>
    %c48_258 = arith.constant 48 : index
    %c0_259 = arith.constant 0 : index
    %699 = vector.load %arg23[%c48_258, %c0_259] : memref<128x128xf32, #tpu.memory_space<vmem>>, vector<16x128xf32>
    %700 = vector.broadcast %543 : vector<1x128xf32> to vector<16x128xf32>
    %701 = arith.mulf %700, %699 : vector<16x128xf32>
    %702 = arith.addf %550, %701 : vector<16x128xf32>
    %c64_260 = arith.constant 64 : index
    %c0_261 = arith.constant 0 : index
    %703 = vector.load %arg23[%c64_260, %c0_261] : memref<128x128xf32, #tpu.memory_space<vmem>>, vector<16x128xf32>
    %704 = vector.broadcast %544 : vector<1x128xf32> to vector<16x128xf32>
    %705 = arith.mulf %704, %703 : vector<16x128xf32>
    %706 = arith.addf %702, %705 : vector<16x128xf32>
    %c80_262 = arith.constant 80 : index
    %c0_263 = arith.constant 0 : index
    %707 = vector.load %arg23[%c80_262, %c0_263] : memref<128x128xf32, #tpu.memory_space<vmem>>, vector<16x128xf32>
    %708 = vector.broadcast %545 : vector<1x128xf32> to vector<16x128xf32>
    %709 = arith.mulf %708, %707 : vector<16x128xf32>
    %710 = arith.addf %706, %709 : vector<16x128xf32>
    %c96_264 = arith.constant 96 : index
    %c0_265 = arith.constant 0 : index
    %711 = vector.load %arg23[%c96_264, %c0_265] : memref<128x128xf32, #tpu.memory_space<vmem>>, vector<16x128xf32>
    %712 = vector.broadcast %546 : vector<1x128xf32> to vector<16x128xf32>
    %713 = arith.mulf %712, %711 : vector<16x128xf32>
    %714 = arith.addf %710, %713 : vector<16x128xf32>
    %715 = arith.negf %714 : vector<16x128xf32>
    %716 = math.exp %715 : vector<16x128xf32>
    %cst_266 = arith.constant 1.000000e+00 : f32
    %717 = vector.broadcast %cst_266 : f32 to vector<16x128xf32>
    %718 = arith.addf %717, %716 : vector<16x128xf32>
    %719 = arith.divf %717, %718 : vector<16x128xf32>
    %720 = arith.mulf %714, %719 : vector<16x128xf32>
    %c6 = arith.constant 6 : index
    %c0_267 = arith.constant 0 : index
    %721 = vector.load %arg13[%c6, %c0_267] : memref<8x128xf32, #tpu.memory_space<vmem>>, vector<1x128xf32>
    %722 = vector.broadcast %721 : vector<1x128xf32> to vector<16x128xf32>
    %723 = arith.mulf %720, %722 : vector<16x128xf32>
    %cst_268 = arith.constant dense<0.000000e+00> : vector<16xf32>
    %724 = vector.multi_reduction <add>, %723, %cst_268 [1] : vector<16x128xf32> to vector<16xf32>
    %725 = vector.shape_cast %724 : vector<16xf32> to vector<16x1xf32>
    %726 = arith.addf %698, %725 : vector<16x1xf32>
    %c64_269 = arith.constant 64 : index
    %c0_270 = arith.constant 0 : index
    %727 = vector.load %arg23[%c64_269, %c0_270] : memref<128x128xf32, #tpu.memory_space<vmem>>, vector<16x128xf32>
    %728 = vector.broadcast %543 : vector<1x128xf32> to vector<16x128xf32>
    %729 = arith.mulf %728, %727 : vector<16x128xf32>
    %730 = arith.addf %550, %729 : vector<16x128xf32>
    %c80_271 = arith.constant 80 : index
    %c0_272 = arith.constant 0 : index
    %731 = vector.load %arg23[%c80_271, %c0_272] : memref<128x128xf32, #tpu.memory_space<vmem>>, vector<16x128xf32>
    %732 = vector.broadcast %544 : vector<1x128xf32> to vector<16x128xf32>
    %733 = arith.mulf %732, %731 : vector<16x128xf32>
    %734 = arith.addf %730, %733 : vector<16x128xf32>
    %c96_273 = arith.constant 96 : index
    %c0_274 = arith.constant 0 : index
    %735 = vector.load %arg23[%c96_273, %c0_274] : memref<128x128xf32, #tpu.memory_space<vmem>>, vector<16x128xf32>
    %736 = vector.broadcast %545 : vector<1x128xf32> to vector<16x128xf32>
    %737 = arith.mulf %736, %735 : vector<16x128xf32>
    %738 = arith.addf %734, %737 : vector<16x128xf32>
    %c112_275 = arith.constant 112 : index
    %c0_276 = arith.constant 0 : index
    %739 = vector.load %arg23[%c112_275, %c0_276] : memref<128x128xf32, #tpu.memory_space<vmem>>, vector<16x128xf32>
    %740 = vector.broadcast %546 : vector<1x128xf32> to vector<16x128xf32>
    %741 = arith.mulf %740, %739 : vector<16x128xf32>
    %742 = arith.addf %738, %741 : vector<16x128xf32>
    %743 = arith.negf %742 : vector<16x128xf32>
    %744 = math.exp %743 : vector<16x128xf32>
    %cst_277 = arith.constant 1.000000e+00 : f32
    %745 = vector.broadcast %cst_277 : f32 to vector<16x128xf32>
    %746 = arith.addf %745, %744 : vector<16x128xf32>
    %747 = arith.divf %745, %746 : vector<16x128xf32>
    %748 = arith.mulf %742, %747 : vector<16x128xf32>
    %c7 = arith.constant 7 : index
    %c0_278 = arith.constant 0 : index
    %749 = vector.load %arg13[%c7, %c0_278] : memref<8x128xf32, #tpu.memory_space<vmem>>, vector<1x128xf32>
    %750 = vector.broadcast %749 : vector<1x128xf32> to vector<16x128xf32>
    %751 = arith.mulf %748, %750 : vector<16x128xf32>
    %cst_279 = arith.constant dense<0.000000e+00> : vector<16xf32>
    %752 = vector.multi_reduction <add>, %751, %cst_279 [1] : vector<16x128xf32> to vector<16xf32>
    %753 = vector.shape_cast %752 : vector<16xf32> to vector<16x1xf32>
    %754 = arith.addf %726, %753 : vector<16x1xf32>
    %755 = vector.broadcast %754 : vector<16x1xf32> to vector<16x128xf32>
    %756 = arith.mulf %755, %748 : vector<16x128xf32>
    %757 = arith.negf %542 : vector<16x128xf32>
    %758 = math.exp %757 : vector<16x128xf32>
    %cst_280 = arith.constant 1.000000e+00 : f32
    %759 = vector.broadcast %cst_280 : f32 to vector<16x128xf32>
    %760 = arith.addf %759, %758 : vector<16x128xf32>
    %761 = arith.divf %759, %760 : vector<16x128xf32>
    %762 = arith.mulf %542, %761 : vector<16x128xf32>
    %763 = arith.mulf %756, %762 : vector<16x128xf32>
    %764 = arith.truncf %763 : vector<16x128xf32> to vector<16x128xbf16>
    %c0_281 = arith.constant 0 : index
    %c0_282 = arith.constant 0 : index
    %765 = vector.load %arg15[%c0_281, %c0_282] : memref<128x128xbf16, #tpu.memory_space<vmem>>, vector<128x128xbf16>
    %cst_283 = arith.constant dense<0.000000e+00> : vector<16x128xf32>
    %766 = tpu.matmul %764, %765, %cst_283 {dimension_numbers = #tpu.dot_dimension_numbers<[1], [0], [0], [1], [0, 0, 1, 1], [], []>} : vector<16x128xbf16>, vector<128x128xbf16>, vector<16x128xf32> -> vector<16x128xf32>
    %c0_284 = arith.constant 0 : index
    %c0_285 = arith.constant 0 : index
    %767 = vector.load %arg16[%c0_284, %c0_285] : memref<1x128xf32, #tpu.memory_space<vmem>>, vector<1x128xf32>
    %768 = vector.broadcast %767 : vector<1x128xf32> to vector<16x128xf32>
    %769 = arith.addf %766, %768 : vector<16x128xf32>
    %cst_286 = arith.constant 2.000000e-01 : f32
    %770 = vector.broadcast %cst_286 : f32 to vector<16x128xf32>
    %771 = arith.mulf %770, %769 : vector<16x128xf32>
    %772 = arith.addf %527, %771 : vector<16x128xf32>
    %773 = arith.mulf %772, %772 : vector<16x128xf32>
    %cst_287 = arith.constant dense<0.000000e+00> : vector<16xf32>
    %774 = vector.multi_reduction <add>, %773, %cst_287 [1] : vector<16x128xf32> to vector<16xf32>
    %775 = vector.shape_cast %774 : vector<16xf32> to vector<16x1xf32>
    %c0_288 = arith.constant 0 : index
    %c0_289 = arith.constant 0 : index
    %776 = vector.load %arg17[%c0_288, %c0_289] : memref<128x384xf32, #tpu.memory_space<vmem>>, vector<128x384xf32>
    %cst_290 = arith.constant dense<0.000000e+00> : vector<16x384xf32>
    %777 = tpu.matmul %772, %776, %cst_290 {dimension_numbers = #tpu.dot_dimension_numbers<[1], [0], [0], [1], [0, 0, 1, 1], [], []>} : vector<16x128xf32>, vector<128x384xf32>, vector<16x384xf32> -> vector<16x384xf32>
    %c0_291 = arith.constant 0 : index
    %c0_292 = arith.constant 0 : index
    %778 = vector.load %arg18[%c0_291, %c0_292] : memref<1x384xf32, #tpu.memory_space<vmem>>, vector<1x384xf32>
    %779 = vector.broadcast %778 : vector<1x384xf32> to vector<16x384xf32>
    %780 = arith.addf %777, %779 : vector<16x384xf32>
    %781 = vector.extract_strided_slice %780 {offsets = [0, 256], sizes = [16, 128], strides = [1, 1]} : vector<16x384xf32> to vector<16x128xf32>
    %782 = vector.broadcast %775 : vector<16x1xf32> to vector<16x128xf32>
    %783 = arith.addf %781, %782 : vector<16x128xf32>
    %cst_293 = arith.constant 0.000000e+00 : f32
    %784 = vector.broadcast %cst_293 : f32 to vector<16x128xf32>
    %785 = arith.maximumf %783, %784 : vector<16x128xf32>
    %cst_294 = arith.constant dense<0x7F800000> : vector<16xf32>
    %786 = vector.multi_reduction <minimumf>, %785, %cst_294 [1] : vector<16x128xf32> to vector<16xf32>
    %787 = vector.shape_cast %786 : vector<16xf32> to vector<16x1xf32>
    %788 = math.sqrt %787 : vector<16x1xf32>
    %789 = tpu.iota {dimensions = array<i32: 1>} : vector<16x256xi32>
    %c129_i32 = arith.constant 129 : i32
    %790 = vector.broadcast %c129_i32 : i32 to vector<16x256xi32>
    %791 = arith.cmpi eq, %789, %790 : vector<16x256xi32>
    %792 = vector.extract_strided_slice %780 {offsets = [0, 0], sizes = [16, 256], strides = [1, 1]} : vector<16x384xf32> to vector<16x256xf32>
    %793 = vector.shape_cast %788 : vector<16x1xf32> to vector<16x1xf32>
    %794 = vector.broadcast %793 : vector<16x1xf32> to vector<16x256xf32>
    %795 = arith.select %791, %794, %792 : vector<16x256xi1>, vector<16x256xf32>
    %c0_295 = arith.constant 0 : index
    %c0_296 = arith.constant 0 : index
    %796 = vector.load %arg19[%c0_295, %c0_296] : memref<16x256xf32, #tpu.memory_space<vmem>>, vector<16x256xf32>
    tpu.vector_store %arg19[%c0_295, %c0_296], %795 {strides = array<i32>} : memref<16x256xf32, #tpu.memory_space<vmem>>, vector<16x256xf32>,
    return
  }
}

</mosaic_0001>

<bundles_post_ra>
// kernel: vad_forward.1
= control target key start
LH: loop header
LB: loop body
LE: loop exit
PB: predicated region body
PF: predicated region fallthrough
CT: control target
= control target key end

     0   :  { %v12359_v1 = vmov 0   ;;  %vm9875_vm0 = vmmov 0   ;;  %s12334_s1 = inlined_call_operand.vmem [shape: bf16[128,512], index: 1, kind: input, shape index: {}]   ;;  %s12335_s0 = inlined_call_operand.vmem [shape: bf16[128,128], index: 0, kind: input, shape index: {}]   ;;  %s12336_s2 = inlined_call_operand.vmem [shape: bf16[128,512], index: 2, kind: input, shape index: {}]   ;;  %s12337_s3 = inlined_call_operand.vmem [shape: f32[1,512], index: 3, kind: input, shape index: {}]   ;;  %s12338_s4 = inlined_call_operand.vmem [shape: bf16[128,512], index: 4, kind: input, shape index: {}]   ;;  %s12339_s5 = inlined_call_operand.vmem [shape: bf16[128,512], index: 5, kind: input, shape index: {}]   ;;  %s12340_s6 = inlined_call_operand.vmem [shape: f32[1,512], index: 6, kind: input, shape index: {}]   ;;  %s12341_s7 = inlined_call_operand.vmem [shape: bf16[128,128], index: 7, kind: input, shape index: {}]   ;;  %s12342_s9 = inlined_call_operand.vmem [shape: bf16[128,128], index: 9, kind: input, shape index: {}]   ;;  %s12343_s14 = inlined_call_operand.<no memory space> [shape: f32[1,1], index: 14, kind: input, shape index: {}]   ;;  %s12344_s8 = inlined_call_operand.vmem [shape: f32[1,128], index: 8, kind: input, shape index: {}]   ;;  %s12345_s11 = inlined_call_operand.vmem [shape: f32[4,128], index: 11, kind: input, shape index: {}]   ;;  %s12346_s12 = inlined_call_operand.vmem [shape: f32[1,128], index: 12, kind: input, shape index: {}]   ;;  %s12347_s13 = inlined_call_operand.vmem [shape: f32[8,128], index: 13, kind: input, shape index: {}]   ;;  %s12348_s15 = inlined_call_operand.vmem [shape: bf16[128,128], index: 15, kind: input, shape index: {}]   ;;  %s12349_s17 = inlined_call_operand.vmem [shape: f32[128,384], index: 17, kind: input, shape index: {}]   ;;  %s12350_s10 = inlined_call_operand.vmem [shape: f32[1,128], index: 10, kind: input, shape index: {}]   ;;  %s12351_s16 = inlined_call_operand.vmem [shape: f32[1,128], index: 16, kind: input, shape index: {}]   ;;  %s12352_s18 = inlined_call_operand.vmem [shape: f32[1,384], index: 18, kind: input, shape index: {}]   ;;  %s12353_s19 = inlined_call_operand.vmem [shape: f32[16,256], index: 19, kind: output, shape index: {}]  }
   0x1   :  { %12363 = sst [smem:[#allocation8_spill]] %s12334_s1  ;;  %375 = vmatprep.mubr.bf16.mxu0 %v12359_v1  ;;  %488 = vmatprep.mubr.bf16.mxu1 %v12359_v1 }
   0x2   :  { %12364 = sst [smem:[#allocation9_spill]] %s12335_s0  ;;  %s12367_s20 = sld [smem:[#allocation8_spill]]  ;;  %8954 = vset.pattern.permute.xlu0 %v12359_v1  ;;  %8955 = vset.pattern.permute.xlu1 %v12359_v1 }
   0x3   :  { %12365 = sst [smem:[#allocation10_spill]] %s12336_s2  ;;  %s12369_s30 = sld [smem:[#allocation9_spill]] }
   0x4   :  { %12366 = sst [smem:[#allocation11_spill]] %s12337_s3  ;;  %s12368_s26 = sld [smem:[#allocation10_spill]] }
   0x5   :  { %s12370_s28 = sld [smem:[#allocation11_spill]] }
   0x8   :  { %v8956_v0 = vld [vmem:[%s12367_s20 + $0x4] ss:$16 sps:$4 sm:$0xff]   ;;  %v8958_v2 = vld [vmem:[%s12367_s20 + $0xc] ss:$16 sps:$4 sm:$0xff]   ;;  %v8960_v3 = vld [vmem:[%s12367_s20] ss:$16 sps:$4 sm:$0xff]  }
   0x9   :  { %343 = vmatprep.subr.bf16.mxu0 %v8956_v0  ;;  %v8961_v4 = vld [vmem:[%s12367_s20 + $0x8] ss:$16 sps:$4 sm:$0xff]   ;;  %456 = vmatprep.subr.bf16.mxu1 %v8958_v2  ;;  %v8962_v5 = vld [vmem:[%s12367_s20 + $0x24] ss:$16 sps:$4 sm:$0xff]   ;;  %v8964_v6 = vld [vmem:[%s12367_s20 + $0x2c] ss:$16 sps:$4 sm:$0xff]  }
   0xa   :  { %344 = vmatpush1.bf16.msra.mxu0 %v8960_v3  ;;  %457 = vmatpush1.bf16.msra.mxu1 %v8961_v4  ;;  %v8966_v7 = vld [vmem:[%s12367_s20 + $0x20] ss:$16 sps:$4 sm:$0xff]   ;;  %v8967_v8 = vld [vmem:[%s12367_s20 + $0x28] ss:$16 sps:$4 sm:$0xff]   ;;  %v8968_v9 = vld [vmem:[%s12367_s20 + $0x44] ss:$16 sps:$4 sm:$0xff]  }
   0xb   :  { %345 = vmatprep.subr.bf16.mxu0 %v8962_v5  ;;  %458 = vmatprep.subr.bf16.mxu1 %v8964_v6  ;;  %v8970_v10 = vld [vmem:[%s12367_s20 + $0x4c] ss:$16 sps:$4 sm:$0xff]   ;;  %v8972_v11 = vld [vmem:[%s12367_s20 + $0x40] ss:$16 sps:$4 sm:$0xff]   ;;  %v8973_v12 = vld [vmem:[%s12367_s20 + $0x48] ss:$16 sps:$4 sm:$0xff]  }
   0xc   :  { %v8974_v13 = vld [vmem:[%s12367_s20 + $0x64] ss:$16 sps:$4 sm:$0xff]   ;;  %v8976_v14 = vld [vmem:[%s12367_s20 + $0x6c] ss:$16 sps:$4 sm:$0xff]   ;;  %v8978_v15 = vld [vmem:[%s12367_s20 + $0x60] ss:$16 sps:$4 sm:$0xff]  }
   0xd   :  { %v8979_v16 = vld [vmem:[%s12367_s20 + $0x68] ss:$16 sps:$4 sm:$0xff]   ;;  %v8980_v17 = vld [vmem:[%s12367_s20 + $0x84] ss:$16 sps:$4 sm:$0xff]   ;;  %v8982_v18 = vld [vmem:[%s12367_s20 + $0x8c] ss:$16 sps:$4 sm:$0xff]  }
   0xe   :  { %346 = vmatpush1.bf16.msra.mxu0 %v8966_v7  ;;  %459 = vmatpush1.bf16.msra.mxu1 %v8967_v8  ;;  %v8984_v19 = vld [vmem:[%s12367_s20 + $0x80] ss:$16 sps:$4 sm:$0xff]   ;;  %v8985_v20 = vld [vmem:[%s12367_s20 + $0x88] ss:$16 sps:$4 sm:$0xff]   ;;  %v8986_v21 = vld [vmem:[%s12367_s20 + $0xa4] ss:$16 sps:$4 sm:$0xff]  }
   0xf   :  { %347 = vmatprep.subr.bf16.mxu0 %v8968_v9  ;;  %460 = vmatprep.subr.bf16.mxu1 %v8970_v10  ;;  %v8988_v22 = vld [vmem:[%s12367_s20 + $0xac] ss:$16 sps:$4 sm:$0xff]   ;;  %v8990_v23 = vld [vmem:[%s12367_s20 + $0xa0] ss:$16 sps:$4 sm:$0xff]   ;;  %v8991_v24 = vld [vmem:[%s12367_s20 + $0xa8] ss:$16 sps:$4 sm:$0xff]   ;;  %v12357_v10 = vlaneseq }
  0x10   :  { %v8992_v25 = vld [vmem:[%s12367_s20 + $0xc4] ss:$16 sps:$4 sm:$0xff]   ;;  %v8994_v26 = vld [vmem:[%s12367_s20 + $0xcc] ss:$16 sps:$4 sm:$0xff]   ;;  %v8996_v27 = vld [vmem:[%s12367_s20 + $0xc0] ss:$16 sps:$4 sm:$0xff]  }
  0x11   :  { %v8997_v28 = vld [vmem:[%s12367_s20 + $0xc8] ss:$16 sps:$4 sm:$0xff]   ;;  %v8998_v29 = vld [vmem:[%s12367_s20 + $0xe4] ss:$16 sps:$4 sm:$0xff]   ;;  %v9000_v30 = vld [vmem:[%s12367_s20 + $0xec] ss:$16 sps:$4 sm:$0xff]  }
  0x12   :  { %348 = vmatpush1.bf16.msra.mxu0 %v8972_v11  ;;  %461 = vmatpush1.bf16.msra.mxu1 %v8973_v12  ;;  %v9002_v31 = vld [vmem:[%s12367_s20 + $0xe0] ss:$16 sps:$4 sm:$0xff]   ;;  %v9003_v32 = vld [vmem:[%s12367_s20 + $0xe8] ss:$16 sps:$4 sm:$0xff]   ;;  %v10079_v33 = vld [vmem:[%s12368_s26 + $0x4] ss:$16 sps:$4 sm:$0xff]  }
  0x13   :  { %349 = vmatprep.subr.bf16.mxu0 %v8974_v13  ;;  %462 = vmatprep.subr.bf16.mxu1 %v8976_v14  ;;  %v10084_v34 = vld [vmem:[%s12368_s26 + $0xc] ss:$16 sps:$4 sm:$0xff]   ;;  %v9004_v35 = vld [vmem:[%s12369_s30] sm:$0xff]   ;;  %v10104_v38 = vld [vmem:[%s12368_s26 + $0x8] ss:$16 sps:$4 sm:$0xff]   ;;  %v10347_v11 = vshrl.u32 %v12357_v10, 7 }
  0x14   :  { %v10092_v36 = vld [vmem:[%s12368_s26] ss:$16 sps:$4 sm:$0xff]   ;;  %v10098_v37 = vld [vmem:[%s12368_s26 + $0x24] ss:$16 sps:$4 sm:$0xff]   ;;  %v10109_v39 = vld [vmem:[%s12368_s26 + $0x2c] ss:$16 sps:$4 sm:$0xff]  }
  0x15   :  { %v10116_v40 = vld [vmem:[%s12368_s26 + $0x20] ss:$16 sps:$4 sm:$0xff]   ;;  %v10123_v41 = vld [vmem:[%s12368_s26 + $0x44] ss:$16 sps:$4 sm:$0xff]   ;;  %v10129_v42 = vld [vmem:[%s12368_s26 + $0x28] ss:$16 sps:$4 sm:$0xff]  }
  0x16   :  { %350 = vmatpush1.bf16.msra.mxu0 %v8978_v15  ;;  %463 = vmatpush1.bf16.msra.mxu1 %v8979_v16  ;;  %v9008_v43 = vld [vmem:[%s12369_s30 + $0x8] sm:$0xff]   ;;  %v10139_v44 = vld [vmem:[%s12368_s26 + $0x40] ss:$16 sps:$4 sm:$0xff]   ;;  %v10145_v45 = vld [vmem:[%s12368_s26 + $0x64] ss:$16 sps:$4 sm:$0xff]   ;;  %v10350_v12 = vsub.s32 0, %v10347_v11 }
  0x17   :  { %351 = vmatprep.subr.bf16.mxu0 %v8980_v17  ;;  %464 = vmatprep.subr.bf16.mxu1 %v8982_v18  ;;  %v10150_v46 = vld [vmem:[%s12368_s26 + $0x4c] ss:$16 sps:$4 sm:$0xff]   ;;  %v10156_v47 = vld [vmem:[%s12368_s26 + $0x48] ss:$16 sps:$4 sm:$0xff]   ;;  %v10169_v49 = vld [vmem:[%s12368_s26 + $0x60] ss:$16 sps:$4 sm:$0xff]  }
  0x18   :  { %v10161_v48 = vld [vmem:[%s12368_s26 + $0x6c] ss:$16 sps:$4 sm:$0xff]   ;;  %v10175_v50 = vld [vmem:[%s12368_s26 + $0x84] ss:$16 sps:$4 sm:$0xff]   ;;  %v10182_v51 = vld [vmem:[%s12368_s26 + $0x68] ss:$16 sps:$4 sm:$0xff]  }
  0x19   :  { %v9015_v52 = vld [vmem:[%s12369_s30 + $0x10] sm:$0xff]   ;;  %v10197_v54 = vld [vmem:[%s12368_s26 + $0x8c] ss:$16 sps:$4 sm:$0xff]   ;;  %v10209_v56 = vld [vmem:[%s12368_s26 + $0x88] ss:$16 sps:$4 sm:$0xff]   ;;  %v10356_v14 = vsub.s32 1, %v10347_v11 }
  0x1a   :  { %352 = vmatpush1.bf16.msra.mxu0 %v8984_v19  ;;  %465 = vmatpush1.bf16.msra.mxu1 %v8985_v20  ;;  %v10191_v53 = vld [vmem:[%s12368_s26 + $0x80] ss:$16 sps:$4 sm:$0xff]   ;;  %v10203_v55 = vld [vmem:[%s12368_s26 + $0xa4] ss:$16 sps:$4 sm:$0xff]   ;;  %v10214_v57 = vld [vmem:[%s12368_s26 + $0xac] ss:$16 sps:$4 sm:$0xff]  }
  0x1b   :  { %353 = vmatprep.subr.bf16.mxu0 %v8986_v21  ;;  %466 = vmatprep.subr.bf16.mxu1 %v8988_v22  ;;  %v10219_v58 = vld [vmem:[%s12368_s26 + $0xa0] ss:$16 sps:$4 sm:$0xff]   ;;  %v10226_v59 = vld [vmem:[%s12368_s26 + $0xc4] ss:$16 sps:$4 sm:$0xff]   ;;  %v10231_v60 = vld [vmem:[%s12368_s26 + $0xa8] ss:$16 sps:$4 sm:$0xff]  }
  0x1c   :  { %v9022_v61 = vld [vmem:[%s12369_s30 + $0x18] sm:$0xff]   ;;  %v10243_v62 = vld [vmem:[%s12368_s26 + $0xc0] ss:$16 sps:$4 sm:$0xff]   ;;  %v10254_v0 = vld [vmem:[%s12368_s26 + $0xe4] ss:$16 sps:$4 sm:$0xff]   ;;  %v12358_v19 = vsub.s32 3, %v10347_v11 }
  0x1d   :  { %v10249_v63 = vld [vmem:[%s12368_s26 + $0xcc] ss:$16 sps:$4 sm:$0xff]   ;;  %v10259_v2 = vld [vmem:[%s12368_s26 + $0xc8] ss:$16 sps:$4 sm:$0xff]   ;;  %v10272_v4 = vld [vmem:[%s12368_s26 + $0xe0] ss:$16 sps:$4 sm:$0xff]  }
  0x1e   :  { %354 = vmatpush1.bf16.msra.mxu0 %v8990_v23  ;;  %467 = vmatpush1.bf16.msra.mxu1 %v8991_v24  ;;  %v10265_v3 = vld [vmem:[%s12368_s26 + $0xec] ss:$16 sps:$4 sm:$0xff]   ;;  %v10279_v5 = vld [vmem:[%s12368_s26 + $0xe8] ss:$16 sps:$4 sm:$0xff]   ;;  %v9029_v6 = vld [vmem:[%s12369_s30 + $0x20] sm:$0xff]  }
  0x1f   :  { %355 = vmatprep.subr.bf16.mxu0 %v8992_v25  ;;  %468 = vmatprep.subr.bf16.mxu1 %v8994_v26  ;;  %v9036_v7 = vld [vmem:[%s12369_s30 + $0x28] sm:$0xff]   ;;  %v9043_v8 = vld [vmem:[%s12369_s30 + $0x30] sm:$0xff]   ;;  %v9050_v9 = vld [vmem:[%s12369_s30 + $0x38] sm:$0xff]  }
  0x20   :  { %v113_v13 = vld [vmem:[%s12370_s28] sm:$0xf] }
  0x21   :  { %v10359_v15 = vrot.slane %v113_v13, %v10350_v12  ;;  %v10362_v16 = vrot.slane %v113_v13, %v10356_v14 }
  0x22   :  { %356 = vmatpush1.bf16.msra.mxu0 %v8996_v27  ;;  %469 = vmatpush1.bf16.msra.mxu1 %v8997_v28  ;;  %v10368_v27 = vsub.s32 2, %v10347_v11 }
  0x23   :  { %357 = vmatprep.subr.bf16.mxu0 %v8998_v29  ;;  %470 = vmatprep.subr.bf16.mxu1 %v9000_v30 }
  0x24   :  { %12371 = vst [vmem:[#allocation7_spill] sm:$0xff] %v10368_v27 }
  0x26   :  { %358 = vmatpush1.bf16.msra.mxu0 %v9002_v31  ;;  %471 = vmatpush1.bf16.msra.mxu1 %v9003_v32  ;;  %v10373_v32 = vrot.slane %v113_v13, %v12358_v19 }
  0x27   :  { %833 = vmatprep.subr.bf16.mxu0 %v10079_v33  ;;  %876 = vmatprep.subr.bf16.mxu1 %v10084_v34 }
  0x29   :  { %376 = vmatmul.mubr.bf16.vlgmr.msra.gmra.mrb[0].mxu0 %v9004_v35  ;;  %489 = vmatmul.mubr.bf16.vlgmr.msra.gmra.mrb[0].mxu1 %v9004_v35 }
  0x2a   :  { %834 = vmatpush1.bf16.msra.mxu0 %v10092_v36  ;;  %385 = vmatprep.mubr.bf16.mxu0 %v12359_v1 }
  0x2b   :  { %498 = vmatprep.mubr.bf16.mxu1 %v12359_v1  ;;  %835 = vmatprep.subr.bf16.mxu0 %v10098_v37 }
  0x2c   :  { %877 = vmatpush1.bf16.msra.mxu1 %v10104_v38 }
  0x2d   :  { %878 = vmatprep.subr.bf16.mxu1 %v10109_v39 }
  0x2e   :  { %836 = vmatpush1.bf16.msra.mxu0 %v10116_v40 }
  0x2f   :  { %837 = vmatprep.subr.bf16.mxu0 %v10123_v41 }
  0x30   :  { %879 = vmatpush1.bf16.msra.mxu1 %v10129_v42 }
  0x31   :  { %386 = vmatmul.mubr.bf16.gmra.mrb[4].mxu0 %v9008_v43  ;;  %499 = vmatmul.mubr.bf16.gmra.mrb[4].mxu1 %v9008_v43 }
  0x32   :  { %395 = vmatprep.mubr.bf16.mxu0 %v12359_v1  ;;  %508 = vmatprep.mubr.bf16.mxu1 %v12359_v1 }
  0x33   :  { %838 = vmatpush1.bf16.msra.mxu0 %v10139_v44  ;;  %880 = vmatprep.subr.bf16.mxu1 %v10150_v46 }
  0x34   :  { %839 = vmatprep.subr.bf16.mxu0 %v10145_v45  ;;  %881 = vmatpush1.bf16.msra.mxu1 %v10156_v47 }
  0x35   :  { %882 = vmatprep.subr.bf16.mxu1 %v10161_v48 }
  0x37   :  { %840 = vmatpush1.bf16.msra.mxu0 %v10169_v49 }
  0x38   :  { %841 = vmatprep.subr.bf16.mxu0 %v10175_v50  ;;  %883 = vmatpush1.bf16.msra.mxu1 %v10182_v51 }
  0x39   :  { %396 = vmatmul.mubr.bf16.gmra.mrb[8].mxu0 %v9015_v52  ;;  %509 = vmatmul.mubr.bf16.gmra.mrb[8].mxu1 %v9015_v52  ;;  %v10377_v52 = vrot.slane %v113_v13, %v10368_v27 }
  0x3a   :  { %405 = vmatprep.mubr.bf16.mxu0 %v12359_v1  ;;  %518 = vmatprep.mubr.bf16.mxu1 %v12359_v1 }
  0x3b   :  { %842 = vmatpush1.bf16.msra.mxu0 %v10191_v53  ;;  %884 = vmatprep.subr.bf16.mxu1 %v10197_v54 }
  0x3c   :  { %843 = vmatprep.subr.bf16.mxu0 %v10203_v55  ;;  %885 = vmatpush1.bf16.msra.mxu1 %v10209_v56 }
  0x3d   :  { %886 = vmatprep.subr.bf16.mxu1 %v10214_v57 }
  0x3f   :  { %844 = vmatpush1.bf16.msra.mxu0 %v10219_v58 }
  0x40   :  { %845 = vmatprep.subr.bf16.mxu0 %v10226_v59  ;;  %887 = vmatpush1.bf16.msra.mxu1 %v10231_v60 }
  0x41   :  { %406 = vmatmul.mubr.bf16.gmra.mrb[12].mxu0 %v9022_v61  ;;  %519 = vmatmul.mubr.bf16.gmra.mrb[12].mxu1 %v9022_v61 }
  0x42   :  { %415 = vmatprep.mubr.bf16.mxu0 %v12359_v1  ;;  %528 = vmatprep.mubr.bf16.mxu1 %v12359_v1 }
  0x43   :  { %846 = vmatpush1.bf16.msra.mxu0 %v10243_v62  ;;  %888 = vmatprep.subr.bf16.mxu1 %v10249_v63 }
  0x44   :  { %847 = vmatprep.subr.bf16.mxu0 %v10254_v0  ;;  %889 = vmatpush1.bf16.msra.mxu1 %v10259_v2 }
  0x45   :  { %890 = vmatprep.subr.bf16.mxu1 %v10265_v3 }
  0x47   :  { %848 = vmatpush1.bf16.msra.mxu0 %v10272_v4 }
  0x48   :  { %891 = vmatpush1.bf16.msra.mxu1 %v10279_v5  ;;  %1177 = vmatprep.subr.bf16.mxu0 %v10079_v33 }
  0x49   :  { %416 = vmatmul.mubr.bf16.gmra.mrb[16].mxu0 %v9029_v6  ;;  %529 = vmatmul.mubr.bf16.gmra.mrb[16].mxu1 %v9029_v6 }
  0x4a   :  { %425 = vmatprep.mubr.bf16.mxu0 %v12359_v1  ;;  %538 = vmatprep.mubr.bf16.mxu1 %v12359_v1 }
  0x4b   :  { %1220 = vmatprep.subr.bf16.mxu1 %v10084_v34 }
  0x51   :  { %426 = vmatmul.mubr.bf16.gmra.mrb[20].mxu0 %v9036_v7  ;;  %539 = vmatmul.mubr.bf16.gmra.mrb[20].mxu1 %v9036_v7 }
  0x52   :  { %435 = vmatprep.mubr.bf16.mxu0 %v12359_v1  ;;  %548 = vmatprep.mubr.bf16.mxu1 %v12359_v1 }
  0x59   :  { %436 = vmatmul.mubr.bf16.gmra.mrb[24].mxu0 %v9043_v8  ;;  %549 = vmatmul.mubr.bf16.gmra.mrb[24].mxu1 %v9043_v8 }
  0x5a   :  { %445 = vmatprep.mubr.bf16.mxu0 %v12359_v1  ;;  %558 = vmatprep.mubr.bf16.mxu1 %v12359_v1 }
  0x61   :  { %446 = vmatmul.mubr.bf16.gmra.mrb[28].mxu0 %v9050_v9  ;;  %559 = vmatmul.mubr.bf16.gmra.mrb[28].mxu1 %v9050_v9 }
  0x62   :  { %865 = vmatprep.mubr.bf16.mxu0 %v12359_v1  ;;  %908 = vmatprep.mubr.bf16.mxu1 %v12359_v1 }
  0x69   :  { %866 = vmatmul.mubr.bf16.vlgmr.msra.gmra.mrb[0].mxu0 %v12359_v1  ;;  %909 = vmatmul.mubr.bf16.vlgmr.msra.gmra.mrb[0].mxu1 %v12359_v1 }
  0x6a   :  { %1178 = vmatpush1.bf16.msra.mxu0 %v10092_v36  ;;  %1221 = vmatpush1.bf16.msra.mxu1 %v10104_v38 }
  0x6b   :  { %1179 = vmatprep.subr.bf16.mxu0 %v10098_v37  ;;  %1222 = vmatprep.subr.bf16.mxu1 %v10109_v39 }
  0x6c   :  { %1209 = vmatprep.mubr.bf16.mxu0 %v12359_v1  ;;  %1252 = vmatprep.mubr.bf16.mxu1 %v12359_v1 }
  0x6e   :  { %1180 = vmatpush1.bf16.msra.mxu0 %v10116_v40  ;;  %1223 = vmatpush1.bf16.msra.mxu1 %v10129_v42 }
  0x6f   :  { %1181 = vmatprep.subr.bf16.mxu0 %v10123_v41  ;;  %1224 = vmatprep.subr.bf16.mxu1 %v10150_v46 }
  0x72   :  { %1182 = vmatpush1.bf16.msra.mxu0 %v10139_v44  ;;  %1225 = vmatpush1.bf16.msra.mxu1 %v10156_v47 }
  0x73   :  { %1183 = vmatprep.subr.bf16.mxu0 %v10145_v45  ;;  %1226 = vmatprep.subr.bf16.mxu1 %v10161_v48 }
  0x76   :  { %1184 = vmatpush1.bf16.msra.mxu0 %v10169_v49  ;;  %1227 = vmatpush1.bf16.msra.mxu1 %v10182_v51 }
  0x77   :  { %1185 = vmatprep.subr.bf16.mxu0 %v10175_v50  ;;  %1228 = vmatprep.subr.bf16.mxu1 %v10197_v54 }
  0x7a   :  { %1186 = vmatpush1.bf16.msra.mxu0 %v10191_v53  ;;  %1229 = vmatpush1.bf16.msra.mxu1 %v10209_v56 }
  0x7b   :  { %1187 = vmatprep.subr.bf16.mxu0 %v10203_v55  ;;  %1230 = vmatprep.subr.bf16.mxu1 %v10214_v57 }
  0x7e   :  { %1188 = vmatpush1.bf16.msra.mxu0 %v10219_v58  ;;  %1231 = vmatpush1.bf16.msra.mxu1 %v10231_v60 }
  0x7f   :  { %1189 = vmatprep.subr.bf16.mxu0 %v10226_v59  ;;  %1232 = vmatprep.subr.bf16.mxu1 %v10249_v63 }
  0x82   :  { %1190 = vmatpush1.bf16.msra.mxu0 %v10243_v62  ;;  %1233 = vmatpush1.bf16.msra.mxu1 %v10259_v2 }
  0x83   :  { %1191 = vmatprep.subr.bf16.mxu0 %v10254_v0  ;;  %1234 = vmatprep.subr.bf16.mxu1 %v10265_v3 }
  0x86   :  { %1192 = vmatpush1.bf16.msra.mxu0 %v10272_v4  ;;  %1235 = vmatpush1.bf16.msra.mxu1 %v10279_v5 }
  0x87   :  { %1521 = vmatprep.subr.bf16.mxu0 %v10079_v33  ;;  %1564 = vmatprep.subr.bf16.mxu1 %v10084_v34 }
 0x13c   :  { %v867_v17 = vpop.f32.mrb[0].mxu0  ;;  %v910_v18 = vpop.f32.mrb[0].mxu1 }
 0x13d   :  { %v8695_v20 = vadd.f32 %v867_v17, %v10359_v15  ;;  %v869_v21 = vpop.f32.mrb[1].mxu0  ;;  %v912_v22 = vpop.f32.mrb[1].mxu1  ;;  %v8727_v6 = vadd.f32 %v910_v18, %v10377_v52 }
 0x13e   :  { %v8696_v23 = vadd.f32 %v869_v21, %v10362_v16  ;;  %v871_v24 = vpop.f32.mrb[2].mxu0  ;;  %v914_v25 = vpop.f32.mrb[2].mxu1  ;;  %v8728_v61 = vadd.f32 %v912_v22, %v10373_v32 }
 0x13f   :  { %v7805_v26 = vmul.f32 -1.442695, %v8695_v20  ;;  %v8697_v28 = vadd.f32 %v871_v24, %v10359_v15  ;;  %v873_v29 = vpop.f32.mrb[3].mxu0  ;;  %v916_v30 = vpop.f32.mrb[3].mxu1  ;;  %v8729_v9 = vadd.f32 %v914_v25, %v10377_v52 }
 0x140   :  { %v7807_v31 = vmul.f32 -1.442695, %v8696_v23  ;;  %v8698_v33 = vadd.f32 %v873_v29, %v10362_v16  ;;  %v7809_v7 = vmul.f32 -1.442695, %v8728_v61  ;;  %v8730_v8 = vadd.f32 %v916_v30, %v10373_v32 }
 0x141   :  { %9285 = vpow2.f32 %v7805_v26  ;;  %v7806_v35 = vmul.f32 -1.442695, %v8697_v28 }
 0x142   :  { %9287 = vpow2.f32 %v7807_v31  ;;  %v7808_v43 = vmul.f32 -1.442695, %v8698_v33  ;;  %v7810_v23 = vmul.f32 -1.442695, %v8730_v8 }
 0x143   :  { %9289 = vpow2.f32 %v7806_v35 }
 0x144   :  { %9291 = vpow2.f32 %v7808_v43 }
 0x145   :  { %9293 = vtanh.f32 %v8727_v6 }
 0x146   :  { %9295 = vpow2.f32 %v7809_v7 }
 0x147   :  { %9297 = vtanh.f32 %v8729_v9 }
 0x14b   :  { %v9286_v17 = vpop.eup %9285 }
 0x14c   :  { %v9288_v20 = vpop.eup %9287  ;;  %v933_v21 = vadd.f32 1.0, %v9286_v17 }
 0x14d   :  { %v945_v24 = vadd.f32 1.0, %v9288_v20  ;;  %v9290_v13 = vpop.eup %9289 }
 0x14e   :  { %9299 = vrcp.f32 %v933_v21  ;;  %v934_v22 = vadd.f32 1.0, %v9290_v13  ;;  %v9292_v26 = vpop.eup %9291 }
 0x14f   :  { %9301 = vrcp.f32 %v945_v24  ;;  %v946_v18 = vadd.f32 1.0, %v9292_v26  ;;  %v9294_v28 = vpop.eup %9293 }
 0x150   :  { %9303 = vpow2.f32 %v7810_v23  ;;  %v9296_v29 = vpop.eup %9295 }
 0x151   :  { %9305 = vrcp.f32 %v934_v22  ;;  %v9298_v25 = vpop.eup %9297  ;;  %v959_v6 = vadd.f32 1.0, %v9296_v29 }
 0x152   :  { %9307 = vrcp.f32 %v946_v18 }
 0x153   :  { %9309 = vrcp.f32 %v959_v6 }
 0x158   :  { %v9300_v30 = vpop.eup %9299 }
 0x159   :  { %v9302_v31 = vpop.eup %9301  ;;  %v967_v33 = vmul.f32 %v9300_v30, %v9294_v28 }
 0x15a   :  { %v9304_v35 = vpop.eup %9303  ;;  %v965_v43 = vmul.f32 0.0, %v9302_v31 }
 0x15b   :  { %v9306_v61 = vpop.eup %9305  ;;  %v960_v17 = vadd.f32 1.0, %v9304_v35 }
 0x15c   :  { %v10383_v7 = vadd.f32 %v967_v33, %v965_v43  ;;  %v968_v8 = vmul.f32 %v9306_v61, %v9298_v25  ;;  %v9308_v9 = vpop.eup %9307 }
 0x15d   :  { %v966_v20 = vmul.f32 0.0, %v9308_v9  ;;  %v9310_v23 = vpop.eup %9309 }
 0x15e   :  { %9311 = vtanh.f32 %v10383_v7 }
 0x15f   :  { %v10386_v21 = vadd.f32 %v968_v8, %v966_v20  ;;  %9313 = vrcp.f32 %v960_v17 }
 0x161   :  { %9315 = vtanh.f32 %v10386_v21 }
 0x168   :  { %v9312_v24 = vpop.eup %9311 }
 0x169   :  { %v9314_v13 = vpop.eup %9313  ;;  %v973_v26 = vmul.f32 %v9312_v24, %v9310_v23 }
 0x16b   :  { %v9316_v22 = vpop.eup %9315 }
 0x16c   :  { %v974_v18 = vmul.f32 %v9316_v22, %v9314_v13 }
 0x16e   :  { %v10389_v28 = vpack.c.bf16 %v974_v18, %v973_v26 }
 0x170   :  { %1210 = vmatmul.mubr.bf16.vlgmr.msra.gmra.mrb[4].mxu0 %v10389_v28  ;;  %1253 = vmatmul.mubr.bf16.vlgmr.msra.gmra.mrb[4].mxu1 %v10389_v28 }
 0x171   :  { %1522 = vmatpush1.bf16.msra.mxu0 %v10092_v36  ;;  %1565 = vmatpush1.bf16.msra.mxu1 %v10104_v38 }
 0x172   :  { %1523 = vmatprep.subr.bf16.mxu0 %v10098_v37  ;;  %1566 = vmatprep.subr.bf16.mxu1 %v10109_v39 }
 0x173   :  { %1553 = vmatprep.mubr.bf16.mxu0 %v12359_v1  ;;  %1596 = vmatprep.mubr.bf16.mxu1 %v12359_v1 }
 0x175   :  { %1524 = vmatpush1.bf16.msra.mxu0 %v10116_v40  ;;  %1567 = vmatpush1.bf16.msra.mxu1 %v10129_v42 }
 0x176   :  { %1525 = vmatprep.subr.bf16.mxu0 %v10123_v41  ;;  %1568 = vmatprep.subr.bf16.mxu1 %v10150_v46 }
 0x179   :  { %1526 = vmatpush1.bf16.msra.mxu0 %v10139_v44  ;;  %1569 = vmatpush1.bf16.msra.mxu1 %v10156_v47 }
 0x17a   :  { %1527 = vmatprep.subr.bf16.mxu0 %v10145_v45  ;;  %1570 = vmatprep.subr.bf16.mxu1 %v10161_v48 }
 0x17d   :  { %1528 = vmatpush1.bf16.msra.mxu0 %v10169_v49  ;;  %1571 = vmatpush1.bf16.msra.mxu1 %v10182_v51 }
 0x17e   :  { %1529 = vmatprep.subr.bf16.mxu0 %v10175_v50  ;;  %1572 = vmatprep.subr.bf16.mxu1 %v10197_v54 }
 0x181   :  { %1530 = vmatpush1.bf16.msra.mxu0 %v10191_v53  ;;  %1573 = vmatpush1.bf16.msra.mxu1 %v10209_v56 }
 0x182   :  { %1531 = vmatprep.subr.bf16.mxu0 %v10203_v55  ;;  %1574 = vmatprep.subr.bf16.mxu1 %v10214_v57 }
 0x185   :  { %1532 = vmatpush1.bf16.msra.mxu0 %v10219_v58  ;;  %1575 = vmatpush1.bf16.msra.mxu1 %v10231_v60 }
 0x186   :  { %1533 = vmatprep.subr.bf16.mxu0 %v10226_v59  ;;  %1576 = vmatprep.subr.bf16.mxu1 %v10249_v63 }
 0x189   :  { %1534 = vmatpush1.bf16.msra.mxu0 %v10243_v62  ;;  %1577 = vmatpush1.bf16.msra.mxu1 %v10259_v2 }
 0x18a   :  { %1535 = vmatprep.subr.bf16.mxu0 %v10254_v0  ;;  %1578 = vmatprep.subr.bf16.mxu1 %v10265_v3 }
 0x18d   :  { %1536 = vmatpush1.bf16.msra.mxu0 %v10272_v4  ;;  %1579 = vmatpush1.bf16.msra.mxu1 %v10279_v5 }
 0x18e   :  { %1908 = vmatprep.subr.bf16.mxu1 %v10084_v34 }
 0x243   :  { %v1211_v36 = vpop.f32.mrb[4].mxu0  ;;  %v1254_v37 = vpop.f32.mrb[4].mxu1 }
 0x244   :  { %v8699_v40 = vadd.f32 %v1211_v36, %v10359_v15  ;;  %v1213_v29 = vpop.f32.mrb[5].mxu0  ;;  %v1256_v25 = vpop.f32.mrb[5].mxu1  ;;  %v8731_v23 = vadd.f32 %v1254_v37, %v10377_v52 }
 0x245   :  { %v8700_v30 = vadd.f32 %v1213_v29, %v10362_v16  ;;  %v1215_v31 = vpop.f32.mrb[6].mxu0  ;;  %v1258_v33 = vpop.f32.mrb[6].mxu1  ;;  %v8732_v20 = vadd.f32 %v1256_v25, %v10373_v32 }
 0x246   :  { %v7843_v35 = vmul.f32 -1.442695, %v8699_v40  ;;  %v8701_v43 = vadd.f32 %v1215_v31, %v10359_v15  ;;  %v1217_v61 = vpop.f32.mrb[7].mxu0  ;;  %v1260_v6 = vpop.f32.mrb[7].mxu1  ;;  %v8733_v22 = vadd.f32 %v1258_v33, %v10377_v52 }
 0x247   :  { %v7845_v8 = vmul.f32 -1.442695, %v8700_v30  ;;  %v8702_v9 = vadd.f32 %v1217_v61, %v10362_v16  ;;  %v7847_v24 = vmul.f32 -1.442695, %v8732_v20  ;;  %v8734_v13 = vadd.f32 %v1260_v6, %v10373_v32 }
 0x248   :  { %9317 = vpow2.f32 %v7843_v35  ;;  %v7844_v34 = vmul.f32 -1.442695, %v8701_v43 }
 0x249   :  { %9319 = vpow2.f32 %v7845_v8  ;;  %v7846_v17 = vmul.f32 -1.442695, %v8702_v9  ;;  %v7848_v40 = vmul.f32 -1.442695, %v8734_v13 }
 0x24a   :  { %9321 = vpow2.f32 %v7844_v34 }
 0x24b   :  { %9323 = vpow2.f32 %v7846_v17 }
 0x24c   :  { %9325 = vtanh.f32 %v8731_v23 }
 0x24d   :  { %9327 = vpow2.f32 %v7847_v24 }
 0x24e   :  { %9329 = vtanh.f32 %v8733_v22 }
 0x252   :  { %v9318_v26 = vpop.eup %9317 }
 0x253   :  { %v9320_v18 = vpop.eup %9319  ;;  %v1277_v36 = vadd.f32 1.0, %v9318_v26 }
 0x254   :  { %v1289_v29 = vadd.f32 1.0, %v9320_v18  ;;  %v9322_v30 = vpop.eup %9321 }
 0x255   :  { %9331 = vrcp.f32 %v1277_v36  ;;  %v1278_v25 = vadd.f32 1.0, %v9322_v30  ;;  %v9324_v31 = vpop.eup %9323 }
 0x256   :  { %9333 = vrcp.f32 %v1289_v29  ;;  %v1290_v37 = vadd.f32 1.0, %v9324_v31  ;;  %v9326_v35 = vpop.eup %9325 }
 0x257   :  { %9335 = vpow2.f32 %v7848_v40  ;;  %v9328_v43 = vpop.eup %9327 }
 0x258   :  { %9337 = vrcp.f32 %v1278_v25  ;;  %v9330_v33 = vpop.eup %9329  ;;  %v1303_v20 = vadd.f32 1.0, %v9328_v43 }
 0x259   :  { %9339 = vrcp.f32 %v1290_v37 }
 0x25a   :  { %9341 = vrcp.f32 %v1303_v20 }
 0x25f   :  { %v9332_v61 = vpop.eup %9331 }
 0x260   :  { %v9334_v6 = vpop.eup %9333  ;;  %v1311_v8 = vmul.f32 %v9332_v61, %v9326_v35 }
 0x261   :  { %v9336_v9 = vpop.eup %9335  ;;  %v1309_v34 = vmul.f32 %v9334_v6, %v10383_v7 }
 0x262   :  { %v9338_v17 = vpop.eup %9337  ;;  %v1304_v22 = vadd.f32 1.0, %v9336_v9 }
 0x263   :  { %v10435_v23 = vadd.f32 %v1311_v8, %v1309_v34  ;;  %v1312_v24 = vmul.f32 %v9338_v17, %v9330_v33  ;;  %v9340_v13 = vpop.eup %9339 }
 0x264   :  { %v1310_v26 = vmul.f32 %v9340_v13, %v10386_v21  ;;  %v9342_v36 = vpop.eup %9341 }
 0x265   :  { %9343 = vtanh.f32 %v10435_v23 }
 0x266   :  { %v10439_v18 = vadd.f32 %v1312_v24, %v1310_v26  ;;  %9345 = vrcp.f32 %v1304_v22 }
 0x268   :  { %9347 = vtanh.f32 %v10439_v18 }
 0x26f   :  { %v9344_v40 = vpop.eup %9343 }
 0x270   :  { %v9346_v7 = vpop.eup %9345  ;;  %v1317_v30 = vmul.f32 %v9344_v40, %v9342_v36 }
 0x272   :  { %v9348_v29 = vpop.eup %9347 }
 0x273   :  { %v1318_v25 = vmul.f32 %v9348_v29, %v9346_v7 }
 0x275   :  { %v10442_v31 = vpack.c.bf16 %v1318_v25, %v1317_v30 }
 0x277   :  { %1554 = vmatmul.mubr.bf16.vlgmr.msra.gmra.mrb[8].mxu0 %v10442_v31  ;;  %1597 = vmatmul.mubr.bf16.vlgmr.msra.gmra.mrb[8].mxu1 %v10442_v31 }
 0x278   :  { %1909 = vmatpush1.bf16.msra.mxu1 %v10104_v38  ;;  %1897 = vmatprep.mubr.bf16.mxu0 %v12359_v1  ;;  %v10466_v38 = vld [vmem:[%s12368_s26 + $0x4] ss:$16 sps:$4 sm:$0xff]  }
 0x279   :  { %1910 = vmatprep.subr.bf16.mxu1 %v10109_v39  ;;  %1940 = vmatprep.mubr.bf16.mxu1 %v12359_v1  ;;  %v10471_v39 = vld [vmem:[%s12368_s26] ss:$16 sps:$4 sm:$0xff]  }
 0x27a   :  { %1865 = vmatprep.subr.bf16.mxu0 %v10466_v38 }
 0x27b   :  { %1866 = vmatpush1.bf16.msra.mxu0 %v10471_v39 }
 0x27c   :  { %1911 = vmatpush1.bf16.msra.mxu1 %v10129_v42  ;;  %v10478_v42 = vld [vmem:[%s12368_s26 + $0x24] ss:$16 sps:$4 sm:$0xff]  }
 0x27d   :  { %1912 = vmatprep.subr.bf16.mxu1 %v10150_v46  ;;  %v10483_v46 = vld [vmem:[%s12368_s26 + $0x20] ss:$16 sps:$4 sm:$0xff]   ;;  %1867 = vmatprep.subr.bf16.mxu0 %v10478_v42 }
 0x27f   :  { %1868 = vmatpush1.bf16.msra.mxu0 %v10483_v46 }
 0x280   :  { %1913 = vmatpush1.bf16.msra.mxu1 %v10156_v47  ;;  %1869 = vmatprep.subr.bf16.mxu0 %v10123_v41 }
 0x281   :  { %1914 = vmatprep.subr.bf16.mxu1 %v10161_v48 }
 0x283   :  { %1870 = vmatpush1.bf16.msra.mxu0 %v10139_v44 }
 0x284   :  { %1915 = vmatpush1.bf16.msra.mxu1 %v10182_v51  ;;  %1871 = vmatprep.subr.bf16.mxu0 %v10145_v45 }
 0x285   :  { %1916 = vmatprep.subr.bf16.mxu1 %v10197_v54 }
 0x287   :  { %1872 = vmatpush1.bf16.msra.mxu0 %v10169_v49 }
 0x288   :  { %1917 = vmatpush1.bf16.msra.mxu1 %v10209_v56  ;;  %1873 = vmatprep.subr.bf16.mxu0 %v10175_v50 }
 0x289   :  { %1918 = vmatprep.subr.bf16.mxu1 %v10214_v57 }
 0x28b   :  { %1874 = vmatpush1.bf16.msra.mxu0 %v10191_v53 }
 0x28c   :  { %1919 = vmatpush1.bf16.msra.mxu1 %v10231_v60  ;;  %1875 = vmatprep.subr.bf16.mxu0 %v10203_v55 }
 0x28d   :  { %1920 = vmatprep.subr.bf16.mxu1 %v10249_v63 }
 0x28f   :  { %1876 = vmatpush1.bf16.msra.mxu0 %v10219_v58 }
 0x290   :  { %1921 = vmatpush1.bf16.msra.mxu1 %v10259_v2  ;;  %1877 = vmatprep.subr.bf16.mxu0 %v10226_v59 }
 0x291   :  { %1922 = vmatprep.subr.bf16.mxu1 %v10265_v3 }
 0x293   :  { %1878 = vmatpush1.bf16.msra.mxu0 %v10243_v62 }
 0x294   :  { %1923 = vmatpush1.bf16.msra.mxu1 %v10279_v5  ;;  %1879 = vmatprep.subr.bf16.mxu0 %v10254_v0 }
 0x297   :  { %1880 = vmatpush1.bf16.msra.mxu0 %v10272_v4 }
 0x298   :  { %2209 = vmatprep.subr.bf16.mxu0 %v10466_v38 }
 0x34a   :  { %v1555_v41 = vpop.f32.mrb[8].mxu0  ;;  %v1598_v44 = vpop.f32.mrb[8].mxu1 }
 0x34b   :  { %v8703_v45 = vadd.f32 %v1555_v41, %v10359_v15  ;;  %v1557_v47 = vpop.f32.mrb[9].mxu0  ;;  %v1600_v48 = vpop.f32.mrb[9].mxu1  ;;  %v8735_v63 = vadd.f32 %v1598_v44, %v10377_v52 }
 0x34c   :  { %v8704_v49 = vadd.f32 %v1557_v47, %v10362_v16  ;;  %v1559_v50 = vpop.f32.mrb[10].mxu0  ;;  %v1602_v51 = vpop.f32.mrb[10].mxu1  ;;  %v8736_v62 = vadd.f32 %v1600_v48, %v10373_v32 }
 0x34d   :  { %v7881_v53 = vmul.f32 -1.442695, %v8703_v45  ;;  %v8705_v54 = vadd.f32 %v1559_v50, %v10359_v15  ;;  %v1561_v55 = vpop.f32.mrb[11].mxu0  ;;  %v1604_v56 = vpop.f32.mrb[11].mxu1  ;;  %v8737_v3 = vadd.f32 %v1602_v51, %v10377_v52  ;;  %v10533_v51 = vld [vmem:[%s12368_s26 + $0x8] ss:$16 sps:$4 sm:$0xff]  }
 0x34e   :  { %v7883_v57 = vmul.f32 -1.442695, %v8704_v49  ;;  %v8706_v58 = vadd.f32 %v1561_v55, %v10362_v16  ;;  %v7885_v0 = vmul.f32 -1.442695, %v8736_v62  ;;  %v8738_v2 = vadd.f32 %v1604_v56, %v10373_v32  ;;  %v10552_v55 = vld [vmem:[%s12368_s26 + $0x44] ss:$16 sps:$4 sm:$0xff]  }
 0x34f   :  { %9349 = vpow2.f32 %v7881_v53  ;;  %v7882_v59 = vmul.f32 -1.442695, %v8705_v54  ;;  %v10540_v53 = vld [vmem:[%s12368_s26 + $0x2c] ss:$16 sps:$4 sm:$0xff]   ;;  %v10545_v54 = vld [vmem:[%s12368_s26 + $0x28] ss:$16 sps:$4 sm:$0xff]  }
 0x350   :  { %9351 = vpow2.f32 %v7883_v57  ;;  %v7884_v60 = vmul.f32 -1.442695, %v8706_v58  ;;  %v7886_v37 = vmul.f32 -1.442695, %v8738_v2  ;;  %v10557_v56 = vld [vmem:[%s12368_s26 + $0x4c] ss:$16 sps:$4 sm:$0xff]  }
 0x351   :  { %9353 = vpow2.f32 %v7882_v59  ;;  %v10562_v57 = vld [vmem:[%s12368_s26 + $0x40] ss:$16 sps:$4 sm:$0xff]   ;;  %v10567_v58 = vld [vmem:[%s12368_s26 + $0x48] ss:$16 sps:$4 sm:$0xff]   ;;  %v10576_v59 = vld [vmem:[%s12368_s26 + $0x64] ss:$16 sps:$4 sm:$0xff]  }
 0x352   :  { %9355 = vpow2.f32 %v7884_v60  ;;  %v10581_v60 = vld [vmem:[%s12368_s26 + $0x6c] ss:$16 sps:$4 sm:$0xff]   ;;  %v10586_v62 = vld [vmem:[%s12368_s26 + $0x60] ss:$16 sps:$4 sm:$0xff]  }
 0x353   :  { %9357 = vtanh.f32 %v8735_v63  ;;  %v10591_v63 = vld [vmem:[%s12368_s26 + $0x68] ss:$16 sps:$4 sm:$0xff]   ;;  %v10605_v2 = vld [vmem:[%s12368_s26 + $0x8c] ss:$16 sps:$4 sm:$0xff]  }
 0x354   :  { %9359 = vpow2.f32 %v7885_v0  ;;  %v10600_v0 = vld [vmem:[%s12368_s26 + $0x84] ss:$16 sps:$4 sm:$0xff]  }
 0x355   :  { %9361 = vtanh.f32 %v8737_v3  ;;  %v10610_v3 = vld [vmem:[%s12368_s26 + $0x80] ss:$16 sps:$4 sm:$0xff]  }
 0x359   :  { %v9350_v4 = vpop.eup %9349 }
 0x35a   :  { %v9352_v5 = vpop.eup %9351  ;;  %v1621_v21 = vadd.f32 1.0, %v9350_v4  ;;  %v10615_v4 = vld [vmem:[%s12368_s26 + $0x88] ss:$16 sps:$4 sm:$0xff]  }
 0x35b   :  { %v1633_v35 = vadd.f32 1.0, %v9352_v5  ;;  %v9354_v43 = vpop.eup %9353  ;;  %v10622_v5 = vld [vmem:[%s12368_s26 + $0xa4] ss:$16 sps:$4 sm:$0xff]  }
 0x35c   :  { %9363 = vrcp.f32 %v1621_v21  ;;  %v1622_v33 = vadd.f32 1.0, %v9354_v43  ;;  %v9356_v61 = vpop.eup %9355  ;;  %v10627_v21 = vld [vmem:[%s12368_s26 + $0xac] ss:$16 sps:$4 sm:$0xff]   ;;  %v10646_v43 = vld [vmem:[%s12368_s26 + $0xc4] ss:$16 sps:$4 sm:$0xff]  }
 0x35d   :  { %9365 = vrcp.f32 %v1633_v35  ;;  %v1634_v6 = vadd.f32 1.0, %v9356_v61  ;;  %v9358_v8 = vpop.eup %9357  ;;  %v10639_v35 = vld [vmem:[%s12368_s26 + $0xa8] ss:$16 sps:$4 sm:$0xff]   ;;  %v10658_v61 = vld [vmem:[%s12368_s26 + $0xc0] ss:$16 sps:$4 sm:$0xff]  }
 0x35e   :  { %9367 = vpow2.f32 %v7886_v37  ;;  %v9360_v9 = vpop.eup %9359  ;;  %v10634_v37 = vld [vmem:[%s12368_s26 + $0xa0] ss:$16 sps:$4 sm:$0xff]  }
 0x35f   :  { %9369 = vrcp.f32 %v1622_v33  ;;  %v9362_v34 = vpop.eup %9361  ;;  %v1647_v36 = vadd.f32 1.0, %v9360_v9  ;;  %v10651_v33 = vld [vmem:[%s12368_s26 + $0xcc] ss:$16 sps:$4 sm:$0xff]  }
 0x360   :  { %9371 = vrcp.f32 %v1634_v6  ;;  %v10663_v6 = vld [vmem:[%s12368_s26 + $0xc8] ss:$16 sps:$4 sm:$0xff]   ;;  %v10675_v9 = vld [vmem:[%s12368_s26 + $0xec] ss:$16 sps:$4 sm:$0xff]  }
 0x361   :  { %9373 = vrcp.f32 %v1647_v36 }
 0x366   :  { %v9364_v17 = vpop.eup %9363 }
 0x367   :  { %v9366_v20 = vpop.eup %9365  ;;  %v1655_v24 = vmul.f32 %v9364_v17, %v9358_v8  ;;  %v10670_v8 = vld [vmem:[%s12368_s26 + $0xe4] ss:$16 sps:$4 sm:$0xff]   ;;  %v10687_v17 = vld [vmem:[%s12368_s26 + $0xe8] ss:$16 sps:$4 sm:$0xff]  }
 0x368   :  { %v9368_v13 = vpop.eup %9367  ;;  %v1653_v22 = vmul.f32 %v9366_v20, %v10435_v23 }
 0x369   :  { %v9370_v26 = vpop.eup %9369  ;;  %v1648_v30 = vadd.f32 1.0, %v9368_v13 }
 0x36a   :  { %v10509_v40 = vadd.f32 %v1655_v24, %v1653_v22  ;;  %v1656_v7 = vmul.f32 %v9370_v26, %v9362_v34  ;;  %v9372_v29 = vpop.eup %9371  ;;  %v10682_v34 = vld [vmem:[%s12368_s26 + $0xe0] ss:$16 sps:$4 sm:$0xff]  }
 0x36b   :  { %v1654_v25 = vmul.f32 %v9372_v29, %v10439_v18  ;;  %v9374_v44 = vpop.eup %9373  ;;  %v10528_v18 = vld [vmem:[%s12368_s26 + $0xc] ss:$16 sps:$4 sm:$0xff]  }
 0x36c   :  { %9375 = vtanh.f32 %v10509_v40  ;;  %2252 = vmatprep.subr.bf16.mxu1 %v10528_v18 }
 0x36d   :  { %v10513_v41 = vadd.f32 %v1656_v7, %v1654_v25  ;;  %9377 = vrcp.f32 %v1648_v30 }
 0x36f   :  { %9379 = vtanh.f32 %v10513_v41 }
 0x376   :  { %v9376_v45 = vpop.eup %9375 }
 0x377   :  { %v9378_v23 = vpop.eup %9377  ;;  %v1661_v48 = vmul.f32 %v9376_v45, %v9374_v44 }
 0x379   :  { %v9380_v47 = vpop.eup %9379 }
 0x37a   :  { %v1662_v49 = vmul.f32 %v9380_v47, %v9378_v23 }
 0x37c   :  { %v10516_v50 = vpack.c.bf16 %v1662_v49, %v1661_v48 }
 0x37e   :  { %1898 = vmatmul.mubr.bf16.vlgmr.msra.gmra.mrb[12].mxu0 %v10516_v50  ;;  %1941 = vmatmul.mubr.bf16.vlgmr.msra.gmra.mrb[12].mxu1 %v10516_v50 }
 0x37f   :  { %2210 = vmatpush1.bf16.msra.mxu0 %v10471_v39  ;;  %2241 = vmatprep.mubr.bf16.mxu0 %v12359_v1 }
 0x380   :  { %2211 = vmatprep.subr.bf16.mxu0 %v10478_v42  ;;  %2284 = vmatprep.mubr.bf16.mxu1 %v12359_v1 }
 0x381   :  { %2253 = vmatpush1.bf16.msra.mxu1 %v10533_v51 }
 0x382   :  { %2254 = vmatprep.subr.bf16.mxu1 %v10540_v53 }
 0x383   :  { %2212 = vmatpush1.bf16.msra.mxu0 %v10483_v46 }
 0x384   :  { %2213 = vmatprep.subr.bf16.mxu0 %v10552_v55 }
 0x385   :  { %2255 = vmatpush1.bf16.msra.mxu1 %v10545_v54 }
 0x386   :  { %2256 = vmatprep.subr.bf16.mxu1 %v10557_v56 }
 0x387   :  { %2214 = vmatpush1.bf16.msra.mxu0 %v10562_v57 }
 0x388   :  { %2215 = vmatprep.subr.bf16.mxu0 %v10576_v59 }
 0x389   :  { %2257 = vmatpush1.bf16.msra.mxu1 %v10567_v58 }
 0x38a   :  { %2258 = vmatprep.subr.bf16.mxu1 %v10581_v60 }
 0x38b   :  { %2216 = vmatpush1.bf16.msra.mxu0 %v10586_v62 }
 0x38c   :  { %2217 = vmatprep.subr.bf16.mxu0 %v10600_v0 }
 0x38d   :  { %2259 = vmatpush1.bf16.msra.mxu1 %v10591_v63 }
 0x38e   :  { %2260 = vmatprep.subr.bf16.mxu1 %v10605_v2 }
 0x38f   :  { %2218 = vmatpush1.bf16.msra.mxu0 %v10610_v3 }
 0x390   :  { %2219 = vmatprep.subr.bf16.mxu0 %v10622_v5 }
 0x391   :  { %2261 = vmatpush1.bf16.msra.mxu1 %v10615_v4 }
 0x392   :  { %2262 = vmatprep.subr.bf16.mxu1 %v10627_v21 }
 0x393   :  { %2220 = vmatpush1.bf16.msra.mxu0 %v10634_v37 }
 0x394   :  { %2221 = vmatprep.subr.bf16.mxu0 %v10646_v43 }
 0x395   :  { %2263 = vmatpush1.bf16.msra.mxu1 %v10639_v35 }
 0x396   :  { %2264 = vmatprep.subr.bf16.mxu1 %v10651_v33 }
 0x397   :  { %2222 = vmatpush1.bf16.msra.mxu0 %v10658_v61 }
 0x398   :  { %2223 = vmatprep.subr.bf16.mxu0 %v10670_v8 }
 0x399   :  { %2265 = vmatpush1.bf16.msra.mxu1 %v10663_v6 }
 0x39a   :  { %2266 = vmatprep.subr.bf16.mxu1 %v10675_v9 }
 0x39b   :  { %2224 = vmatpush1.bf16.msra.mxu0 %v10682_v34 }
 0x39c   :  { %2553 = vmatprep.subr.bf16.mxu0 %v10466_v38 }
 0x39d   :  { %2267 = vmatpush1.bf16.msra.mxu1 %v10687_v17 }
 0x39e   :  { %2596 = vmatprep.subr.bf16.mxu1 %v10528_v18 }
 0x451   :  { %v1899_v20 = vpop.f32.mrb[12].mxu0  ;;  %v1942_v24 = vpop.f32.mrb[12].mxu1 }
 0x452   :  { %v8707_v13 = vadd.f32 %v1899_v20, %v10359_v15  ;;  %v1901_v22 = vpop.f32.mrb[13].mxu0  ;;  %v1944_v26 = vpop.f32.mrb[13].mxu1 }
 0x453   :  { %v8708_v36 = vadd.f32 %v1901_v22, %v10362_v16  ;;  %v1903_v7 = vpop.f32.mrb[14].mxu0  ;;  %v1946_v29 = vpop.f32.mrb[14].mxu1  ;;  %v8740_v20 = vadd.f32 %v1944_v26, %v10373_v32  ;;  %v8739_v22 = vadd.f32 %v1942_v24, %v10377_v52 }
 0x454   :  { %v7919_v30 = vmul.f32 -1.442695, %v8707_v13  ;;  %v8709_v25 = vadd.f32 %v1903_v7, %v10359_v15  ;;  %v1905_v44 = vpop.f32.mrb[15].mxu0  ;;  %v1948_v45 = vpop.f32.mrb[15].mxu1  ;;  %v8741_v7 = vadd.f32 %v1946_v29, %v10377_v52 }
 0x455   :  { %v7921_v23 = vmul.f32 -1.442695, %v8708_v36  ;;  %v8710_v47 = vadd.f32 %v1905_v44, %v10362_v16  ;;  %v7923_v10 = vmul.f32 -1.442695, %v8740_v20  ;;  %v8742_v13 = vadd.f32 %v1948_v45, %v10373_v32 }
 0x456   :  { %9381 = vpow2.f32 %v7919_v30  ;;  %v7920_v48 = vmul.f32 -1.442695, %v8709_v25 }
 0x457   :  { %9383 = vpow2.f32 %v7921_v23  ;;  %v7922_v49 = vmul.f32 -1.442695, %v8710_v47  ;;  %v7924_v30 = vmul.f32 -1.442695, %v8742_v13 }
 0x458   :  { %9385 = vpow2.f32 %v7920_v48 }
 0x459   :  { %9387 = vpow2.f32 %v7922_v49 }
 0x45a   :  { %9389 = vtanh.f32 %v8739_v22 }
 0x45b   :  { %9391 = vpow2.f32 %v7923_v10 }
 0x45c   :  { %9393 = vtanh.f32 %v8741_v7 }
 0x460   :  { %v9382_v19 = vpop.eup %9381 }
 0x461   :  { %v9384_v36 = vpop.eup %9383  ;;  %v1965_v1 = vadd.f32 1.0, %v9382_v19 }
 0x462   :  { %v1977_v25 = vadd.f32 1.0, %v9384_v36  ;;  %v9386_v44 = vpop.eup %9385 }
 0x463   :  { %9395 = vrcp.f32 %v1965_v1  ;;  %v1966_v26 = vadd.f32 1.0, %v9386_v44  ;;  %v9388_v23 = vpop.eup %9387 }
 0x464   :  { %9397 = vrcp.f32 %v1977_v25  ;;  %v1978_v24 = vadd.f32 1.0, %v9388_v23  ;;  %v9390_v45 = vpop.eup %9389 }
 0x465   :  { %9399 = vpow2.f32 %v7924_v30  ;;  %v9392_v47 = vpop.eup %9391 }
 0x466   :  { %9401 = vrcp.f32 %v1966_v26  ;;  %v9394_v29 = vpop.eup %9393  ;;  %v1991_v13 = vadd.f32 1.0, %v9392_v47 }
 0x467   :  { %9403 = vrcp.f32 %v1978_v24 }
 0x468   :  { %9405 = vrcp.f32 %v1991_v13 }
 0x46d   :  { %v9396_v48 = vpop.eup %9395 }
 0x46e   :  { %v9398_v49 = vpop.eup %9397  ;;  %v1999_v20 = vmul.f32 %v9396_v48, %v9390_v45 }
 0x46f   :  { %v9400_v19 = vpop.eup %9399  ;;  %v1997_v10 = vmul.f32 %v9398_v49, %v10509_v40 }
 0x470   :  { %v9402_v22 = vpop.eup %9401  ;;  %v1992_v25 = vadd.f32 1.0, %v9400_v19 }
 0x471   :  { %v10704_v7 = vadd.f32 %v1999_v20, %v1997_v10  ;;  %v2000_v1 = vmul.f32 %v9402_v22, %v9394_v29  ;;  %v9404_v36 = vpop.eup %9403 }
 0x472   :  { %v1998_v30 = vmul.f32 %v9404_v36, %v10513_v41  ;;  %v9406_v26 = vpop.eup %9405  ;;  %v12372_v41 = vmov 0  }
 0x473   :  { %9407 = vtanh.f32 %v10704_v7 }
 0x474   :  { %v10708_v44 = vadd.f32 %v2000_v1, %v1998_v30  ;;  %9409 = vrcp.f32 %v1992_v25 }
 0x476   :  { %9411 = vtanh.f32 %v10708_v44 }
 0x47d   :  { %v9408_v23 = vpop.eup %9407 }
 0x47e   :  { %v9410_v40 = vpop.eup %9409  ;;  %v2005_v45 = vmul.f32 %v9408_v23, %v9406_v26 }
 0x480   :  { %v9412_v24 = vpop.eup %9411 }
 0x481   :  { %v2006_v47 = vmul.f32 %v9412_v24, %v9410_v40 }
 0x483   :  { %v10711_v48 = vpack.c.bf16 %v2006_v47, %v2005_v45 }
 0x485   :  { %2242 = vmatmul.mubr.bf16.vlgmr.msra.gmra.mrb[16].mxu0 %v10711_v48  ;;  %2285 = vmatmul.mubr.bf16.vlgmr.msra.gmra.mrb[16].mxu1 %v10711_v48 }
 0x486   :  { %2554 = vmatpush1.bf16.msra.mxu0 %v10471_v39  ;;  %2597 = vmatpush1.bf16.msra.mxu1 %v10533_v51 }
 0x487   :  { %2555 = vmatprep.subr.bf16.mxu0 %v10478_v42  ;;  %2598 = vmatprep.subr.bf16.mxu1 %v10540_v53 }
 0x488   :  { %2585 = vmatprep.mubr.bf16.mxu0 %v12372_v41  ;;  %2628 = vmatprep.mubr.bf16.mxu1 %v12372_v41 }
 0x48a   :  { %2556 = vmatpush1.bf16.msra.mxu0 %v10483_v46  ;;  %2599 = vmatpush1.bf16.msra.mxu1 %v10545_v54 }
 0x48b   :  { %2557 = vmatprep.subr.bf16.mxu0 %v10552_v55  ;;  %2600 = vmatprep.subr.bf16.mxu1 %v10557_v56 }
 0x48e   :  { %2558 = vmatpush1.bf16.msra.mxu0 %v10562_v57  ;;  %2601 = vmatpush1.bf16.msra.mxu1 %v10567_v58 }
 0x48f   :  { %2559 = vmatprep.subr.bf16.mxu0 %v10576_v59  ;;  %2602 = vmatprep.subr.bf16.mxu1 %v10581_v60 }
 0x492   :  { %2560 = vmatpush1.bf16.msra.mxu0 %v10586_v62  ;;  %2603 = vmatpush1.bf16.msra.mxu1 %v10591_v63 }
 0x493   :  { %2561 = vmatprep.subr.bf16.mxu0 %v10600_v0  ;;  %2604 = vmatprep.subr.bf16.mxu1 %v10605_v2 }
 0x496   :  { %2562 = vmatpush1.bf16.msra.mxu0 %v10610_v3  ;;  %2605 = vmatpush1.bf16.msra.mxu1 %v10615_v4 }
 0x497   :  { %2563 = vmatprep.subr.bf16.mxu0 %v10622_v5  ;;  %2606 = vmatprep.subr.bf16.mxu1 %v10627_v21 }
 0x49a   :  { %2564 = vmatpush1.bf16.msra.mxu0 %v10634_v37  ;;  %2607 = vmatpush1.bf16.msra.mxu1 %v10639_v35 }
 0x49b   :  { %2565 = vmatprep.subr.bf16.mxu0 %v10646_v43  ;;  %2608 = vmatprep.subr.bf16.mxu1 %v10651_v33 }
 0x49e   :  { %2566 = vmatpush1.bf16.msra.mxu0 %v10658_v61  ;;  %2609 = vmatpush1.bf16.msra.mxu1 %v10663_v6 }
 0x49f   :  { %2567 = vmatprep.subr.bf16.mxu0 %v10670_v8  ;;  %2610 = vmatprep.subr.bf16.mxu1 %v10675_v9 }
 0x4a2   :  { %2568 = vmatpush1.bf16.msra.mxu0 %v10682_v34  ;;  %2611 = vmatpush1.bf16.msra.mxu1 %v10687_v17 }
 0x4a3   :  { %2897 = vmatprep.subr.bf16.mxu0 %v10466_v38  ;;  %2940 = vmatprep.subr.bf16.mxu1 %v10528_v18 }
 0x558   :  { %v2243_v29 = vpop.f32.mrb[16].mxu0  ;;  %v2286_v49 = vpop.f32.mrb[16].mxu1 }
 0x559   :  { %v8711_v20 = vadd.f32 %v2243_v29, %v10359_v15  ;;  %v2245_v19 = vpop.f32.mrb[17].mxu0  ;;  %v2288_v10 = vpop.f32.mrb[17].mxu1  ;;  %v8743_v47 = vadd.f32 %v2286_v49, %v10377_v52 }
 0x55a   :  { %v8712_v22 = vadd.f32 %v2245_v19, %v10362_v16  ;;  %v2247_v13 = vpop.f32.mrb[18].mxu0  ;;  %v2290_v1 = vpop.f32.mrb[18].mxu1  ;;  %v8744_v45 = vadd.f32 %v2288_v10, %v10373_v32 }
 0x55b   :  { %v7957_v36 = vmul.f32 -1.442695, %v8711_v20  ;;  %v8713_v25 = vadd.f32 %v2247_v13, %v10359_v15  ;;  %v2249_v30 = vpop.f32.mrb[19].mxu0  ;;  %v2292_v26 = vpop.f32.mrb[19].mxu1  ;;  %v8745_v19 = vadd.f32 %v2290_v1, %v10377_v52 }
 0x55c   :  { %v7959_v23 = vmul.f32 -1.442695, %v8712_v22  ;;  %v8714_v38 = vadd.f32 %v2249_v30, %v10362_v16  ;;  %v7961_v29 = vmul.f32 -1.442695, %v8744_v45  ;;  %v8746_v20 = vadd.f32 %v2292_v26, %v10373_v32 }
 0x55d   :  { %9413 = vpow2.f32 %v7957_v36  ;;  %v7958_v40 = vmul.f32 -1.442695, %v8713_v25 }
 0x55e   :  { %9415 = vpow2.f32 %v7959_v23  ;;  %v7960_v24 = vmul.f32 -1.442695, %v8714_v38  ;;  %v7962_v36 = vmul.f32 -1.442695, %v8746_v20 }
 0x55f   :  { %9417 = vpow2.f32 %v7958_v40 }
 0x560   :  { %9419 = vpow2.f32 %v7960_v24 }
 0x561   :  { %9421 = vtanh.f32 %v8743_v47 }
 0x562   :  { %9423 = vpow2.f32 %v7961_v29 }
 0x563   :  { %9425 = vtanh.f32 %v8745_v19 }
 0x567   :  { %v9414_v13 = vpop.eup %9413 }
 0x568   :  { %v9416_v22 = vpop.eup %9415  ;;  %v2309_v27 = vadd.f32 1.0, %v9414_v13 }
 0x569   :  { %v2321_v25 = vadd.f32 1.0, %v9416_v22  ;;  %v9418_v30 = vpop.eup %9417 }
 0x56a   :  { %9427 = vrcp.f32 %v2309_v27  ;;  %v2310_v10 = vadd.f32 1.0, %v9418_v30  ;;  %v9420_v23 = vpop.eup %9419 }
 0x56b   :  { %9429 = vrcp.f32 %v2321_v25  ;;  %v2322_v49 = vadd.f32 1.0, %v9420_v23  ;;  %v9422_v26 = vpop.eup %9421 }
 0x56c   :  { %9431 = vpow2.f32 %v7962_v36  ;;  %v9424_v38 = vpop.eup %9423 }
 0x56d   :  { %9433 = vrcp.f32 %v2310_v10  ;;  %v9426_v1 = vpop.eup %9425  ;;  %v2335_v19 = vadd.f32 1.0, %v9424_v38 }
 0x56e   :  { %9435 = vrcp.f32 %v2322_v49 }
 0x56f   :  { %9437 = vrcp.f32 %v2335_v19 }
 0x574   :  { %v9428_v40 = vpop.eup %9427 }
 0x575   :  { %v9430_v24 = vpop.eup %9429  ;;  %v2343_v45 = vmul.f32 %v9428_v40, %v9422_v26 }
 0x576   :  { %v9432_v47 = vpop.eup %9431  ;;  %v2341_v29 = vmul.f32 %v9430_v24, %v10704_v7 }
 0x577   :  { %v9434_v20 = vpop.eup %9433  ;;  %v2336_v25 = vadd.f32 1.0, %v9432_v47 }
 0x578   :  { %v10758_v13 = vadd.f32 %v2343_v45, %v2341_v29  ;;  %v2344_v27 = vmul.f32 %v9434_v20, %v9426_v1  ;;  %v9436_v22 = vpop.eup %9435 }
 0x579   :  { %v2342_v36 = vmul.f32 %v9436_v22, %v10708_v44  ;;  %v9438_v10 = vpop.eup %9437 }
 0x57a   :  { %9439 = vtanh.f32 %v10758_v13 }
 0x57b   :  { %v10762_v30 = vadd.f32 %v2344_v27, %v2342_v36  ;;  %9441 = vrcp.f32 %v2336_v25 }
 0x57d   :  { %9443 = vtanh.f32 %v10762_v30 }
 0x584   :  { %v9440_v23 = vpop.eup %9439 }
 0x585   :  { %v9442_v7 = vpop.eup %9441  ;;  %v2349_v26 = vmul.f32 %v9440_v23, %v9438_v10 }
 0x587   :  { %v9444_v49 = vpop.eup %9443 }
 0x588   :  { %v2350_v38 = vmul.f32 %v9444_v49, %v9442_v7 }
 0x58a   :  { %v10765_v40 = vpack.c.bf16 %v2350_v38, %v2349_v26 }
 0x58c   :  { %2586 = vmatmul.mubr.bf16.vlgmr.msra.gmra.mrb[20].mxu0 %v10765_v40  ;;  %2629 = vmatmul.mubr.bf16.vlgmr.msra.gmra.mrb[20].mxu1 %v10765_v40 }
 0x58d   :  { %2898 = vmatpush1.bf16.msra.mxu0 %v10471_v39  ;;  %2941 = vmatpush1.bf16.msra.mxu1 %v10533_v51 }
 0x58e   :  { %2899 = vmatprep.subr.bf16.mxu0 %v10478_v42  ;;  %2942 = vmatprep.subr.bf16.mxu1 %v10540_v53 }
 0x58f   :  { %2929 = vmatprep.mubr.bf16.mxu0 %v12372_v41  ;;  %2972 = vmatprep.mubr.bf16.mxu1 %v12372_v41 }
 0x591   :  { %2900 = vmatpush1.bf16.msra.mxu0 %v10483_v46  ;;  %2943 = vmatpush1.bf16.msra.mxu1 %v10545_v54 }
 0x592   :  { %2901 = vmatprep.subr.bf16.mxu0 %v10552_v55  ;;  %2944 = vmatprep.subr.bf16.mxu1 %v10557_v56 }
 0x595   :  { %2902 = vmatpush1.bf16.msra.mxu0 %v10562_v57  ;;  %2945 = vmatpush1.bf16.msra.mxu1 %v10567_v58 }
 0x596   :  { %2903 = vmatprep.subr.bf16.mxu0 %v10576_v59  ;;  %2946 = vmatprep.subr.bf16.mxu1 %v10581_v60 }
 0x599   :  { %2904 = vmatpush1.bf16.msra.mxu0 %v10586_v62  ;;  %2947 = vmatpush1.bf16.msra.mxu1 %v10591_v63 }
 0x59a   :  { %2905 = vmatprep.subr.bf16.mxu0 %v10600_v0  ;;  %2948 = vmatprep.subr.bf16.mxu1 %v10605_v2 }
 0x59d   :  { %2906 = vmatpush1.bf16.msra.mxu0 %v10610_v3  ;;  %2949 = vmatpush1.bf16.msra.mxu1 %v10615_v4 }
 0x59e   :  { %2907 = vmatprep.subr.bf16.mxu0 %v10622_v5  ;;  %2950 = vmatprep.subr.bf16.mxu1 %v10627_v21 }
 0x5a1   :  { %2908 = vmatpush1.bf16.msra.mxu0 %v10634_v37  ;;  %2951 = vmatpush1.bf16.msra.mxu1 %v10639_v35 }
 0x5a2   :  { %2909 = vmatprep.subr.bf16.mxu0 %v10646_v43  ;;  %2952 = vmatprep.subr.bf16.mxu1 %v10651_v33 }
 0x5a5   :  { %2910 = vmatpush1.bf16.msra.mxu0 %v10658_v61  ;;  %2953 = vmatpush1.bf16.msra.mxu1 %v10663_v6 }
 0x5a6   :  { %2911 = vmatprep.subr.bf16.mxu0 %v10670_v8  ;;  %2954 = vmatprep.subr.bf16.mxu1 %v10675_v9 }
 0x5a9   :  { %2912 = vmatpush1.bf16.msra.mxu0 %v10682_v34  ;;  %2955 = vmatpush1.bf16.msra.mxu1 %v10687_v17 }
 0x5aa   :  { %3284 = vmatprep.subr.bf16.mxu1 %v10528_v18 }
 0x65f   :  { %v2587_v39 = vpop.f32.mrb[20].mxu0  ;;  %v2630_v42 = vpop.f32.mrb[20].mxu1 }
 0x660   :  { %v8715_v46 = vadd.f32 %v2587_v39, %v10359_v15  ;;  %v2589_v44 = vpop.f32.mrb[21].mxu0  ;;  %v2632_v1 = vpop.f32.mrb[21].mxu1  ;;  %v8747_v23 = vadd.f32 %v2630_v42, %v10377_v52 }
 0x661   :  { %v8716_v24 = vadd.f32 %v2589_v44, %v10362_v16  ;;  %v2591_v45 = vpop.f32.mrb[22].mxu0  ;;  %v2634_v47 = vpop.f32.mrb[22].mxu1  ;;  %v8748_v10 = vadd.f32 %v2632_v1, %v10373_v32 }
 0x662   :  { %v7995_v29 = vmul.f32 -1.442695, %v8715_v46  ;;  %v8717_v20 = vadd.f32 %v2591_v45, %v10359_v15  ;;  %v2593_v19 = vpop.f32.mrb[23].mxu0  ;;  %v2636_v27 = vpop.f32.mrb[23].mxu1  ;;  %v8749_v26 = vadd.f32 %v2634_v47, %v10377_v52 }
 0x663   :  { %v7997_v22 = vmul.f32 -1.442695, %v8716_v24  ;;  %v8718_v25 = vadd.f32 %v2593_v19, %v10362_v16  ;;  %v7999_v7 = vmul.f32 -1.442695, %v8748_v10  ;;  %v8750_v49 = vadd.f32 %v2636_v27, %v10373_v32 }
 0x664   :  { %9445 = vpow2.f32 %v7995_v29  ;;  %v7996_v18 = vmul.f32 -1.442695, %v8717_v20 }
 0x665   :  { %9447 = vpow2.f32 %v7997_v22  ;;  %v7998_v36 = vmul.f32 -1.442695, %v8718_v25  ;;  %v8000_v44 = vmul.f32 -1.442695, %v8750_v49 }
 0x666   :  { %9449 = vpow2.f32 %v7996_v18 }
 0x667   :  { %9451 = vpow2.f32 %v7998_v36 }
 0x668   :  { %9453 = vtanh.f32 %v8747_v23 }
 0x669   :  { %9455 = vpow2.f32 %v7999_v7 }
 0x66a   :  { %9457 = vtanh.f32 %v8749_v26 }
 0x66e   :  { %v9446_v38 = vpop.eup %9445 }
 0x66f   :  { %v9448_v39 = vpop.eup %9447  ;;  %v2653_v46 = vadd.f32 1.0, %v9446_v38 }
 0x670   :  { %v2665_v24 = vadd.f32 1.0, %v9448_v39  ;;  %v9450_v45 = vpop.eup %9449 }
 0x671   :  { %9459 = vrcp.f32 %v2653_v46  ;;  %v2654_v1 = vadd.f32 1.0, %v9450_v45  ;;  %v9452_v29 = vpop.eup %9451 }
 0x672   :  { %9461 = vrcp.f32 %v2665_v24  ;;  %v2666_v42 = vadd.f32 1.0, %v9452_v29  ;;  %v9454_v20 = vpop.eup %9453 }
 0x673   :  { %9463 = vpow2.f32 %v8000_v44  ;;  %v9456_v19 = vpop.eup %9455 }
 0x674   :  { %9465 = vrcp.f32 %v2654_v1  ;;  %v9458_v47 = vpop.eup %9457  ;;  %v2679_v23 = vadd.f32 1.0, %v9456_v19 }
 0x675   :  { %9467 = vrcp.f32 %v2666_v42 }
 0x676   :  { %9469 = vrcp.f32 %v2679_v23 }
 0x67b   :  { %v9460_v27 = vpop.eup %9459 }
 0x67c   :  { %v9462_v22 = vpop.eup %9461  ;;  %v2687_v25 = vmul.f32 %v9460_v27, %v9454_v20 }
 0x67d   :  { %v9464_v18 = vpop.eup %9463  ;;  %v2685_v36 = vmul.f32 %v9462_v22, %v10758_v13 }
 0x67e   :  { %v9466_v10 = vpop.eup %9465  ;;  %v2680_v38 = vadd.f32 1.0, %v9464_v18 }
 0x67f   :  { %v10811_v7 = vadd.f32 %v2687_v25, %v2685_v36  ;;  %v2688_v49 = vmul.f32 %v9466_v10, %v9458_v47  ;;  %v9468_v26 = vpop.eup %9467 }
 0x680   :  { %v2686_v39 = vmul.f32 %v9468_v26, %v10762_v30  ;;  %v9470_v44 = vpop.eup %9469 }
 0x681   :  { %9471 = vtanh.f32 %v10811_v7 }
 0x682   :  { %v10815_v46 = vadd.f32 %v2688_v49, %v2686_v39  ;;  %9473 = vrcp.f32 %v2680_v38 }
 0x684   :  { %9475 = vtanh.f32 %v10815_v46 }
 0x68b   :  { %v9472_v24 = vpop.eup %9471 }
 0x68c   :  { %v9474_v13 = vpop.eup %9473  ;;  %v2693_v1 = vmul.f32 %v9472_v24, %v9470_v44 }
 0x68e   :  { %v9476_v45 = vpop.eup %9475 }
 0x68f   :  { %v2694_v29 = vmul.f32 %v9476_v45, %v9474_v13 }
 0x691   :  { %v10818_v42 = vpack.c.bf16 %v2694_v29, %v2693_v1 }
 0x693   :  { %2930 = vmatmul.mubr.bf16.vlgmr.msra.gmra.mrb[24].mxu0 %v10818_v42  ;;  %2973 = vmatmul.mubr.bf16.vlgmr.msra.gmra.mrb[24].mxu1 %v10818_v42 }
 0x694   :  { %3285 = vmatpush1.bf16.msra.mxu1 %v10533_v51  ;;  %3273 = vmatprep.mubr.bf16.mxu0 %v12372_v41  ;;  %v9110_v51 = vld [vmem:[%s12368_s26 + $0x4] ss:$16 sps:$4 sm:$0xff]  }
 0x695   :  { %3286 = vmatprep.subr.bf16.mxu1 %v10540_v53  ;;  %3316 = vmatprep.mubr.bf16.mxu1 %v12372_v41  ;;  %v9108_v53 = vld [vmem:[%s12368_s26] ss:$16 sps:$4 sm:$0xff]  }
 0x696   :  { %3241 = vmatprep.subr.bf16.mxu0 %v9110_v51 }
 0x697   :  { %3242 = vmatpush1.bf16.msra.mxu0 %v9108_v53 }
 0x698   :  { %3287 = vmatpush1.bf16.msra.mxu1 %v10545_v54  ;;  %v9113_v54 = vld [vmem:[%s12368_s26 + $0x24] ss:$16 sps:$4 sm:$0xff]  }
 0x699   :  { %3288 = vmatprep.subr.bf16.mxu1 %v10557_v56  ;;  %v9111_v56 = vld [vmem:[%s12368_s26 + $0x20] ss:$16 sps:$4 sm:$0xff]   ;;  %3243 = vmatprep.subr.bf16.mxu0 %v9113_v54 }
 0x69b   :  { %3244 = vmatpush1.bf16.msra.mxu0 %v9111_v56 }
 0x69c   :  { %3289 = vmatpush1.bf16.msra.mxu1 %v10567_v58  ;;  %3245 = vmatprep.subr.bf16.mxu0 %v10552_v55  ;;  %v9119_v58 = vld [vmem:[%s12338_s4 + $0xc] ss:$16 sps:$4 sm:$0xff]   ;;  %v9116_v55 = vld [vmem:[%s12338_s4 + $0x4] ss:$16 sps:$4 sm:$0xff]  }
 0x69d   :  { %3290 = vmatprep.subr.bf16.mxu1 %v10581_v60 }
 0x69f   :  { %3246 = vmatpush1.bf16.msra.mxu0 %v10562_v57 }
 0x6a0   :  { %3291 = vmatpush1.bf16.msra.mxu1 %v10591_v63  ;;  %3247 = vmatprep.subr.bf16.mxu0 %v10576_v59 }
 0x6a1   :  { %3292 = vmatprep.subr.bf16.mxu1 %v10605_v2 }
 0x6a3   :  { %3248 = vmatpush1.bf16.msra.mxu0 %v10586_v62 }
 0x6a4   :  { %3293 = vmatpush1.bf16.msra.mxu1 %v10615_v4  ;;  %3249 = vmatprep.subr.bf16.mxu0 %v10600_v0 }
 0x6a5   :  { %3294 = vmatprep.subr.bf16.mxu1 %v10627_v21 }
 0x6a7   :  { %3250 = vmatpush1.bf16.msra.mxu0 %v10610_v3 }
 0x6a8   :  { %3295 = vmatpush1.bf16.msra.mxu1 %v10639_v35  ;;  %3251 = vmatprep.subr.bf16.mxu0 %v10622_v5 }
 0x6a9   :  { %3296 = vmatprep.subr.bf16.mxu1 %v10651_v33 }
 0x6ab   :  { %3252 = vmatpush1.bf16.msra.mxu0 %v10634_v37 }
 0x6ac   :  { %3297 = vmatpush1.bf16.msra.mxu1 %v10663_v6  ;;  %3253 = vmatprep.subr.bf16.mxu0 %v10646_v43 }
 0x6ad   :  { %3298 = vmatprep.subr.bf16.mxu1 %v10675_v9 }
 0x6af   :  { %3254 = vmatpush1.bf16.msra.mxu0 %v10658_v61 }
 0x6b0   :  { %3299 = vmatpush1.bf16.msra.mxu1 %v10687_v17  ;;  %3255 = vmatprep.subr.bf16.mxu0 %v10670_v8 }
 0x6b1   :  { %3720 = vmatprep.subr.bf16.mxu1 %v9119_v58 }
 0x6b3   :  { %3256 = vmatpush1.bf16.msra.mxu0 %v10682_v34 }
 0x6b4   :  { %3607 = vmatprep.subr.bf16.mxu0 %v9116_v55 }
 0x766   :  { %v2931_v57 = vpop.f32.mrb[24].mxu0  ;;  %v2974_v59 = vpop.f32.mrb[24].mxu1 }
 0x767   :  { %v8719_v60 = vadd.f32 %v2931_v57, %v10359_v15  ;;  %v2933_v62 = vpop.f32.mrb[25].mxu0  ;;  %v2976_v63 = vpop.f32.mrb[25].mxu1  ;;  %v8751_v8 = vadd.f32 %v2974_v59, %v10377_v52 }
 0x768   :  { %v8720_v0 = vadd.f32 %v2933_v62, %v10362_v16  ;;  %v2935_v2 = vpop.f32.mrb[26].mxu0  ;;  %v2978_v3 = vpop.f32.mrb[26].mxu1  ;;  %v8752_v6 = vadd.f32 %v2976_v63, %v10373_v32  ;;  %v9114_v62 = vld [vmem:[%s12338_s4] ss:$16 sps:$4 sm:$0xff]  }
 0x769   :  { %v8033_v4 = vmul.f32 -1.442695, %v8719_v60  ;;  %v8721_v5 = vadd.f32 %v2935_v2, %v10359_v15  ;;  %v2937_v21 = vpop.f32.mrb[27].mxu0  ;;  %v2980_v37 = vpop.f32.mrb[27].mxu1  ;;  %v8753_v17 = vadd.f32 %v2978_v3, %v10377_v52  ;;  %v9125_v2 = vld [vmem:[%s12338_s4 + $0x2c] ss:$16 sps:$4 sm:$0xff]  }
 0x76a   :  { %v8035_v35 = vmul.f32 -1.442695, %v8720_v0  ;;  %v8722_v43 = vadd.f32 %v2937_v21, %v10362_v16  ;;  %v8037_v9 = vmul.f32 -1.442695, %v8752_v6  ;;  %v8754_v34 = vadd.f32 %v2980_v37, %v10373_v32  ;;  %v9122_v0 = vld [vmem:[%s12338_s4 + $0x24] ss:$16 sps:$4 sm:$0xff]  }
 0x76b   :  { %9477 = vpow2.f32 %v8033_v4  ;;  %v8034_v33 = vmul.f32 -1.442695, %v8721_v5  ;;  %v9120_v3 = vld [vmem:[%s12338_s4 + $0x20] ss:$16 sps:$4 sm:$0xff]   ;;  %v9123_v4 = vld [vmem:[%s12338_s4 + $0x28] ss:$16 sps:$4 sm:$0xff]  }
 0x76c   :  { %9479 = vpow2.f32 %v8035_v35  ;;  %v8036_v61 = vmul.f32 -1.442695, %v8722_v43  ;;  %v8038_v47 = vmul.f32 -1.442695, %v8754_v34  ;;  %v9128_v5 = vld [vmem:[%s12338_s4 + $0x44] ss:$16 sps:$4 sm:$0xff]  }
 0x76d   :  { %9481 = vpow2.f32 %v8034_v33  ;;  %v9131_v21 = vld [vmem:[%s12338_s4 + $0x4c] ss:$16 sps:$4 sm:$0xff]   ;;  %v9126_v37 = vld [vmem:[%s12338_s4 + $0x40] ss:$16 sps:$4 sm:$0xff]   ;;  %v9129_v35 = vld [vmem:[%s12338_s4 + $0x48] ss:$16 sps:$4 sm:$0xff]  }
 0x76e   :  { %9483 = vpow2.f32 %v8036_v61  ;;  %v9134_v43 = vld [vmem:[%s12338_s4 + $0x64] ss:$16 sps:$4 sm:$0xff]   ;;  %v9137_v33 = vld [vmem:[%s12338_s4 + $0x6c] ss:$16 sps:$4 sm:$0xff]   ;;  %v9132_v61 = vld [vmem:[%s12338_s4 + $0x60] ss:$16 sps:$4 sm:$0xff]  }
 0x76f   :  { %9485 = vtanh.f32 %v8751_v8  ;;  %v9135_v6 = vld [vmem:[%s12338_s4 + $0x68] ss:$16 sps:$4 sm:$0xff]   ;;  %v9140_v8 = vld [vmem:[%s12338_s4 + $0x84] ss:$16 sps:$4 sm:$0xff]   ;;  %v9138_v34 = vld [vmem:[%s12338_s4 + $0x80] ss:$16 sps:$4 sm:$0xff]  }
 0x770   :  { %9487 = vpow2.f32 %v8037_v9  ;;  %v9143_v9 = vld [vmem:[%s12338_s4 + $0x8c] ss:$16 sps:$4 sm:$0xff]  }
 0x771   :  { %9489 = vtanh.f32 %v8753_v17  ;;  %v9141_v17 = vld [vmem:[%s12338_s4 + $0x88] ss:$16 sps:$4 sm:$0xff]  }
 0x775   :  { %v9478_v30 = vpop.eup %9477 }
 0x776   :  { %v9480_v20 = vpop.eup %9479  ;;  %v2997_v19 = vadd.f32 1.0, %v9478_v30  ;;  %v9146_v30 = vld [vmem:[%s12338_s4 + $0xa4] ss:$16 sps:$4 sm:$0xff]  }
 0x777   :  { %v3009_v27 = vadd.f32 1.0, %v9480_v20  ;;  %v9482_v22 = vpop.eup %9481  ;;  %v9149_v20 = vld [vmem:[%s12338_s4 + $0xac] ss:$16 sps:$4 sm:$0xff]  }
 0x778   :  { %9491 = vrcp.f32 %v2997_v19  ;;  %v2998_v25 = vadd.f32 1.0, %v9482_v22  ;;  %v9484_v18 = vpop.eup %9483  ;;  %v9144_v19 = vld [vmem:[%s12338_s4 + $0xa0] ss:$16 sps:$4 sm:$0xff]   ;;  %v9155_v22 = vld [vmem:[%s12338_s4 + $0xcc] ss:$16 sps:$4 sm:$0xff]  }
 0x779   :  { %9493 = vrcp.f32 %v3009_v27  ;;  %v3010_v36 = vadd.f32 1.0, %v9484_v18  ;;  %v9486_v10 = vpop.eup %9485  ;;  %v9152_v27 = vld [vmem:[%s12338_s4 + $0xc4] ss:$16 sps:$4 sm:$0xff]   ;;  %v9153_v18 = vld [vmem:[%s12338_s4 + $0xc8] ss:$16 sps:$4 sm:$0xff]  }
 0x77a   :  { %9495 = vpow2.f32 %v8038_v47  ;;  %v9488_v23 = vpop.eup %9487  ;;  %v9147_v47 = vld [vmem:[%s12338_s4 + $0xa8] ss:$16 sps:$4 sm:$0xff]  }
 0x77b   :  { %9497 = vrcp.f32 %v2998_v25  ;;  %v9490_v49 = vpop.eup %9489  ;;  %v3023_v45 = vadd.f32 1.0, %v9488_v23  ;;  %v9150_v25 = vld [vmem:[%s12338_s4 + $0xc0] ss:$16 sps:$4 sm:$0xff]  }
 0x77c   :  { %9499 = vrcp.f32 %v3010_v36  ;;  %v9158_v36 = vld [vmem:[%s12338_s4 + $0xe4] ss:$16 sps:$4 sm:$0xff]   ;;  %v9156_v23 = vld [vmem:[%s12338_s4 + $0xe0] ss:$16 sps:$4 sm:$0xff]  }
 0x77d   :  { %9501 = vrcp.f32 %v3023_v45  ;;  %v11081_v45 = vld [vmem:[%s12339_s5 + $0x48] ss:$16 sps:$4 sm:$0xff]  }
 0x782   :  { %v9492_v26 = vpop.eup %9491 }
 0x783   :  { %v9494_v38 = vpop.eup %9493  ;;  %v3031_v39 = vmul.f32 %v9492_v26, %v9486_v10  ;;  %v9161_v10 = vld [vmem:[%s12338_s4 + $0xec] ss:$16 sps:$4 sm:$0xff]   ;;  %v10984_v26 = vld [vmem:[%s12339_s5 + $0x4] ss:$16 sps:$4 sm:$0xff]  }
 0x784   :  { %v9496_v44 = vpop.eup %9495  ;;  %v3029_v24 = vmul.f32 %v9494_v38, %v10811_v7  ;;  %v10989_v38 = vld [vmem:[%s12339_s5] ss:$16 sps:$4 sm:$0xff]  }
 0x785   :  { %v9498_v13 = vpop.eup %9497  ;;  %v3024_v53 = vadd.f32 1.0, %v9496_v44  ;;  %v11064_v44 = vld [vmem:[%s12339_s5 + $0x40] ss:$16 sps:$4 sm:$0xff]  }
 0x786   :  { %v10878_v1 = vadd.f32 %v3031_v39, %v3029_v24  ;;  %v3032_v29 = vmul.f32 %v9498_v13, %v9490_v49  ;;  %v9500_v51 = vpop.eup %9499  ;;  %v9159_v49 = vld [vmem:[%s12338_s4 + $0xe8] ss:$16 sps:$4 sm:$0xff]   ;;  %v11069_v24 = vld [vmem:[%s12339_s5 + $0x4c] ss:$16 sps:$4 sm:$0xff]   ;;  %v11075_v13 = vld [vmem:[%s12339_s5 + $0x64] ss:$16 sps:$4 sm:$0xff]  }
 0x787   :  { %v3030_v54 = vmul.f32 %v9500_v51, %v10815_v46  ;;  %v9502_v58 = vpop.eup %9501  ;;  %v9117_v46 = vld [vmem:[%s12338_s4 + $0x8] ss:$16 sps:$4 sm:$0xff]   ;;  %v11093_v51 = vld [vmem:[%s12339_s5 + $0x60] ss:$16 sps:$4 sm:$0xff]  }
 0x788   :  { %9503 = vtanh.f32 %v10878_v1  ;;  %v11057_v39 = vld [vmem:[%s12339_s5 + $0x28] ss:$16 sps:$4 sm:$0xff]  }
 0x789   :  { %v10882_v56 = vadd.f32 %v3032_v29, %v3030_v54  ;;  %9505 = vrcp.f32 %v3024_v53  ;;  %v11087_v29 = vld [vmem:[%s12339_s5 + $0x6c] ss:$16 sps:$4 sm:$0xff]   ;;  %v11099_v53 = vld [vmem:[%s12339_s5 + $0x84] ss:$16 sps:$4 sm:$0xff]   ;;  %v11105_v54 = vld [vmem:[%s12339_s5 + $0x68] ss:$16 sps:$4 sm:$0xff]  }
 0x78b   :  { %9507 = vtanh.f32 %v10882_v56 }
 0x792   :  { %v9504_v55 = vpop.eup %9503 }
 0x793   :  { %v9506_v7 = vpop.eup %9505  ;;  %v3037_v59 = vmul.f32 %v9504_v55, %v9502_v58  ;;  %v11111_v58 = vld [vmem:[%s12339_s5 + $0x8c] ss:$16 sps:$4 sm:$0xff]   ;;  %v11117_v55 = vld [vmem:[%s12339_s5 + $0x80] ss:$16 sps:$4 sm:$0xff]  }
 0x795   :  { %v9508_v57 = vpop.eup %9507 }
 0x796   :  { %v3038_v60 = vmul.f32 %v9508_v57, %v9506_v7  ;;  %v11123_v7 = vld [vmem:[%s12339_s5 + $0xa4] ss:$16 sps:$4 sm:$0xff]   ;;  %v11129_v57 = vld [vmem:[%s12339_s5 + $0x88] ss:$16 sps:$4 sm:$0xff]  }
 0x798   :  { %v10891_v63 = vpack.c.bf16 %v3038_v60, %v3037_v59  ;;  %v11135_v59 = vld [vmem:[%s12339_s5 + $0xac] ss:$16 sps:$4 sm:$0xff]   ;;  %v11141_v60 = vld [vmem:[%s12339_s5 + $0xa0] ss:$16 sps:$4 sm:$0xff]  }
 0x79a   :  { %3274 = vmatmul.mubr.bf16.vlgmr.msra.gmra.mrb[28].mxu0 %v10891_v63  ;;  %3317 = vmatmul.mubr.bf16.vlgmr.msra.gmra.mrb[28].mxu1 %v10891_v63 }
 0x79b   :  { %3608 = vmatpush1.bf16.msra.mxu0 %v9114_v62  ;;  %3721 = vmatpush1.bf16.msra.mxu1 %v9117_v46  ;;  %v11147_v62 = vld [vmem:[%s12339_s5 + $0xc4] ss:$16 sps:$4 sm:$0xff]   ;;  %v11153_v46 = vld [vmem:[%s12339_s5 + $0xa8] ss:$16 sps:$4 sm:$0xff]  }
 0x79c   :  { %3609 = vmatprep.subr.bf16.mxu0 %v9122_v0  ;;  %3722 = vmatprep.subr.bf16.mxu1 %v9125_v2  ;;  %v11167_v0 = vld [vmem:[%s12339_s5 + $0xe4] ss:$16 sps:$4 sm:$0xff]   ;;  %v11172_v2 = vld [vmem:[%s12339_s5 + $0xc8] ss:$16 sps:$4 sm:$0xff]  }
 0x79d   :  { %3639 = vmatprep.mubr.bf16.mxu0 %v12372_v41  ;;  %3752 = vmatprep.mubr.bf16.mxu1 %v12372_v41 }
 0x79f   :  { %3610 = vmatpush1.bf16.msra.mxu0 %v9120_v3  ;;  %3723 = vmatpush1.bf16.msra.mxu1 %v9123_v4  ;;  %v11177_v3 = vld [vmem:[%s12339_s5 + $0xcc] ss:$16 sps:$4 sm:$0xff]  }
 0x7a0   :  { %3611 = vmatprep.subr.bf16.mxu0 %v9128_v5  ;;  %3724 = vmatprep.subr.bf16.mxu1 %v9131_v21  ;;  %v11182_v4 = vld [vmem:[%s12339_s5 + $0xec] ss:$16 sps:$4 sm:$0xff]   ;;  %v11188_v5 = vld [vmem:[%s12339_s5 + $0xe0] ss:$16 sps:$4 sm:$0xff]   ;;  %v11196_v21 = vld [vmem:[%s12339_s5 + $0xe8] ss:$16 sps:$4 sm:$0xff]  }
 0x7a3   :  { %3612 = vmatpush1.bf16.msra.mxu0 %v9126_v37  ;;  %3725 = vmatpush1.bf16.msra.mxu1 %v9129_v35 }
 0x7a4   :  { %3613 = vmatprep.subr.bf16.mxu0 %v9134_v43  ;;  %3726 = vmatprep.subr.bf16.mxu1 %v9137_v33 }
 0x7a7   :  { %3614 = vmatpush1.bf16.msra.mxu0 %v9132_v61  ;;  %3727 = vmatpush1.bf16.msra.mxu1 %v9135_v6 }
 0x7a8   :  { %3615 = vmatprep.subr.bf16.mxu0 %v9140_v8  ;;  %3728 = vmatprep.subr.bf16.mxu1 %v9143_v9 }
 0x7ab   :  { %3616 = vmatpush1.bf16.msra.mxu0 %v9138_v34  ;;  %3729 = vmatpush1.bf16.msra.mxu1 %v9141_v17 }
 0x7ac   :  { %3617 = vmatprep.subr.bf16.mxu0 %v9146_v30  ;;  %3730 = vmatprep.subr.bf16.mxu1 %v9149_v20 }
 0x7af   :  { %3618 = vmatpush1.bf16.msra.mxu0 %v9144_v19  ;;  %3731 = vmatpush1.bf16.msra.mxu1 %v9147_v47 }
 0x7b0   :  { %3619 = vmatprep.subr.bf16.mxu0 %v9152_v27  ;;  %3732 = vmatprep.subr.bf16.mxu1 %v9155_v22 }
 0x7b3   :  { %3620 = vmatpush1.bf16.msra.mxu0 %v9150_v25  ;;  %3733 = vmatpush1.bf16.msra.mxu1 %v9153_v18 }
 0x7b4   :  { %3621 = vmatprep.subr.bf16.mxu0 %v9158_v36  ;;  %3734 = vmatprep.subr.bf16.mxu1 %v9161_v10 }
 0x7b7   :  { %3622 = vmatpush1.bf16.msra.mxu0 %v9156_v23  ;;  %3735 = vmatpush1.bf16.msra.mxu1 %v9159_v49 }
 0x7b8   :  { %4097 = vmatprep.subr.bf16.mxu0 %v10984_v26 }
 0x7ba   :  { %3640 = vmatmul.mubr.bf16.vlgmr.msra.gmra.mrb[32].mxu0 %v10389_v28  ;;  %3753 = vmatmul.mubr.bf16.vlgmr.msra.gmra.mrb[32].mxu1 %v10389_v28  ;;  %v11024_v28 = vld [vmem:[%s12339_s5 + $0xc] ss:$16 sps:$4 sm:$0xff]  }
 0x7bb   :  { %3649 = vmatprep.mubr.bf16.mxu0 %v12372_v41  ;;  %3762 = vmatprep.mubr.bf16.mxu1 %v12372_v41 }
 0x7bc   :  { %4098 = vmatpush1.bf16.msra.mxu0 %v10989_v38  ;;  %4140 = vmatprep.subr.bf16.mxu1 %v11024_v28 }
 0x7c2   :  { %3650 = vmatmul.mubr.bf16.gmra.mrb[36].mxu0 %v10442_v31  ;;  %3763 = vmatmul.mubr.bf16.gmra.mrb[36].mxu1 %v10442_v31  ;;  %v11029_v31 = vld [vmem:[%s12339_s5 + $0x8] ss:$16 sps:$4 sm:$0xff]  }
 0x7c3   :  { %3659 = vmatprep.mubr.bf16.mxu0 %v12372_v41  ;;  %3772 = vmatprep.mubr.bf16.mxu1 %v12372_v41 }
 0x7c4   :  { %4141 = vmatpush1.bf16.msra.mxu1 %v11029_v31 }
 0x7ca   :  { %3660 = vmatmul.mubr.bf16.gmra.mrb[40].mxu0 %v10516_v50  ;;  %3773 = vmatmul.mubr.bf16.gmra.mrb[40].mxu1 %v10516_v50  ;;  %v11036_v50 = vld [vmem:[%s12339_s5 + $0x24] ss:$16 sps:$4 sm:$0xff]  }
 0x7cb   :  { %3669 = vmatprep.mubr.bf16.mxu0 %v12372_v41  ;;  %3782 = vmatprep.mubr.bf16.mxu1 %v12372_v41 }
 0x7cc   :  { %4099 = vmatprep.subr.bf16.mxu0 %v11036_v50 }
 0x7d2   :  { %3670 = vmatmul.mubr.bf16.gmra.mrb[44].mxu0 %v10711_v48  ;;  %3783 = vmatmul.mubr.bf16.gmra.mrb[44].mxu1 %v10711_v48  ;;  %v11041_v48 = vld [vmem:[%s12339_s5 + $0x2c] ss:$16 sps:$4 sm:$0xff]  }
 0x7d3   :  { %3679 = vmatprep.mubr.bf16.mxu0 %v12372_v41  ;;  %3792 = vmatprep.mubr.bf16.mxu1 %v12372_v41 }
 0x7d4   :  { %4142 = vmatprep.subr.bf16.mxu1 %v11041_v48 }
 0x7d5   :  { %4143 = vmatpush1.bf16.msra.mxu1 %v11057_v39 }
 0x7d6   :  { %4144 = vmatprep.subr.bf16.mxu1 %v11069_v24 }
 0x7d9   :  { %4145 = vmatpush1.bf16.msra.mxu1 %v11081_v45 }
 0x7da   :  { %3680 = vmatmul.mubr.bf16.gmra.mrb[48].mxu0 %v10765_v40  ;;  %3793 = vmatmul.mubr.bf16.gmra.mrb[48].mxu1 %v10765_v40  ;;  %v11046_v40 = vld [vmem:[%s12339_s5 + $0x20] ss:$16 sps:$4 sm:$0xff]  }
 0x7db   :  { %3689 = vmatprep.mubr.bf16.mxu0 %v12372_v41  ;;  %3802 = vmatprep.mubr.bf16.mxu1 %v12372_v41 }
 0x7dc   :  { %4100 = vmatpush1.bf16.msra.mxu0 %v11046_v40  ;;  %4146 = vmatprep.subr.bf16.mxu1 %v11087_v29 }
 0x7dd   :  { %4147 = vmatpush1.bf16.msra.mxu1 %v11105_v54 }
 0x7de   :  { %4148 = vmatprep.subr.bf16.mxu1 %v11111_v58 }
 0x7e1   :  { %4149 = vmatpush1.bf16.msra.mxu1 %v11129_v57 }
 0x7e2   :  { %3690 = vmatmul.mubr.bf16.gmra.mrb[52].mxu0 %v10818_v42  ;;  %3803 = vmatmul.mubr.bf16.gmra.mrb[52].mxu1 %v10818_v42  ;;  %v11051_v42 = vld [vmem:[%s12339_s5 + $0x44] ss:$16 sps:$4 sm:$0xff]  }
 0x7e3   :  { %3699 = vmatprep.mubr.bf16.mxu0 %v12372_v41  ;;  %3812 = vmatprep.mubr.bf16.mxu1 %v12372_v41 }
 0x7e4   :  { %4101 = vmatprep.subr.bf16.mxu0 %v11051_v42  ;;  %4150 = vmatprep.subr.bf16.mxu1 %v11135_v59 }
 0x7e5   :  { %4102 = vmatpush1.bf16.msra.mxu0 %v11064_v44  ;;  %4151 = vmatpush1.bf16.msra.mxu1 %v11153_v46 }
 0x7e6   :  { %4103 = vmatprep.subr.bf16.mxu0 %v11075_v13  ;;  %4152 = vmatprep.subr.bf16.mxu1 %v11177_v3 }
 0x7e9   :  { %4104 = vmatpush1.bf16.msra.mxu0 %v11093_v51  ;;  %4153 = vmatpush1.bf16.msra.mxu1 %v11172_v2 }
 0x7ea   :  { %3700 = vmatmul.mubr.bf16.gmra.mrb[56].mxu0 %v10891_v63  ;;  %3813 = vmatmul.mubr.bf16.gmra.mrb[56].mxu1 %v10891_v63  ;;  %v11160_v63 = vld [vmem:[%s12339_s5 + $0xc0] ss:$16 sps:$4 sm:$0xff]  }
 0x7eb   :  { %3709 = vmatprep.mubr.bf16.mxu0 %v12372_v41  ;;  %3822 = vmatprep.mubr.bf16.mxu1 %v12372_v41 }
 0x7ec   :  { %4105 = vmatprep.subr.bf16.mxu0 %v11099_v53  ;;  %4154 = vmatprep.subr.bf16.mxu1 %v11182_v4 }
 0x7ed   :  { %4106 = vmatpush1.bf16.msra.mxu0 %v11117_v55  ;;  %4155 = vmatpush1.bf16.msra.mxu1 %v11196_v21 }
 0x7ee   :  { %4107 = vmatprep.subr.bf16.mxu0 %v11123_v7  ;;  %4484 = vmatprep.subr.bf16.mxu1 %v11024_v28 }
 0x7f1   :  { %4108 = vmatpush1.bf16.msra.mxu0 %v11141_v60 }
 0x7f2   :  { %4109 = vmatprep.subr.bf16.mxu0 %v11147_v62 }
 0x7f5   :  { %4110 = vmatpush1.bf16.msra.mxu0 %v11160_v63 }
 0x7f6   :  { %4111 = vmatprep.subr.bf16.mxu0 %v11167_v0 }
 0x7f9   :  { %4112 = vmatpush1.bf16.msra.mxu0 %v11188_v5 }
 0x7fa   :  { %4441 = vmatprep.subr.bf16.mxu0 %v10984_v26 }
 0x86d   :  { %v3275_v37 = vpop.f32.mrb[28].mxu0  ;;  %v3318_v35 = vpop.f32.mrb[28].mxu1 }
 0x86e   :  { %v8723_v43 = vadd.f32 %v3275_v37, %v10359_v15  ;;  %v3277_v33 = vpop.f32.mrb[29].mxu0  ;;  %v3320_v61 = vpop.f32.mrb[29].mxu1  ;;  %v8755_v18 = vadd.f32 %v3318_v35, %v10377_v52 }
 0x86f   :  { %v8724_v6 = vadd.f32 %v3277_v33, %v10362_v16  ;;  %v3279_v8 = vpop.f32.mrb[30].mxu0  ;;  %v3322_v9 = vpop.f32.mrb[30].mxu1  ;;  %v8756_v25 = vadd.f32 %v3320_v61, %v10373_v32 }
 0x870   :  { %v8071_v34 = vmul.f32 -1.442695, %v8723_v43  ;;  %v8725_v17 = vadd.f32 %v3279_v8, %v10359_v15  ;;  %v3281_v30 = vpop.f32.mrb[31].mxu0  ;;  %v3324_v20 = vpop.f32.mrb[31].mxu1  ;;  %v8757_v15 = vadd.f32 %v3322_v9, %v10377_v52 }
 0x871   :  { %v8073_v19 = vmul.f32 -1.442695, %v8724_v6  ;;  %v8726_v47 = vadd.f32 %v3281_v30, %v10362_v16  ;;  %v8075_v36 = vmul.f32 -1.442695, %v8756_v25  ;;  %v8758_v10 = vadd.f32 %v3324_v20, %v10373_v32 }
 0x872   :  { %9509 = vpow2.f32 %v8071_v34  ;;  %v8072_v27 = vmul.f32 -1.442695, %v8725_v17 }
 0x873   :  { %9511 = vpow2.f32 %v8073_v19  ;;  %v8074_v22 = vmul.f32 -1.442695, %v8726_v47  ;;  %v8076_v16 = vmul.f32 -1.442695, %v8758_v10 }
 0x874   :  { %9513 = vpow2.f32 %v8072_v27 }
 0x875   :  { %9515 = vpow2.f32 %v8074_v22 }
 0x876   :  { %9517 = vtanh.f32 %v8755_v18 }
 0x877   :  { %9519 = vpow2.f32 %v8075_v36 }
 0x878   :  { %9521 = vtanh.f32 %v8757_v15 }
 0x87c   :  { %v9510_v23 = vpop.eup %9509 }
 0x87d   :  { %v9512_v49 = vpop.eup %9511  ;;  %v3341_v37 = vadd.f32 1.0, %v9510_v23 }
 0x87e   :  { %v3353_v43 = vadd.f32 1.0, %v9512_v49  ;;  %v9514_v33 = vpop.eup %9513 }
 0x87f   :  { %9523 = vrcp.f32 %v3341_v37  ;;  %v3342_v61 = vadd.f32 1.0, %v9514_v33  ;;  %v9516_v6 = vpop.eup %9515 }
 0x880   :  { %9525 = vrcp.f32 %v3353_v43  ;;  %v3354_v35 = vadd.f32 1.0, %v9516_v6  ;;  %v9518_v32 = vpop.eup %9517 }
 0x881   :  { %9527 = vpow2.f32 %v8076_v16  ;;  %v9520_v8 = vpop.eup %9519 }
 0x882   :  { %9529 = vrcp.f32 %v3342_v61  ;;  %v9522_v52 = vpop.eup %9521  ;;  %v3367_v30 = vadd.f32 1.0, %v9520_v8 }
 0x883   :  { %9531 = vrcp.f32 %v3354_v35 }
 0x884   :  { %9533 = vrcp.f32 %v3367_v30 }
 0x889   :  { %v9524_v9 = vpop.eup %9523 }
 0x88a   :  { %v9526_v34 = vpop.eup %9525  ;;  %v3375_v17 = vmul.f32 %v9524_v9, %v9518_v32 }
 0x88b   :  { %v9528_v20 = vpop.eup %9527  ;;  %v3373_v19 = vmul.f32 %v9526_v34, %v10878_v1  ;;  %v3425_v1 = vld [vmem:[%s12340_s6] sm:$0xf] }
 0x88c   :  { %v9530_v47 = vpop.eup %9529  ;;  %v3368_v18 = vadd.f32 1.0, %v9528_v20  ;;  %v11258_v61 = vrot.slane %v3425_v1, %v10356_v14 }
 0x88d   :  { %v3376_v27 = vmul.f32 %v9530_v47, %v9522_v52  ;;  %v3377_v22 = vadd.f32 %v3375_v17, %v3373_v19  ;;  %v9532_v25 = vpop.eup %9531 }
 0x88e   :  { %v3374_v36 = vmul.f32 %v9532_v25, %v10882_v56  ;;  %v9534_v15 = vpop.eup %9533  ;;  %v11255_v56 = vrot.slane %v3425_v1, %v10350_v12 }
 0x88f   :  { %9535 = vtanh.f32 %v3377_v22 }
 0x890   :  { %v3378_v10 = vadd.f32 %v3376_v27, %v3374_v36  ;;  %9537 = vrcp.f32 %v3368_v18  ;;  %v12373_v27 = vsub.s32 3, %v10347_v11 }
 0x892   :  { %9539 = vtanh.f32 %v3378_v10  ;;  %v11265_v22 = vrot.slane %v3425_v1, %v12373_v27  ;;  %v12374_v10 = vld [vmem:[#allocation7_spill] sm:$0xff] }
 0x899   :  { %v9536_v23 = vpop.eup %9535 }
 0x89a   :  { %v3381_v49 = vmul.f32 %v9536_v23, %v9534_v15  ;;  %v9538_v37 = vpop.eup %9537  ;;  %v11269_v15 = vrot.slane %v3425_v1, %v12374_v10 }
 0x89c   :  { %v9540_v16 = vpop.eup %9539 }
 0x89d   :  { %v3382_v43 = vmul.f32 %v9540_v16, %v9538_v37 }
 0x89f   :  { %v3383_v33 = vpack.c.bf16 %v3382_v43, %v3381_v49 }
 0x8a1   :  { %3710 = vmatmul.mubr.bf16.gmra.mrb[60].mxu0 %v3383_v33  ;;  %3823 = vmatmul.mubr.bf16.gmra.mrb[60].mxu1 %v3383_v33 }
 0x8a2   :  { %4129 = vmatprep.mubr.bf16.mxu0 %v12372_v41  ;;  %4172 = vmatprep.mubr.bf16.mxu1 %v12372_v41 }
 0x8a9   :  { %4130 = vmatmul.mubr.bf16.vlgmr.msra.gmra.mrb[32].mxu0 %v12372_v41  ;;  %4173 = vmatmul.mubr.bf16.vlgmr.msra.gmra.mrb[32].mxu1 %v12372_v41 }
 0x8aa   :  { %4442 = vmatpush1.bf16.msra.mxu0 %v10989_v38  ;;  %4485 = vmatpush1.bf16.msra.mxu1 %v11029_v31 }
 0x8ab   :  { %4443 = vmatprep.subr.bf16.mxu0 %v11036_v50  ;;  %4486 = vmatprep.subr.bf16.mxu1 %v11041_v48 }
 0x8ac   :  { %4473 = vmatprep.mubr.bf16.mxu0 %v12372_v41  ;;  %4516 = vmatprep.mubr.bf16.mxu1 %v12372_v41 }
 0x8ae   :  { %4444 = vmatpush1.bf16.msra.mxu0 %v11046_v40  ;;  %4487 = vmatpush1.bf16.msra.mxu1 %v11057_v39 }
 0x8af   :  { %4445 = vmatprep.subr.bf16.mxu0 %v11051_v42  ;;  %4488 = vmatprep.subr.bf16.mxu1 %v11069_v24 }
 0x8b2   :  { %4446 = vmatpush1.bf16.msra.mxu0 %v11064_v44  ;;  %4489 = vmatpush1.bf16.msra.mxu1 %v11081_v45 }
 0x8b3   :  { %4447 = vmatprep.subr.bf16.mxu0 %v11075_v13  ;;  %4490 = vmatprep.subr.bf16.mxu1 %v11087_v29 }
 0x8b6   :  { %4448 = vmatpush1.bf16.msra.mxu0 %v11093_v51  ;;  %4491 = vmatpush1.bf16.msra.mxu1 %v11105_v54 }
 0x8b7   :  { %4449 = vmatprep.subr.bf16.mxu0 %v11099_v53  ;;  %4492 = vmatprep.subr.bf16.mxu1 %v11111_v58 }
 0x8ba   :  { %4450 = vmatpush1.bf16.msra.mxu0 %v11117_v55  ;;  %4493 = vmatpush1.bf16.msra.mxu1 %v11129_v57 }
 0x8bb   :  { %4451 = vmatprep.subr.bf16.mxu0 %v11123_v7  ;;  %4494 = vmatprep.subr.bf16.mxu1 %v11135_v59 }
 0x8be   :  { %4452 = vmatpush1.bf16.msra.mxu0 %v11141_v60  ;;  %4495 = vmatpush1.bf16.msra.mxu1 %v11153_v46 }
 0x8bf   :  { %4453 = vmatprep.subr.bf16.mxu0 %v11147_v62  ;;  %4496 = vmatprep.subr.bf16.mxu1 %v11177_v3 }
 0x8c2   :  { %4454 = vmatpush1.bf16.msra.mxu0 %v11160_v63  ;;  %4497 = vmatpush1.bf16.msra.mxu1 %v11172_v2 }
 0x8c3   :  { %4455 = vmatprep.subr.bf16.mxu0 %v11167_v0  ;;  %4498 = vmatprep.subr.bf16.mxu1 %v11182_v4 }
 0x8c6   :  { %4456 = vmatpush1.bf16.msra.mxu0 %v11188_v5  ;;  %4499 = vmatpush1.bf16.msra.mxu1 %v11196_v21 }
 0x8c7   :  { %4785 = vmatprep.subr.bf16.mxu0 %v10984_v26  ;;  %4828 = vmatprep.subr.bf16.mxu1 %v11024_v28 }
 0x97c   :  { %v4131_v6 = vpop.f32.mrb[32].mxu0  ;;  %v4174_v35 = vpop.f32.mrb[32].mxu1 }
 0x97d   :  { %v8759_v32 = vadd.f32 %v4131_v6, %v11255_v56  ;;  %v4133_v8 = vpop.f32.mrb[33].mxu0  ;;  %v4176_v52 = vpop.f32.mrb[33].mxu1  ;;  %v8791_v49 = vadd.f32 %v4174_v35, %v11269_v15 }
 0x97e   :  { %v8760_v26 = vadd.f32 %v4133_v8, %v11258_v61  ;;  %v4135_v9 = vpop.f32.mrb[34].mxu0  ;;  %v4178_v34 = vpop.f32.mrb[34].mxu1  ;;  %v8792_v23 = vadd.f32 %v4176_v52, %v11265_v22 }
 0x97f   :  { %v8141_v17 = vmul.f32 -1.442695, %v8759_v32  ;;  %v8761_v30 = vadd.f32 %v4135_v9, %v11255_v56  ;;  %v4137_v20 = vpop.f32.mrb[35].mxu0  ;;  %v4180_v19 = vpop.f32.mrb[35].mxu1  ;;  %v8793_v16 = vadd.f32 %v4178_v34, %v11269_v15 }
 0x980   :  { %v8143_v47 = vmul.f32 -1.442695, %v8760_v26  ;;  %v8762_v25 = vadd.f32 %v4137_v20, %v11258_v61  ;;  %v8145_v37 = vmul.f32 -1.442695, %v8792_v23  ;;  %v8794_v11 = vadd.f32 %v4180_v19, %v11265_v22 }
 0x981   :  { %9541 = vpow2.f32 %v8141_v17  ;;  %v8142_v18 = vmul.f32 -1.442695, %v8761_v30 }
 0x982   :  { %9543 = vpow2.f32 %v8143_v47  ;;  %v8144_v36 = vmul.f32 -1.442695, %v8762_v25  ;;  %v8146_v32 = vmul.f32 -1.442695, %v8794_v11 }
 0x983   :  { %9545 = vpow2.f32 %v8142_v18 }
 0x984   :  { %9547 = vpow2.f32 %v8144_v36 }
 0x985   :  { %9549 = vtanh.f32 %v8791_v49 }
 0x986   :  { %9551 = vpow2.f32 %v8145_v37 }
 0x987   :  { %9553 = vtanh.f32 %v8793_v16 }
 0x98b   :  { %v9542_v43 = vpop.eup %9541 }
 0x98c   :  { %v9544_v33 = vpop.eup %9543  ;;  %v4197_v6 = vadd.f32 1.0, %v9542_v43 }
 0x98d   :  { %v4209_v8 = vadd.f32 1.0, %v9544_v33  ;;  %v9546_v1 = vpop.eup %9545 }
 0x98e   :  { %9555 = vrcp.f32 %v4197_v6  ;;  %v4198_v52 = vadd.f32 1.0, %v9546_v1  ;;  %v9548_v26 = vpop.eup %9547 }
 0x98f   :  { %9557 = vrcp.f32 %v4209_v8  ;;  %v4210_v35 = vadd.f32 1.0, %v9548_v26  ;;  %v9550_v9 = vpop.eup %9549 }
 0x990   :  { %9559 = vpow2.f32 %v8146_v32  ;;  %v9552_v17 = vpop.eup %9551 }
 0x991   :  { %9561 = vrcp.f32 %v4198_v52  ;;  %v9554_v34 = vpop.eup %9553  ;;  %v4223_v18 = vadd.f32 1.0, %v9552_v17 }
 0x992   :  { %9563 = vrcp.f32 %v4210_v35 }
 0x993   :  { %9565 = vrcp.f32 %v4223_v18 }
 0x998   :  { %v9556_v30 = vpop.eup %9555 }
 0x999   :  { %v9558_v20 = vpop.eup %9557  ;;  %v4231_v19 = vmul.f32 %v9556_v30, %v9550_v9 }
 0x99a   :  { %v9560_v47 = vpop.eup %9559  ;;  %v4229_v27 = vmul.f32 0.0, %v9558_v20 }
 0x99b   :  { %v9562_v25 = vpop.eup %9561  ;;  %v4224_v37 = vadd.f32 1.0, %v9560_v47 }
 0x99c   :  { %v11275_v36 = vadd.f32 %v4231_v19, %v4229_v27  ;;  %v4232_v23 = vmul.f32 %v9562_v25, %v9554_v34  ;;  %v9564_v49 = vpop.eup %9563 }
 0x99d   :  { %v4230_v11 = vmul.f32 0.0, %v9564_v49  ;;  %v9566_v43 = vpop.eup %9565 }
 0x99e   :  { %9567 = vtanh.f32 %v11275_v36 }
 0x99f   :  { %v11278_v16 = vadd.f32 %v4232_v23, %v4230_v11  ;;  %9569 = vrcp.f32 %v4224_v37 }
 0x9a1   :  { %9571 = vtanh.f32 %v11278_v16 }
 0x9a8   :  { %v9568_v33 = vpop.eup %9567 }
 0x9a9   :  { %v9570_v6 = vpop.eup %9569  ;;  %v4237_v8 = vmul.f32 %v9568_v33, %v9566_v43 }
 0x9ab   :  { %v9572_v32 = vpop.eup %9571 }
 0x9ac   :  { %v4238_v1 = vmul.f32 %v9572_v32, %v9570_v6 }
 0x9ae   :  { %v11281_v52 = vpack.c.bf16 %v4238_v1, %v4237_v8 }
 0x9b0   :  { %4474 = vmatmul.mubr.bf16.vlgmr.msra.gmra.mrb[36].mxu0 %v11281_v52  ;;  %4517 = vmatmul.mubr.bf16.vlgmr.msra.gmra.mrb[36].mxu1 %v11281_v52 }
 0x9b1   :  { %4786 = vmatpush1.bf16.msra.mxu0 %v10989_v38  ;;  %4829 = vmatpush1.bf16.msra.mxu1 %v11029_v31 }
 0x9b2   :  { %4787 = vmatprep.subr.bf16.mxu0 %v11036_v50  ;;  %4830 = vmatprep.subr.bf16.mxu1 %v11041_v48 }
 0x9b3   :  { %4817 = vmatprep.mubr.bf16.mxu0 %v12372_v41  ;;  %4860 = vmatprep.mubr.bf16.mxu1 %v12372_v41 }
 0x9b5   :  { %4788 = vmatpush1.bf16.msra.mxu0 %v11046_v40  ;;  %4831 = vmatpush1.bf16.msra.mxu1 %v11057_v39 }
 0x9b6   :  { %4789 = vmatprep.subr.bf16.mxu0 %v11051_v42  ;;  %4832 = vmatprep.subr.bf16.mxu1 %v11069_v24 }
 0x9b9   :  { %4790 = vmatpush1.bf16.msra.mxu0 %v11064_v44  ;;  %4833 = vmatpush1.bf16.msra.mxu1 %v11081_v45 }
 0x9ba   :  { %4791 = vmatprep.subr.bf16.mxu0 %v11075_v13  ;;  %4834 = vmatprep.subr.bf16.mxu1 %v11087_v29 }
 0x9bd   :  { %4792 = vmatpush1.bf16.msra.mxu0 %v11093_v51  ;;  %4835 = vmatpush1.bf16.msra.mxu1 %v11105_v54 }
 0x9be   :  { %4793 = vmatprep.subr.bf16.mxu0 %v11099_v53  ;;  %4836 = vmatprep.subr.bf16.mxu1 %v11111_v58 }
 0x9c1   :  { %4794 = vmatpush1.bf16.msra.mxu0 %v11117_v55  ;;  %4837 = vmatpush1.bf16.msra.mxu1 %v11129_v57 }
 0x9c2   :  { %4795 = vmatprep.subr.bf16.mxu0 %v11123_v7  ;;  %4838 = vmatprep.subr.bf16.mxu1 %v11135_v59 }
 0x9c5   :  { %4796 = vmatpush1.bf16.msra.mxu0 %v11141_v60  ;;  %4839 = vmatpush1.bf16.msra.mxu1 %v11153_v46 }
 0x9c6   :  { %4797 = vmatprep.subr.bf16.mxu0 %v11147_v62  ;;  %4840 = vmatprep.subr.bf16.mxu1 %v11177_v3 }
 0x9c9   :  { %4798 = vmatpush1.bf16.msra.mxu0 %v11160_v63  ;;  %4841 = vmatpush1.bf16.msra.mxu1 %v11172_v2 }
 0x9ca   :  { %4799 = vmatprep.subr.bf16.mxu0 %v11167_v0  ;;  %4842 = vmatprep.subr.bf16.mxu1 %v11182_v4 }
 0x9cd   :  { %4800 = vmatpush1.bf16.msra.mxu0 %v11188_v5  ;;  %4843 = vmatpush1.bf16.msra.mxu1 %v11196_v21 }
 0x9ce   :  { %5172 = vmatprep.subr.bf16.mxu1 %v11024_v28 }
 0xa83   :  { %v4475_v38 = vpop.f32.mrb[36].mxu0  ;;  %v4518_v26 = vpop.f32.mrb[36].mxu1 }
 0xa84   :  { %v8763_v35 = vadd.f32 %v4475_v38, %v11255_v56  ;;  %v4477_v9 = vpop.f32.mrb[37].mxu0  ;;  %v4520_v17 = vpop.f32.mrb[37].mxu1  ;;  %v8795_v11 = vadd.f32 %v4518_v26, %v11269_v15 }
 0xa85   :  { %v8764_v34 = vadd.f32 %v4477_v9, %v11258_v61  ;;  %v4479_v30 = vpop.f32.mrb[38].mxu0  ;;  %v4522_v20 = vpop.f32.mrb[38].mxu1  ;;  %v8796_v37 = vadd.f32 %v4520_v17, %v11265_v22 }
 0xa86   :  { %v8179_v19 = vmul.f32 -1.442695, %v8763_v35  ;;  %v8765_v47 = vadd.f32 %v4479_v30, %v11255_v56  ;;  %v4481_v27 = vpop.f32.mrb[39].mxu0  ;;  %v4524_v25 = vpop.f32.mrb[39].mxu1  ;;  %v8797_v6 = vadd.f32 %v4522_v20, %v11269_v15 }
 0xa87   :  { %v8181_v18 = vmul.f32 -1.442695, %v8764_v34  ;;  %v8766_v23 = vadd.f32 %v4481_v27, %v11258_v61  ;;  %v8183_v43 = vmul.f32 -1.442695, %v8796_v37  ;;  %v8798_v33 = vadd.f32 %v4524_v25, %v11265_v22 }
 0xa88   :  { %9573 = vpow2.f32 %v8179_v19  ;;  %v8180_v28 = vmul.f32 -1.442695, %v8765_v47 }
 0xa89   :  { %9575 = vpow2.f32 %v8181_v18  ;;  %v8182_v49 = vmul.f32 -1.442695, %v8766_v23  ;;  %v8184_v38 = vmul.f32 -1.442695, %v8798_v33 }
 0xa8a   :  { %9577 = vpow2.f32 %v8180_v28 }
 0xa8b   :  { %9579 = vpow2.f32 %v8182_v49 }
 0xa8c   :  { %9581 = vtanh.f32 %v8795_v11 }
 0xa8d   :  { %9583 = vpow2.f32 %v8183_v43 }
 0xa8e   :  { %9585 = vtanh.f32 %v8797_v6 }
 0xa92   :  { %v9574_v32 = vpop.eup %9573 }
 0xa93   :  { %v9576_v8 = vpop.eup %9575  ;;  %v4541_v1 = vadd.f32 1.0, %v9574_v32 }
 0xa94   :  { %v4553_v35 = vadd.f32 1.0, %v9576_v8  ;;  %v9578_v9 = vpop.eup %9577 }
 0xa95   :  { %9587 = vrcp.f32 %v4541_v1  ;;  %v4542_v17 = vadd.f32 1.0, %v9578_v9  ;;  %v9580_v34 = vpop.eup %9579 }
 0xa96   :  { %9589 = vrcp.f32 %v4553_v35  ;;  %v4554_v26 = vadd.f32 1.0, %v9580_v34  ;;  %v9582_v30 = vpop.eup %9581 }
 0xa97   :  { %9591 = vpow2.f32 %v8184_v38  ;;  %v9584_v19 = vpop.eup %9583 }
 0xa98   :  { %9593 = vrcp.f32 %v4542_v17  ;;  %v9586_v20 = vpop.eup %9585  ;;  %v4567_v49 = vadd.f32 1.0, %v9584_v19 }
 0xa99   :  { %9595 = vrcp.f32 %v4554_v26 }
 0xa9a   :  { %9597 = vrcp.f32 %v4567_v49 }
 0xa9f   :  { %v9588_v47 = vpop.eup %9587 }
 0xaa0   :  { %v9590_v27 = vpop.eup %9589  ;;  %v4575_v25 = vmul.f32 %v9588_v47, %v9582_v30 }
 0xaa1   :  { %v9592_v18 = vpop.eup %9591  ;;  %v4573_v23 = vmul.f32 %v9590_v27, %v11275_v36 }
 0xaa2   :  { %v9594_v28 = vpop.eup %9593  ;;  %v4568_v33 = vadd.f32 1.0, %v9592_v18 }
 0xaa3   :  { %v11327_v37 = vadd.f32 %v4575_v25, %v4573_v23  ;;  %v4576_v11 = vmul.f32 %v9594_v28, %v9586_v20  ;;  %v9596_v43 = vpop.eup %9595 }
 0xaa4   :  { %v4574_v6 = vmul.f32 %v9596_v43, %v11278_v16  ;;  %v9598_v8 = vpop.eup %9597 }
 0xaa5   :  { %9599 = vtanh.f32 %v11327_v37 }
 0xaa6   :  { %v11331_v32 = vadd.f32 %v4576_v11, %v4574_v6  ;;  %9601 = vrcp.f32 %v4568_v33 }
 0xaa8   :  { %9603 = vtanh.f32 %v11331_v32 }
 0xaaf   :  { %v9600_v1 = vpop.eup %9599 }
 0xab0   :  { %v9602_v36 = vpop.eup %9601  ;;  %v4581_v35 = vmul.f32 %v9600_v1, %v9598_v8 }
 0xab2   :  { %v9604_v38 = vpop.eup %9603 }
 0xab3   :  { %v4582_v9 = vmul.f32 %v9604_v38, %v9602_v36 }
 0xab5   :  { %v11334_v17 = vpack.c.bf16 %v4582_v9, %v4581_v35 }
 0xab7   :  { %4818 = vmatmul.mubr.bf16.vlgmr.msra.gmra.mrb[40].mxu0 %v11334_v17  ;;  %4861 = vmatmul.mubr.bf16.vlgmr.msra.gmra.mrb[40].mxu1 %v11334_v17 }
 0xab8   :  { %5173 = vmatpush1.bf16.msra.mxu1 %v11029_v31  ;;  %5161 = vmatprep.mubr.bf16.mxu0 %v12372_v41  ;;  %v11358_v31 = vld [vmem:[%s12339_s5 + $0x4] ss:$16 sps:$4 sm:$0xff]  }
 0xab9   :  { %5174 = vmatprep.subr.bf16.mxu1 %v11041_v48  ;;  %5204 = vmatprep.mubr.bf16.mxu1 %v12372_v41  ;;  %v11363_v48 = vld [vmem:[%s12339_s5] ss:$16 sps:$4 sm:$0xff]  }
 0xaba   :  { %5129 = vmatprep.subr.bf16.mxu0 %v11358_v31 }
 0xabb   :  { %5130 = vmatpush1.bf16.msra.mxu0 %v11363_v48 }
 0xabc   :  { %5175 = vmatpush1.bf16.msra.mxu1 %v11057_v39  ;;  %5131 = vmatprep.subr.bf16.mxu0 %v11036_v50 }
 0xabd   :  { %5176 = vmatprep.subr.bf16.mxu1 %v11069_v24 }
 0xabf   :  { %5132 = vmatpush1.bf16.msra.mxu0 %v11046_v40 }
 0xac0   :  { %5177 = vmatpush1.bf16.msra.mxu1 %v11081_v45  ;;  %5133 = vmatprep.subr.bf16.mxu0 %v11051_v42 }
 0xac1   :  { %5178 = vmatprep.subr.bf16.mxu1 %v11087_v29 }
 0xac3   :  { %5134 = vmatpush1.bf16.msra.mxu0 %v11064_v44 }
 0xac4   :  { %5179 = vmatpush1.bf16.msra.mxu1 %v11105_v54  ;;  %5135 = vmatprep.subr.bf16.mxu0 %v11075_v13 }
 0xac5   :  { %5180 = vmatprep.subr.bf16.mxu1 %v11111_v58 }
 0xac7   :  { %5136 = vmatpush1.bf16.msra.mxu0 %v11093_v51 }
 0xac8   :  { %5181 = vmatpush1.bf16.msra.mxu1 %v11129_v57  ;;  %5137 = vmatprep.subr.bf16.mxu0 %v11099_v53 }
 0xac9   :  { %5182 = vmatprep.subr.bf16.mxu1 %v11135_v59 }
 0xacb   :  { %5138 = vmatpush1.bf16.msra.mxu0 %v11117_v55 }
 0xacc   :  { %5183 = vmatpush1.bf16.msra.mxu1 %v11153_v46  ;;  %5139 = vmatprep.subr.bf16.mxu0 %v11123_v7 }
 0xacd   :  { %5184 = vmatprep.subr.bf16.mxu1 %v11177_v3 }
 0xacf   :  { %5140 = vmatpush1.bf16.msra.mxu0 %v11141_v60 }
 0xad0   :  { %5185 = vmatpush1.bf16.msra.mxu1 %v11172_v2  ;;  %5141 = vmatprep.subr.bf16.mxu0 %v11147_v62 }
 0xad1   :  { %5186 = vmatprep.subr.bf16.mxu1 %v11182_v4 }
 0xad3   :  { %5142 = vmatpush1.bf16.msra.mxu0 %v11160_v63 }
 0xad4   :  { %5187 = vmatpush1.bf16.msra.mxu1 %v11196_v21  ;;  %5143 = vmatprep.subr.bf16.mxu0 %v11167_v0 }
 0xad7   :  { %5144 = vmatpush1.bf16.msra.mxu0 %v11188_v5 }
 0xad8   :  { %5473 = vmatprep.subr.bf16.mxu0 %v11358_v31 }
 0xb8a   :  { %v4819_v50 = vpop.f32.mrb[40].mxu0  ;;  %v4862_v40 = vpop.f32.mrb[40].mxu1 }
 0xb8b   :  { %v8767_v42 = vadd.f32 %v4819_v50, %v11255_v56  ;;  %v4821_v39 = vpop.f32.mrb[41].mxu0  ;;  %v4864_v44 = vpop.f32.mrb[41].mxu1  ;;  %v8799_v60 = vadd.f32 %v4862_v40, %v11269_v15 }
 0xb8c   :  { %v8768_v24 = vadd.f32 %v4821_v39, %v11258_v61  ;;  %v4823_v13 = vpop.f32.mrb[42].mxu0  ;;  %v4866_v45 = vpop.f32.mrb[42].mxu1  ;;  %v8800_v59 = vadd.f32 %v4864_v44, %v11265_v22  ;;  %v11420_v39 = vld [vmem:[%s12339_s5 + $0x24] ss:$16 sps:$4 sm:$0xff]   ;;  %v11425_v44 = vld [vmem:[%s12339_s5 + $0x2c] ss:$16 sps:$4 sm:$0xff]  }
 0xb8d   :  { %v8217_v29 = vmul.f32 -1.442695, %v8767_v42  ;;  %v8769_v51 = vadd.f32 %v4823_v13, %v11255_v56  ;;  %v4825_v53 = vpop.f32.mrb[43].mxu0  ;;  %v4868_v54 = vpop.f32.mrb[43].mxu1  ;;  %v8801_v63 = vadd.f32 %v4866_v45, %v11269_v15  ;;  %v11413_v42 = vld [vmem:[%s12339_s5 + $0x8] ss:$16 sps:$4 sm:$0xff]  }
 0xb8e   :  { %v8219_v58 = vmul.f32 -1.442695, %v8768_v24  ;;  %v8770_v55 = vadd.f32 %v4825_v53, %v11258_v61  ;;  %v8221_v62 = vmul.f32 -1.442695, %v8800_v59  ;;  %v8802_v46 = vadd.f32 %v4868_v54, %v11265_v22  ;;  %v11430_v24 = vld [vmem:[%s12339_s5 + $0x20] ss:$16 sps:$4 sm:$0xff]  }
 0xb8f   :  { %9605 = vpow2.f32 %v8217_v29  ;;  %v8218_v7 = vmul.f32 -1.442695, %v8769_v51  ;;  %v11435_v13 = vld [vmem:[%s12339_s5 + $0x28] ss:$16 sps:$4 sm:$0xff]   ;;  %v11444_v45 = vld [vmem:[%s12339_s5 + $0x44] ss:$16 sps:$4 sm:$0xff]  }
 0xb90   :  { %9607 = vpow2.f32 %v8219_v58  ;;  %v8220_v57 = vmul.f32 -1.442695, %v8770_v55  ;;  %v8222_v4 = vmul.f32 -1.442695, %v8802_v46  ;;  %v11449_v29 = vld [vmem:[%s12339_s5 + $0x4c] ss:$16 sps:$4 sm:$0xff]  }
 0xb91   :  { %9609 = vpow2.f32 %v8218_v7  ;;  %v11454_v51 = vld [vmem:[%s12339_s5 + $0x40] ss:$16 sps:$4 sm:$0xff]   ;;  %v11459_v53 = vld [vmem:[%s12339_s5 + $0x48] ss:$16 sps:$4 sm:$0xff]   ;;  %v11468_v54 = vld [vmem:[%s12339_s5 + $0x64] ss:$16 sps:$4 sm:$0xff]  }
 0xb92   :  { %9611 = vpow2.f32 %v8220_v57  ;;  %v11473_v58 = vld [vmem:[%s12339_s5 + $0x6c] ss:$16 sps:$4 sm:$0xff]   ;;  %v11478_v55 = vld [vmem:[%s12339_s5 + $0x60] ss:$16 sps:$4 sm:$0xff]   ;;  %v11483_v7 = vld [vmem:[%s12339_s5 + $0x68] ss:$16 sps:$4 sm:$0xff]  }
 0xb93   :  { %9613 = vtanh.f32 %v8799_v60  ;;  %v11492_v57 = vld [vmem:[%s12339_s5 + $0x84] ss:$16 sps:$4 sm:$0xff]   ;;  %v11497_v59 = vld [vmem:[%s12339_s5 + $0x8c] ss:$16 sps:$4 sm:$0xff]   ;;  %v11502_v60 = vld [vmem:[%s12339_s5 + $0x80] ss:$16 sps:$4 sm:$0xff]  }
 0xb94   :  { %9615 = vpow2.f32 %v8221_v62  ;;  %v11507_v62 = vld [vmem:[%s12339_s5 + $0x88] ss:$16 sps:$4 sm:$0xff]   ;;  %v11514_v46 = vld [vmem:[%s12339_s5 + $0xa4] ss:$16 sps:$4 sm:$0xff]  }
 0xb95   :  { %9617 = vtanh.f32 %v8801_v63  ;;  %v11519_v63 = vld [vmem:[%s12339_s5 + $0xac] ss:$16 sps:$4 sm:$0xff]  }
 0xb99   :  { %v9606_v0 = vpop.eup %9605 }
 0xb9a   :  { %v9608_v2 = vpop.eup %9607  ;;  %v4885_v3 = vadd.f32 1.0, %v9606_v0  ;;  %v11526_v0 = vld [vmem:[%s12339_s5 + $0xa0] ss:$16 sps:$4 sm:$0xff]  }
 0xb9b   :  { %v4897_v5 = vadd.f32 1.0, %v9608_v2  ;;  %v9610_v21 = vpop.eup %9609  ;;  %v11531_v2 = vld [vmem:[%s12339_s5 + $0xa8] ss:$16 sps:$4 sm:$0xff]  }
 0xb9c   :  { %9619 = vrcp.f32 %v4885_v3  ;;  %v4886_v16 = vadd.f32 1.0, %v9610_v21  ;;  %v9612_v34 = vpop.eup %9611  ;;  %v11538_v3 = vld [vmem:[%s12339_s5 + $0xc4] ss:$16 sps:$4 sm:$0xff]   ;;  %v11555_v21 = vld [vmem:[%s12339_s5 + $0xc8] ss:$16 sps:$4 sm:$0xff]  }
 0xb9d   :  { %9621 = vrcp.f32 %v4897_v5  ;;  %v4898_v26 = vadd.f32 1.0, %v9612_v34  ;;  %v9614_v30 = vpop.eup %9613  ;;  %v11550_v5 = vld [vmem:[%s12339_s5 + $0xc0] ss:$16 sps:$4 sm:$0xff]   ;;  %v11567_v34 = vld [vmem:[%s12339_s5 + $0xec] ss:$16 sps:$4 sm:$0xff]  }
 0xb9e   :  { %9623 = vpow2.f32 %v8222_v4  ;;  %v9616_v19 = vpop.eup %9615  ;;  %v11543_v4 = vld [vmem:[%s12339_s5 + $0xcc] ss:$16 sps:$4 sm:$0xff]  }
 0xb9f   :  { %9625 = vrcp.f32 %v4886_v16  ;;  %v9618_v20 = vpop.eup %9617  ;;  %v4911_v49 = vadd.f32 1.0, %v9616_v19  ;;  %v11562_v16 = vld [vmem:[%s12339_s5 + $0xe4] ss:$16 sps:$4 sm:$0xff]  }
 0xba0   :  { %9627 = vrcp.f32 %v4898_v26  ;;  %v11574_v26 = vld [vmem:[%s12339_s5 + $0xe0] ss:$16 sps:$4 sm:$0xff]  }
 0xba1   :  { %9629 = vrcp.f32 %v4911_v49 }
 0xba6   :  { %v9620_v47 = vpop.eup %9619 }
 0xba7   :  { %v9622_v27 = vpop.eup %9621  ;;  %v4919_v25 = vmul.f32 %v9620_v47, %v9614_v30  ;;  %v11579_v30 = vld [vmem:[%s12339_s5 + $0xe8] ss:$16 sps:$4 sm:$0xff]  }
 0xba8   :  { %v9624_v18 = vpop.eup %9623  ;;  %v4917_v23 = vmul.f32 %v9622_v27, %v11327_v37 }
 0xba9   :  { %v9626_v28 = vpop.eup %9625  ;;  %v4912_v6 = vadd.f32 1.0, %v9624_v18 }
 0xbaa   :  { %v11391_v11 = vadd.f32 %v4919_v25, %v4917_v23  ;;  %v4920_v43 = vmul.f32 %v9626_v28, %v9618_v20  ;;  %v9628_v33 = vpop.eup %9627 }
 0xbab   :  { %v4918_v8 = vmul.f32 %v9628_v33, %v11331_v32  ;;  %v9630_v36 = vpop.eup %9629  ;;  %v11408_v32 = vld [vmem:[%s12339_s5 + $0xc] ss:$16 sps:$4 sm:$0xff]  }
 0xbac   :  { %9631 = vtanh.f32 %v11391_v11  ;;  %5516 = vmatprep.subr.bf16.mxu1 %v11408_v32 }
 0xbad   :  { %v11395_v1 = vadd.f32 %v4920_v43, %v4918_v8  ;;  %9633 = vrcp.f32 %v4912_v6 }
 0xbaf   :  { %9635 = vtanh.f32 %v11395_v1 }
 0xbb6   :  { %v9632_v38 = vpop.eup %9631 }
 0xbb7   :  { %v9634_v37 = vpop.eup %9633  ;;  %v4925_v9 = vmul.f32 %v9632_v38, %v9630_v36 }
 0xbb9   :  { %v9636_v35 = vpop.eup %9635 }
 0xbba   :  { %v4926_v50 = vmul.f32 %v9636_v35, %v9634_v37 }
 0xbbc   :  { %v11398_v40 = vpack.c.bf16 %v4926_v50, %v4925_v9 }
 0xbbe   :  { %5162 = vmatmul.mubr.bf16.vlgmr.msra.gmra.mrb[44].mxu0 %v11398_v40  ;;  %5205 = vmatmul.mubr.bf16.vlgmr.msra.gmra.mrb[44].mxu1 %v11398_v40 }
 0xbbf   :  { %5474 = vmatpush1.bf16.msra.mxu0 %v11363_v48  ;;  %5505 = vmatprep.mubr.bf16.mxu0 %v12372_v41 }
 0xbc0   :  { %5548 = vmatprep.mubr.bf16.mxu1 %v12372_v41  ;;  %5517 = vmatpush1.bf16.msra.mxu1 %v11413_v42 }
 0xbc1   :  { %5475 = vmatprep.subr.bf16.mxu0 %v11420_v39  ;;  %5518 = vmatprep.subr.bf16.mxu1 %v11425_v44 }
 0xbc3   :  { %5476 = vmatpush1.bf16.msra.mxu0 %v11430_v24 }
 0xbc4   :  { %5519 = vmatpush1.bf16.msra.mxu1 %v11435_v13  ;;  %5477 = vmatprep.subr.bf16.mxu0 %v11444_v45 }
 0xbc5   :  { %5520 = vmatprep.subr.bf16.mxu1 %v11449_v29 }
 0xbc7   :  { %5478 = vmatpush1.bf16.msra.mxu0 %v11454_v51 }
 0xbc8   :  { %5521 = vmatpush1.bf16.msra.mxu1 %v11459_v53  ;;  %5479 = vmatprep.subr.bf16.mxu0 %v11468_v54 }
 0xbc9   :  { %5522 = vmatprep.subr.bf16.mxu1 %v11473_v58 }
 0xbcb   :  { %5480 = vmatpush1.bf16.msra.mxu0 %v11478_v55 }
 0xbcc   :  { %5523 = vmatpush1.bf16.msra.mxu1 %v11483_v7  ;;  %5481 = vmatprep.subr.bf16.mxu0 %v11492_v57 }
 0xbcd   :  { %5524 = vmatprep.subr.bf16.mxu1 %v11497_v59 }
 0xbcf   :  { %5482 = vmatpush1.bf16.msra.mxu0 %v11502_v60 }
 0xbd0   :  { %5525 = vmatpush1.bf16.msra.mxu1 %v11507_v62  ;;  %5483 = vmatprep.subr.bf16.mxu0 %v11514_v46 }
 0xbd1   :  { %5526 = vmatprep.subr.bf16.mxu1 %v11519_v63 }
 0xbd3   :  { %5484 = vmatpush1.bf16.msra.mxu0 %v11526_v0 }
 0xbd4   :  { %5527 = vmatpush1.bf16.msra.mxu1 %v11531_v2  ;;  %5485 = vmatprep.subr.bf16.mxu0 %v11538_v3 }
 0xbd5   :  { %5528 = vmatprep.subr.bf16.mxu1 %v11543_v4 }
 0xbd7   :  { %5486 = vmatpush1.bf16.msra.mxu0 %v11550_v5 }
 0xbd8   :  { %5529 = vmatpush1.bf16.msra.mxu1 %v11555_v21  ;;  %5487 = vmatprep.subr.bf16.mxu0 %v11562_v16 }
 0xbd9   :  { %5530 = vmatprep.subr.bf16.mxu1 %v11567_v34 }
 0xbdb   :  { %5488 = vmatpush1.bf16.msra.mxu0 %v11574_v26 }
 0xbdc   :  { %5531 = vmatpush1.bf16.msra.mxu1 %v11579_v30  ;;  %5817 = vmatprep.subr.bf16.mxu0 %v11358_v31 }
 0xbdd   :  { %5860 = vmatprep.subr.bf16.mxu1 %v11408_v32 }
 0xc91   :  { %v5163_v19 = vpop.f32.mrb[44].mxu0  ;;  %v5206_v20 = vpop.f32.mrb[44].mxu1 }
 0xc92   :  { %v8771_v47 = vadd.f32 %v5163_v19, %v11255_v56  ;;  %v5165_v27 = vpop.f32.mrb[45].mxu0  ;;  %v5208_v25 = vpop.f32.mrb[45].mxu1  ;;  %v8803_v9 = vadd.f32 %v5206_v20, %v11269_v15 }
 0xc93   :  { %v8772_v18 = vadd.f32 %v5165_v27, %v11258_v61  ;;  %v5167_v23 = vpop.f32.mrb[46].mxu0  ;;  %v5210_v28 = vpop.f32.mrb[46].mxu1  ;;  %v8804_v35 = vadd.f32 %v5208_v25, %v11265_v22 }
 0xc94   :  { %v8255_v49 = vmul.f32 -1.442695, %v8771_v47  ;;  %v8773_v43 = vadd.f32 %v5167_v23, %v11255_v56  ;;  %v5169_v33 = vpop.f32.mrb[47].mxu0  ;;  %v5212_v6 = vpop.f32.mrb[47].mxu1  ;;  %v8805_v47 = vadd.f32 %v5210_v28, %v11269_v15 }
 0xc95   :  { %v8257_v8 = vmul.f32 -1.442695, %v8772_v18  ;;  %v8774_v36 = vadd.f32 %v5169_v33, %v11258_v61  ;;  %v8259_v50 = vmul.f32 -1.442695, %v8804_v35  ;;  %v8806_v19 = vadd.f32 %v5212_v6, %v11265_v22 }
 0xc96   :  { %9637 = vpow2.f32 %v8255_v49  ;;  %v8256_v38 = vmul.f32 -1.442695, %v8773_v43 }
 0xc97   :  { %9639 = vpow2.f32 %v8257_v8  ;;  %v8258_v37 = vmul.f32 -1.442695, %v8774_v36  ;;  %v8260_v49 = vmul.f32 -1.442695, %v8806_v19 }
 0xc98   :  { %9641 = vpow2.f32 %v8256_v38 }
 0xc99   :  { %9643 = vpow2.f32 %v8258_v37 }
 0xc9a   :  { %9645 = vtanh.f32 %v8803_v9 }
 0xc9b   :  { %9647 = vpow2.f32 %v8259_v50 }
 0xc9c   :  { %9649 = vtanh.f32 %v8805_v47 }
 0xca0   :  { %v9638_v27 = vpop.eup %9637 }
 0xca1   :  { %v9640_v18 = vpop.eup %9639  ;;  %v5229_v23 = vadd.f32 1.0, %v9638_v27 }
 0xca2   :  { %v5241_v43 = vadd.f32 1.0, %v9640_v18  ;;  %v9642_v33 = vpop.eup %9641 }
 0xca3   :  { %9651 = vrcp.f32 %v5229_v23  ;;  %v5230_v25 = vadd.f32 1.0, %v9642_v33  ;;  %v9644_v8 = vpop.eup %9643 }
 0xca4   :  { %9653 = vrcp.f32 %v5241_v43  ;;  %v5242_v20 = vadd.f32 1.0, %v9644_v8  ;;  %v9646_v6 = vpop.eup %9645 }
 0xca5   :  { %9655 = vpow2.f32 %v8260_v49  ;;  %v9648_v36 = vpop.eup %9647 }
 0xca6   :  { %9657 = vrcp.f32 %v5230_v25  ;;  %v9650_v28 = vpop.eup %9649  ;;  %v5255_v47 = vadd.f32 1.0, %v9648_v36 }
 0xca7   :  { %9659 = vrcp.f32 %v5242_v20 }
 0xca8   :  { %9661 = vrcp.f32 %v5255_v47 }
 0xcad   :  { %v9652_v38 = vpop.eup %9651 }
 0xcae   :  { %v9654_v37 = vpop.eup %9653  ;;  %v5263_v35 = vmul.f32 %v9652_v38, %v9646_v6 }
 0xcaf   :  { %v9656_v9 = vpop.eup %9655  ;;  %v5261_v50 = vmul.f32 %v9654_v37, %v11391_v11 }
 0xcb0   :  { %v9658_v19 = vpop.eup %9657  ;;  %v5256_v43 = vadd.f32 1.0, %v9656_v9 }
 0xcb1   :  { %v11596_v27 = vadd.f32 %v5263_v35, %v5261_v50  ;;  %v5264_v18 = vmul.f32 %v9658_v19, %v9650_v28  ;;  %v9660_v23 = vpop.eup %9659 }
 0xcb2   :  { %v5262_v49 = vmul.f32 %v9660_v23, %v11395_v1  ;;  %v9662_v25 = vpop.eup %9661 }
 0xcb3   :  { %9663 = vtanh.f32 %v11596_v27 }
 0xcb4   :  { %v11600_v33 = vadd.f32 %v5264_v18, %v5262_v49  ;;  %9665 = vrcp.f32 %v5256_v43 }
 0xcb6   :  { %9667 = vtanh.f32 %v11600_v33 }
 0xcbd   :  { %v9664_v8 = vpop.eup %9663 }
 0xcbe   :  { %v9666_v11 = vpop.eup %9665  ;;  %v5269_v6 = vmul.f32 %v9664_v8, %v9662_v25 }
 0xcc0   :  { %v9668_v20 = vpop.eup %9667 }
 0xcc1   :  { %v5270_v36 = vmul.f32 %v9668_v20, %v9666_v11 }
 0xcc3   :  { %v11603_v38 = vpack.c.bf16 %v5270_v36, %v5269_v6 }
 0xcc5   :  { %5506 = vmatmul.mubr.bf16.vlgmr.msra.gmra.mrb[48].mxu0 %v11603_v38  ;;  %5549 = vmatmul.mubr.bf16.vlgmr.msra.gmra.mrb[48].mxu1 %v11603_v38 }
 0xcc6   :  { %5818 = vmatpush1.bf16.msra.mxu0 %v11363_v48  ;;  %5861 = vmatpush1.bf16.msra.mxu1 %v11413_v42 }
 0xcc7   :  { %5819 = vmatprep.subr.bf16.mxu0 %v11420_v39  ;;  %5862 = vmatprep.subr.bf16.mxu1 %v11425_v44 }
 0xcc8   :  { %5849 = vmatprep.mubr.bf16.mxu0 %v12372_v41  ;;  %5892 = vmatprep.mubr.bf16.mxu1 %v12372_v41 }
 0xcca   :  { %5820 = vmatpush1.bf16.msra.mxu0 %v11430_v24  ;;  %5863 = vmatpush1.bf16.msra.mxu1 %v11435_v13 }
 0xccb   :  { %5821 = vmatprep.subr.bf16.mxu0 %v11444_v45  ;;  %5864 = vmatprep.subr.bf16.mxu1 %v11449_v29 }
 0xcce   :  { %5822 = vmatpush1.bf16.msra.mxu0 %v11454_v51  ;;  %5865 = vmatpush1.bf16.msra.mxu1 %v11459_v53 }
 0xccf   :  { %5823 = vmatprep.subr.bf16.mxu0 %v11468_v54  ;;  %5866 = vmatprep.subr.bf16.mxu1 %v11473_v58 }
 0xcd2   :  { %5824 = vmatpush1.bf16.msra.mxu0 %v11478_v55  ;;  %5867 = vmatpush1.bf16.msra.mxu1 %v11483_v7 }
 0xcd3   :  { %5825 = vmatprep.subr.bf16.mxu0 %v11492_v57  ;;  %5868 = vmatprep.subr.bf16.mxu1 %v11497_v59 }
 0xcd6   :  { %5826 = vmatpush1.bf16.msra.mxu0 %v11502_v60  ;;  %5869 = vmatpush1.bf16.msra.mxu1 %v11507_v62 }
 0xcd7   :  { %5827 = vmatprep.subr.bf16.mxu0 %v11514_v46  ;;  %5870 = vmatprep.subr.bf16.mxu1 %v11519_v63 }
 0xcda   :  { %5828 = vmatpush1.bf16.msra.mxu0 %v11526_v0  ;;  %5871 = vmatpush1.bf16.msra.mxu1 %v11531_v2 }
 0xcdb   :  { %5829 = vmatprep.subr.bf16.mxu0 %v11538_v3  ;;  %5872 = vmatprep.subr.bf16.mxu1 %v11543_v4 }
 0xcde   :  { %5830 = vmatpush1.bf16.msra.mxu0 %v11550_v5  ;;  %5873 = vmatpush1.bf16.msra.mxu1 %v11555_v21 }
 0xcdf   :  { %5831 = vmatprep.subr.bf16.mxu0 %v11562_v16  ;;  %5874 = vmatprep.subr.bf16.mxu1 %v11567_v34 }
 0xce2   :  { %5832 = vmatpush1.bf16.msra.mxu0 %v11574_v26  ;;  %5875 = vmatpush1.bf16.msra.mxu1 %v11579_v30 }
 0xce3   :  { %6161 = vmatprep.subr.bf16.mxu0 %v11358_v31  ;;  %6204 = vmatprep.subr.bf16.mxu1 %v11408_v32 }
 0xd98   :  { %v5507_v1 = vpop.f32.mrb[48].mxu0  ;;  %v5550_v28 = vpop.f32.mrb[48].mxu1 }
 0xd99   :  { %v8775_v37 = vadd.f32 %v5507_v1, %v11255_v56  ;;  %v5509_v35 = vpop.f32.mrb[49].mxu0  ;;  %v5552_v9 = vpop.f32.mrb[49].mxu1  ;;  %v8807_v6 = vadd.f32 %v5550_v28, %v11269_v15 }
 0xd9a   :  { %v8776_v50 = vadd.f32 %v5509_v35, %v11258_v61  ;;  %v5511_v19 = vpop.f32.mrb[50].mxu0  ;;  %v5554_v47 = vpop.f32.mrb[50].mxu1  ;;  %v8808_v20 = vadd.f32 %v5552_v9, %v11265_v22 }
 0xd9b   :  { %v8293_v18 = vmul.f32 -1.442695, %v8775_v37  ;;  %v8777_v23 = vadd.f32 %v5511_v19, %v11255_v56  ;;  %v5513_v43 = vpop.f32.mrb[51].mxu0  ;;  %v5556_v49 = vpop.f32.mrb[51].mxu1  ;;  %v8809_v37 = vadd.f32 %v5554_v47, %v11269_v15 }
 0xd9c   :  { %v8295_v25 = vmul.f32 -1.442695, %v8776_v50  ;;  %v8778_v31 = vadd.f32 %v5513_v43, %v11258_v61  ;;  %v8297_v36 = vmul.f32 -1.442695, %v8808_v20  ;;  %v8810_v1 = vadd.f32 %v5556_v49, %v11265_v22 }
 0xd9d   :  { %9669 = vpow2.f32 %v8293_v18  ;;  %v8294_v8 = vmul.f32 -1.442695, %v8777_v23 }
 0xd9e   :  { %9671 = vpow2.f32 %v8295_v25  ;;  %v8296_v11 = vmul.f32 -1.442695, %v8778_v31  ;;  %v8298_v18 = vmul.f32 -1.442695, %v8810_v1 }
 0xd9f   :  { %9673 = vpow2.f32 %v8294_v8 }
 0xda0   :  { %9675 = vpow2.f32 %v8296_v11 }
 0xda1   :  { %9677 = vtanh.f32 %v8807_v6 }
 0xda2   :  { %9679 = vpow2.f32 %v8297_v36 }
 0xda3   :  { %9681 = vtanh.f32 %v8809_v37 }
 0xda7   :  { %v9670_v35 = vpop.eup %9669 }
 0xda8   :  { %v9672_v50 = vpop.eup %9671  ;;  %v5573_v19 = vadd.f32 1.0, %v9670_v35 }
 0xda9   :  { %v5585_v23 = vadd.f32 1.0, %v9672_v50  ;;  %v9674_v43 = vpop.eup %9673 }
 0xdaa   :  { %9683 = vrcp.f32 %v5573_v19  ;;  %v5574_v9 = vadd.f32 1.0, %v9674_v43  ;;  %v9676_v25 = vpop.eup %9675 }
 0xdab   :  { %9685 = vrcp.f32 %v5585_v23  ;;  %v5586_v28 = vadd.f32 1.0, %v9676_v25  ;;  %v9678_v49 = vpop.eup %9677 }
 0xdac   :  { %9687 = vpow2.f32 %v8298_v18  ;;  %v9680_v31 = vpop.eup %9679 }
 0xdad   :  { %9689 = vrcp.f32 %v5574_v9  ;;  %v9682_v47 = vpop.eup %9681  ;;  %v5599_v37 = vadd.f32 1.0, %v9680_v31 }
 0xdae   :  { %9691 = vrcp.f32 %v5586_v28 }
 0xdaf   :  { %9693 = vrcp.f32 %v5599_v37 }
 0xdb4   :  { %v9684_v8 = vpop.eup %9683 }
 0xdb5   :  { %v9686_v11 = vpop.eup %9685  ;;  %v5607_v20 = vmul.f32 %v9684_v8, %v9678_v49 }
 0xdb6   :  { %v9688_v6 = vpop.eup %9687  ;;  %v5605_v36 = vmul.f32 %v9686_v11, %v11596_v27 }
 0xdb7   :  { %v9690_v1 = vpop.eup %9689  ;;  %v5600_v23 = vadd.f32 1.0, %v9688_v6 }
 0xdb8   :  { %v11650_v35 = vadd.f32 %v5607_v20, %v5605_v36  ;;  %v5608_v50 = vmul.f32 %v9690_v1, %v9682_v47  ;;  %v9692_v19 = vpop.eup %9691 }
 0xdb9   :  { %v5606_v18 = vmul.f32 %v9692_v19, %v11600_v33  ;;  %v9694_v9 = vpop.eup %9693 }
 0xdba   :  { %9695 = vtanh.f32 %v11650_v35 }
 0xdbb   :  { %v11654_v43 = vadd.f32 %v5608_v50, %v5606_v18  ;;  %9697 = vrcp.f32 %v5600_v23 }
 0xdbd   :  { %9699 = vtanh.f32 %v11654_v43 }
 0xdc4   :  { %v9696_v25 = vpop.eup %9695 }
 0xdc5   :  { %v9698_v27 = vpop.eup %9697  ;;  %v5613_v49 = vmul.f32 %v9696_v25, %v9694_v9 }
 0xdc7   :  { %v9700_v28 = vpop.eup %9699 }
 0xdc8   :  { %v5614_v31 = vmul.f32 %v9700_v28, %v9698_v27 }
 0xdca   :  { %v11657_v8 = vpack.c.bf16 %v5614_v31, %v5613_v49 }
 0xdcc   :  { %5850 = vmatmul.mubr.bf16.vlgmr.msra.gmra.mrb[52].mxu0 %v11657_v8  ;;  %5893 = vmatmul.mubr.bf16.vlgmr.msra.gmra.mrb[52].mxu1 %v11657_v8 }
 0xdcd   :  { %6162 = vmatpush1.bf16.msra.mxu0 %v11363_v48  ;;  %6205 = vmatpush1.bf16.msra.mxu1 %v11413_v42 }
 0xdce   :  { %6163 = vmatprep.subr.bf16.mxu0 %v11420_v39  ;;  %6206 = vmatprep.subr.bf16.mxu1 %v11425_v44 }
 0xdcf   :  { %6193 = vmatprep.mubr.bf16.mxu0 %v12372_v41  ;;  %6236 = vmatprep.mubr.bf16.mxu1 %v12372_v41 }
 0xdd1   :  { %6164 = vmatpush1.bf16.msra.mxu0 %v11430_v24  ;;  %6207 = vmatpush1.bf16.msra.mxu1 %v11435_v13 }
 0xdd2   :  { %6165 = vmatprep.subr.bf16.mxu0 %v11444_v45  ;;  %6208 = vmatprep.subr.bf16.mxu1 %v11449_v29 }
 0xdd5   :  { %6166 = vmatpush1.bf16.msra.mxu0 %v11454_v51  ;;  %6209 = vmatpush1.bf16.msra.mxu1 %v11459_v53 }
 0xdd6   :  { %6167 = vmatprep.subr.bf16.mxu0 %v11468_v54  ;;  %6210 = vmatprep.subr.bf16.mxu1 %v11473_v58 }
 0xdd9   :  { %6168 = vmatpush1.bf16.msra.mxu0 %v11478_v55  ;;  %6211 = vmatpush1.bf16.msra.mxu1 %v11483_v7 }
 0xdda   :  { %6169 = vmatprep.subr.bf16.mxu0 %v11492_v57  ;;  %6212 = vmatprep.subr.bf16.mxu1 %v11497_v59 }
 0xddd   :  { %6170 = vmatpush1.bf16.msra.mxu0 %v11502_v60  ;;  %6213 = vmatpush1.bf16.msra.mxu1 %v11507_v62 }
 0xdde   :  { %6171 = vmatprep.subr.bf16.mxu0 %v11514_v46  ;;  %6214 = vmatprep.subr.bf16.mxu1 %v11519_v63 }
 0xde1   :  { %6172 = vmatpush1.bf16.msra.mxu0 %v11526_v0  ;;  %6215 = vmatpush1.bf16.msra.mxu1 %v11531_v2 }
 0xde2   :  { %6173 = vmatprep.subr.bf16.mxu0 %v11538_v3  ;;  %6216 = vmatprep.subr.bf16.mxu1 %v11543_v4 }
 0xde5   :  { %6174 = vmatpush1.bf16.msra.mxu0 %v11550_v5  ;;  %6217 = vmatpush1.bf16.msra.mxu1 %v11555_v21 }
 0xde6   :  { %6175 = vmatprep.subr.bf16.mxu0 %v11562_v16  ;;  %6218 = vmatprep.subr.bf16.mxu1 %v11567_v34 }
 0xde9   :  { %6176 = vmatpush1.bf16.msra.mxu0 %v11574_v26  ;;  %6219 = vmatpush1.bf16.msra.mxu1 %v11579_v30 }
 0xdea   :  { %6548 = vmatprep.subr.bf16.mxu1 %v11408_v32 }
 0xe9f   :  { %v5851_v48 = vpop.f32.mrb[52].mxu0  ;;  %v5894_v33 = vpop.f32.mrb[52].mxu1 }
 0xea0   :  { %v8779_v47 = vadd.f32 %v5851_v48, %v11255_v56  ;;  %v5853_v11 = vpop.f32.mrb[53].mxu0  ;;  %v5896_v20 = vpop.f32.mrb[53].mxu1  ;;  %v8811_v28 = vadd.f32 %v5894_v33, %v11269_v15 }
 0xea1   :  { %v8780_v6 = vadd.f32 %v5853_v11, %v11258_v61  ;;  %v5855_v36 = vpop.f32.mrb[54].mxu0  ;;  %v5898_v1 = vpop.f32.mrb[54].mxu1  ;;  %v8812_v27 = vadd.f32 %v5896_v20, %v11265_v22 }
 0xea2   :  { %v8331_v37 = vmul.f32 -1.442695, %v8779_v47  ;;  %v8781_v50 = vadd.f32 %v5855_v36, %v11255_v56  ;;  %v5857_v19 = vpop.f32.mrb[55].mxu0  ;;  %v5900_v23 = vpop.f32.mrb[55].mxu1  ;;  %v8813_v48 = vadd.f32 %v5898_v1, %v11269_v15 }
 0xea3   :  { %v8333_v18 = vmul.f32 -1.442695, %v8780_v6  ;;  %v8782_v9 = vadd.f32 %v5857_v19, %v11258_v61  ;;  %v8335_v49 = vmul.f32 -1.442695, %v8812_v27  ;;  %v8814_v31 = vadd.f32 %v5900_v23, %v11265_v22 }
 0xea4   :  { %9701 = vpow2.f32 %v8331_v37  ;;  %v8332_v32 = vmul.f32 -1.442695, %v8781_v50 }
 0xea5   :  { %9703 = vpow2.f32 %v8333_v18  ;;  %v8334_v25 = vmul.f32 -1.442695, %v8782_v9  ;;  %v8336_v36 = vmul.f32 -1.442695, %v8814_v31 }
 0xea6   :  { %9705 = vpow2.f32 %v8332_v32 }
 0xea7   :  { %9707 = vpow2.f32 %v8334_v25 }
 0xea8   :  { %9709 = vtanh.f32 %v8811_v28 }
 0xea9   :  { %9711 = vpow2.f32 %v8335_v49 }
 0xeaa   :  { %9713 = vtanh.f32 %v8813_v48 }
 0xeae   :  { %v9702_v47 = vpop.eup %9701 }
 0xeaf   :  { %v9704_v11 = vpop.eup %9703  ;;  %v5917_v6 = vadd.f32 1.0, %v9702_v47 }
 0xeb0   :  { %v5929_v37 = vadd.f32 1.0, %v9704_v11  ;;  %v9706_v50 = vpop.eup %9705 }
 0xeb1   :  { %9715 = vrcp.f32 %v5917_v6  ;;  %v5918_v20 = vadd.f32 1.0, %v9706_v50  ;;  %v9708_v19 = vpop.eup %9707 }
 0xeb2   :  { %9717 = vrcp.f32 %v5929_v37  ;;  %v5930_v33 = vadd.f32 1.0, %v9708_v19  ;;  %v9710_v23 = vpop.eup %9709 }
 0xeb3   :  { %9719 = vpow2.f32 %v8336_v36  ;;  %v9712_v18 = vpop.eup %9711 }
 0xeb4   :  { %9721 = vrcp.f32 %v5918_v20  ;;  %v9714_v1 = vpop.eup %9713  ;;  %v5943_v31 = vadd.f32 1.0, %v9712_v18 }
 0xeb5   :  { %9723 = vrcp.f32 %v5930_v33 }
 0xeb6   :  { %9725 = vrcp.f32 %v5943_v31 }
 0xebb   :  { %v9716_v9 = vpop.eup %9715 }
 0xebc   :  { %v9718_v32 = vpop.eup %9717  ;;  %v5951_v25 = vmul.f32 %v9716_v9, %v9710_v23 }
 0xebd   :  { %v9720_v27 = vpop.eup %9719  ;;  %v5949_v28 = vmul.f32 %v9718_v32, %v11650_v35 }
 0xebe   :  { %v9722_v49 = vpop.eup %9721  ;;  %v5944_v6 = vadd.f32 1.0, %v9720_v27 }
 0xebf   :  { %v11703_v48 = vadd.f32 %v5951_v25, %v5949_v28  ;;  %v5952_v47 = vmul.f32 %v9722_v49, %v9714_v1  ;;  %v9724_v11 = vpop.eup %9723 }
 0xec0   :  { %v5950_v36 = vmul.f32 %v9724_v11, %v11654_v43  ;;  %v9726_v50 = vpop.eup %9725 }
 0xec1   :  { %9727 = vtanh.f32 %v11703_v48 }
 0xec2   :  { %v11707_v37 = vadd.f32 %v5952_v47, %v5950_v36  ;;  %9729 = vrcp.f32 %v5944_v6 }
 0xec4   :  { %9731 = vtanh.f32 %v11707_v37 }
 0xecb   :  { %v9728_v20 = vpop.eup %9727 }
 0xecc   :  { %v9730_v35 = vpop.eup %9729  ;;  %v5957_v33 = vmul.f32 %v9728_v20, %v9726_v50 }
 0xece   :  { %v9732_v19 = vpop.eup %9731 }
 0xecf   :  { %v5958_v23 = vmul.f32 %v9732_v19, %v9730_v35 }
 0xed1   :  { %v11710_v18 = vpack.c.bf16 %v5958_v23, %v5957_v33 }
 0xed3   :  { %6194 = vmatmul.mubr.bf16.vlgmr.msra.gmra.mrb[56].mxu0 %v11710_v18  ;;  %6237 = vmatmul.mubr.bf16.vlgmr.msra.gmra.mrb[56].mxu1 %v11710_v18 }
 0xed4   :  { %6549 = vmatpush1.bf16.msra.mxu1 %v11413_v42  ;;  %6537 = vmatprep.mubr.bf16.mxu0 %v12372_v41  ;;  %v9258_v42 = vld [vmem:[%s12339_s5] ss:$16 sps:$4 sm:$0xff]  }
 0xed5   :  { %6550 = vmatprep.subr.bf16.mxu1 %v11425_v44  ;;  %6580 = vmatprep.mubr.bf16.mxu1 %v12372_v41  ;;  %v9260_v41 = vld [vmem:[%s12339_s5 + $0x4] ss:$16 sps:$4 sm:$0xff]  }
 0xed6   :  { %6505 = vmatprep.subr.bf16.mxu0 %v9260_v41 }
 0xed7   :  { %6506 = vmatpush1.bf16.msra.mxu0 %v9258_v42 }
 0xed8   :  { %6551 = vmatpush1.bf16.msra.mxu1 %v11435_v13  ;;  %6507 = vmatprep.subr.bf16.mxu0 %v11420_v39  ;;  %v11753_v39 = vld [vmem:[%s12341_s7] sm:$0xff]  }
 0xed9   :  { %6552 = vmatprep.subr.bf16.mxu1 %v11449_v29 }
 0xedb   :  { %6508 = vmatpush1.bf16.msra.mxu0 %v11430_v24 }
 0xedc   :  { %6553 = vmatpush1.bf16.msra.mxu1 %v11459_v53  ;;  %6509 = vmatprep.subr.bf16.mxu0 %v11444_v45 }
 0xedd   :  { %6554 = vmatprep.subr.bf16.mxu1 %v11473_v58 }
 0xedf   :  { %6510 = vmatpush1.bf16.msra.mxu0 %v11454_v51 }
 0xee0   :  { %6555 = vmatpush1.bf16.msra.mxu1 %v11483_v7  ;;  %6511 = vmatprep.subr.bf16.mxu0 %v11468_v54 }
 0xee1   :  { %6556 = vmatprep.subr.bf16.mxu1 %v11497_v59 }
 0xee3   :  { %6512 = vmatpush1.bf16.msra.mxu0 %v11478_v55 }
 0xee4   :  { %6557 = vmatpush1.bf16.msra.mxu1 %v11507_v62  ;;  %6513 = vmatprep.subr.bf16.mxu0 %v11492_v57 }
 0xee5   :  { %6558 = vmatprep.subr.bf16.mxu1 %v11519_v63 }
 0xee7   :  { %6514 = vmatpush1.bf16.msra.mxu0 %v11502_v60 }
 0xee8   :  { %6559 = vmatpush1.bf16.msra.mxu1 %v11531_v2  ;;  %6515 = vmatprep.subr.bf16.mxu0 %v11514_v46 }
 0xee9   :  { %6560 = vmatprep.subr.bf16.mxu1 %v11543_v4 }
 0xeeb   :  { %6516 = vmatpush1.bf16.msra.mxu0 %v11526_v0 }
 0xeec   :  { %6561 = vmatpush1.bf16.msra.mxu1 %v11555_v21  ;;  %6517 = vmatprep.subr.bf16.mxu0 %v11538_v3 }
 0xeed   :  { %6562 = vmatprep.subr.bf16.mxu1 %v11567_v34 }
 0xeef   :  { %6518 = vmatpush1.bf16.msra.mxu0 %v11550_v5 }
 0xef0   :  { %6563 = vmatpush1.bf16.msra.mxu1 %v11579_v30  ;;  %6519 = vmatprep.subr.bf16.mxu0 %v11562_v16 }
 0xef3   :  { %6520 = vmatpush1.bf16.msra.mxu0 %v11574_v26 }
 0xef4   :  { %8524 = vmatprep.subr.bf16.mxu0 %v11753_v39 }
 0xfa6   :  { %v6195_v44 = vpop.f32.mrb[56].mxu0  ;;  %v6238_v24 = vpop.f32.mrb[56].mxu1 }
 0xfa7   :  { %v8783_v13 = vadd.f32 %v6195_v44, %v11255_v56  ;;  %v6197_v45 = vpop.f32.mrb[57].mxu0  ;;  %v6240_v29 = vpop.f32.mrb[57].mxu1  ;;  %v8815_v0 = vadd.f32 %v6238_v24, %v11269_v15 }
 0xfa8   :  { %v8784_v51 = vadd.f32 %v6197_v45, %v11258_v61  ;;  %v6199_v53 = vpop.f32.mrb[58].mxu0  ;;  %v6242_v54 = vpop.f32.mrb[58].mxu1  ;;  %v8816_v63 = vadd.f32 %v6240_v29, %v11265_v22  ;;  %v9262_v29 = vld [vmem:[%s12341_s7 + $0x8] sm:$0xff]  }
 0xfa9   :  { %v8369_v58 = vmul.f32 -1.442695, %v8783_v13  ;;  %v8785_v55 = vadd.f32 %v6199_v53, %v11255_v56  ;;  %v6201_v7 = vpop.f32.mrb[59].mxu0  ;;  %v6244_v57 = vpop.f32.mrb[59].mxu1  ;;  %v8817_v4 = vadd.f32 %v6242_v54, %v11269_v15  ;;  %v9265_v53 = vld [vmem:[%s12341_s7 + $0x20] sm:$0xff]   ;;  %v9268_v54 = vld [vmem:[%s12341_s7 + $0x38] sm:$0xff]  }
 0xfaa   :  { %v8371_v59 = vmul.f32 -1.442695, %v8784_v51  ;;  %v8786_v60 = vadd.f32 %v6201_v7, %v11258_v61  ;;  %v8373_v2 = vmul.f32 -1.442695, %v8816_v63  ;;  %v8818_v3 = vadd.f32 %v6244_v57, %v11265_v22  ;;  %v9264_v51 = vld [vmem:[%s12341_s7 + $0x18] sm:$0xff]   ;;  %v9275_v7 = vld [vmem:[%s12342_s9 + $0x30] sm:$0xff]  }
 0xfab   :  { %9733 = vpow2.f32 %v8369_v58  ;;  %v8370_v62 = vmul.f32 -1.442695, %v8785_v55  ;;  %v9269_v58 = vld [vmem:[%s12342_s9] sm:$0xff]   ;;  %v9874_v55 = vmov 0.0   ;;  %v9276_v57 = vld [vmem:[%s12342_s9 + $0x38] sm:$0xff]  }
 0xfac   :  { %9735 = vpow2.f32 %v8371_v59  ;;  %v8372_v46 = vmul.f32 -1.442695, %v8786_v60  ;;  %v8374_v34 = vmul.f32 -1.442695, %v8818_v3  ;;  %8556 = vmatprep.subr.bf16.mxu1 %v9874_v55  ;;  %v24_v59 = vstv %s12343_s14 }
 0xfad   :  { %9737 = vpow2.f32 %v8370_v62  ;;  %25 = vst [vmem:[#allocation6] sm:$0x1] %v24_v59 }
 0xfae   :  { %9739 = vpow2.f32 %v8372_v46 }
 0xfaf   :  { %9741 = vtanh.f32 %v8815_v0 }
 0xfb0   :  { %9743 = vpow2.f32 %v8373_v2 }
 0xfb1   :  { %9745 = vtanh.f32 %v8817_v4 }
 0xfb5   :  { %v9734_v5 = vpop.eup %9733 }
 0xfb6   :  { %v9736_v21 = vpop.eup %9735  ;;  %v6261_v16 = vadd.f32 1.0, %v9734_v5 }
 0xfb7   :  { %v6273_v26 = vadd.f32 1.0, %v9736_v21  ;;  %v9738_v30 = vpop.eup %9737 }
 0xfb8   :  { %9747 = vrcp.f32 %v6261_v16  ;;  %v6262_v43 = vadd.f32 1.0, %v9738_v30  ;;  %v9740_v1 = vpop.eup %9739 }
 0xfb9   :  { %9749 = vrcp.f32 %v6273_v26  ;;  %v6274_v9 = vadd.f32 1.0, %v9740_v1  ;;  %v9742_v32 = vpop.eup %9741 }
 0xfba   :  { %9751 = vpow2.f32 %v8374_v34  ;;  %v9744_v25 = vpop.eup %9743 }
 0xfbb   :  { %9753 = vrcp.f32 %v6262_v43  ;;  %v9746_v27 = vpop.eup %9745  ;;  %v6287_v36 = vadd.f32 1.0, %v9744_v25 }
 0xfbc   :  { %9755 = vrcp.f32 %v6274_v9 }
 0xfbd   :  { %9757 = vrcp.f32 %v6287_v36 }
 0xfc2   :  { %v9748_v28 = vpop.eup %9747 }
 0xfc3   :  { %v9750_v49 = vpop.eup %9749  ;;  %v6295_v31 = vmul.f32 %v9748_v28, %v9742_v32 }
 0xfc4   :  { %v9752_v47 = vpop.eup %9751  ;;  %v6293_v11 = vmul.f32 %v9750_v49, %v11703_v48 }
 0xfc5   :  { %v9754_v6 = vpop.eup %9753  ;;  %v6288_v19 = vadd.f32 1.0, %v9752_v47 }
 0xfc6   :  { %v11766_v50 = vadd.f32 %v6295_v31, %v6293_v11  ;;  %v6296_v20 = vmul.f32 %v9754_v6, %v9746_v27  ;;  %v9756_v35 = vpop.eup %9755 }
 0xfc7   :  { %v6294_v33 = vmul.f32 %v9756_v35, %v11707_v37  ;;  %v9758_v41 = vpop.eup %9757  ;;  %v9263_v37 = vld [vmem:[%s12341_s7 + $0x10] sm:$0xff]  }
 0xfc8   :  { %9759 = vtanh.f32 %v11766_v50 }
 0xfc9   :  { %v11770_v23 = vadd.f32 %v6296_v20, %v6294_v33  ;;  %9761 = vrcp.f32 %v6288_v19 }
 0xfcb   :  { %9763 = vtanh.f32 %v11770_v23 }
 0xfd2   :  { %v9760_v42 = vpop.eup %9759 }
 0xfd3   :  { %v9762_v48 = vpop.eup %9761  ;;  %v6301_v24 = vmul.f32 %v9760_v42, %v9758_v41 }
 0xfd5   :  { %v9764_v44 = vpop.eup %9763 }
 0xfd6   :  { %v6302_v13 = vmul.f32 %v9764_v44, %v9762_v48 }
 0xfd8   :  { %v6303_v45 = vpack.c.bf16 %v6302_v13, %v6301_v24  ;;  %v11851_v24 = vld [vmem:[%s12344_s8] ss:$0 sm:$0xff] }
 0xfda   :  { %6538 = vmatmul.mubr.bf16.vlgmr.msra.gmra.mrb[60].mxu0 %v6303_v45  ;;  %6581 = vmatmul.mubr.bf16.vlgmr.msra.gmra.mrb[60].mxu1 %v6303_v45 }
 0xfdb   :  { %8525 = vmatpush3.bf16.msra.mxu0 %v11753_v39  ;;  %8540 = vmatprep.mubr.bf16.mxu0 %v11281_v52  ;;  %v9266_v52 = vld [vmem:[%s12341_s7 + $0x28] sm:$0xff]   ;;  %v9267_v39 = vld [vmem:[%s12341_s7 + $0x30] sm:$0xff]  }
 0xfdc   :  { %8526 = vmatprep.subr.bf16.mxu0 %v9262_v29  ;;  %8557 = vmatpush3.bf16.msra.mxu1 %v9269_v58 }
 0xfdd   :  { %8558 = vmatprep.subr.bf16.mxu1 %v9874_v55  ;;  %8572 = vmatprep.mubr.msk.bf16.mxu1 %vm9875_vm0, %v9874_v55 }
 0xfdf   :  { %8527 = vmatpush3.bf16.msra.mxu0 %v9262_v29 }
 0xfe0   :  { %8528 = vmatprep.subr.bf16.mxu0 %v9263_v37 }
 0xfe3   :  { %8529 = vmatpush3.bf16.msra.mxu0 %v9263_v37 }
 0xfe4   :  { %8530 = vmatprep.subr.bf16.mxu0 %v9264_v51 }
 0xfe7   :  { %8531 = vmatpush3.bf16.msra.mxu0 %v9264_v51  ;;  %v11856_v51 = vld [vmem:[%s12345_s11] ss:$0 sm:$0xff] }
 0xfe8   :  { %8532 = vmatprep.subr.bf16.mxu0 %v9265_v53 }
 0xfeb   :  { %8533 = vmatpush3.bf16.msra.mxu0 %v9265_v53  ;;  %v11861_v53 = vld [vmem:[%s12345_s11 + $0x2] ss:$0 sm:$0xff] }
 0xfec   :  { %8534 = vmatprep.subr.bf16.mxu0 %v9266_v52 }
 0xfef   :  { %8535 = vmatpush3.bf16.msra.mxu0 %v9266_v52 }
 0xff0   :  { %8536 = vmatprep.subr.bf16.mxu0 %v9267_v39 }
 0xff3   :  { %8537 = vmatpush3.bf16.msra.mxu0 %v9267_v39 }
 0xff4   :  { %8538 = vmatprep.subr.bf16.mxu0 %v9268_v54 }
 0xff7   :  { %8539 = vmatpush3.bf16.msra.mxu0 %v9268_v54  ;;  %v11867_v54 = vld [vmem:[%s12345_s11 + $0x1] ss:$0 sm:$0xff] }
 0xff8   :  { %8576 = vmatprep.subr.bf16.mxu0 %v9874_v55 }
 0xffa   :  { %8541 = vmatmul.mubr.bf16.vlgmr.msra.gmra.mrb[64].mxu0 %v11334_v17  ;;  %v9270_v17 = vld [vmem:[%s12342_s9 + $0x8] sm:$0xff]  }
 0xffb   :  { %8544 = vmatprep.mubr.bf16.mxu0 %v11398_v40  ;;  %8559 = vmatpush3.bf16.msra.mxu1 %v9270_v17  ;;  %v9271_v40 = vld [vmem:[%s12342_s9 + $0x10] sm:$0xff]  }
 0xffc   :  { %8560 = vmatprep.subr.bf16.mxu1 %v9874_v55 }
 0xfff   :  { %8561 = vmatpush3.bf16.msra.mxu1 %v9271_v40  ;;  %v11873_v40 = vld [vmem:[%s12346_s12] ss:$0 sm:$0xff] }
0x1000   :  { %8562 = vmatprep.subr.bf16.mxu1 %v9874_v55 }
0x1002   :  { %8545 = vmatmul.mubr.bf16.gmra.mrb[68].mxu0 %v11603_v38  ;;  %v9272_v38 = vld [vmem:[%s12342_s9 + $0x18] sm:$0xff]  }
0x1003   :  { %8548 = vmatprep.mubr.bf16.mxu0 %v11657_v8  ;;  %8563 = vmatpush3.bf16.msra.mxu1 %v9272_v38  ;;  %v9273_v8 = vld [vmem:[%s12342_s9 + $0x20] sm:$0xff]  }
0x1004   :  { %8564 = vmatprep.subr.bf16.mxu1 %v9874_v55 }
0x1007   :  { %8565 = vmatpush3.bf16.msra.mxu1 %v9273_v8 }
0x1008   :  { %8566 = vmatprep.subr.bf16.mxu1 %v9874_v55 }
0x100a   :  { %8549 = vmatmul.mubr.bf16.gmra.mrb[72].mxu0 %v11710_v18  ;;  %v9274_v18 = vld [vmem:[%s12342_s9 + $0x28] sm:$0xff]  }
0x100b   :  { %8552 = vmatprep.mubr.bf16.mxu0 %v6303_v45  ;;  %8567 = vmatpush3.bf16.msra.mxu1 %v9274_v18 }
0x100c   :  { %8568 = vmatprep.subr.bf16.mxu1 %v9874_v55 }
0x100f   :  { %8569 = vmatpush3.bf16.msra.mxu1 %v9275_v7 }
0x1010   :  { %8570 = vmatprep.subr.bf16.mxu1 %v9874_v55 }
0x1013   :  { %8571 = vmatpush3.bf16.msra.mxu1 %v9276_v57 }
0x10ad   :  { %v6539_v60 = vpop.f32.mrb[60].mxu0  ;;  %v6582_v62 = vpop.f32.mrb[60].mxu1 }
0x10ae   :  { %v8787_v46 = vadd.f32 %v6539_v60, %v11255_v56  ;;  %v6541_v63 = vpop.f32.mrb[61].mxu0  ;;  %v6584_v0 = vpop.f32.mrb[61].mxu1  ;;  %v8819_v25 = vadd.f32 %v6582_v62, %v11269_v15 }
0x10af   :  { %v8788_v2 = vadd.f32 %v6541_v63, %v11258_v61  ;;  %v6543_v3 = vpop.f32.mrb[62].mxu0  ;;  %v6586_v4 = vpop.f32.mrb[62].mxu1  ;;  %v8820_v9 = vadd.f32 %v6584_v0, %v11265_v22 }
0x10b0   :  { %v8407_v5 = vmul.f32 -1.442695, %v8787_v46  ;;  %v8789_v21 = vadd.f32 %v6543_v3, %v11255_v56  ;;  %v6545_v16 = vpop.f32.mrb[63].mxu0  ;;  %v6588_v34 = vpop.f32.mrb[63].mxu1 }
0x10b1   :  { %v8409_v26 = vmul.f32 -1.442695, %v8788_v2  ;;  %v8790_v30 = vadd.f32 %v6545_v16, %v11258_v61  ;;  %v8822_v32 = vadd.f32 %v6588_v34, %v11265_v22  ;;  %v8411_v27 = vmul.f32 -1.442695, %v8820_v9 }
0x10b2   :  { %9765 = vpow2.f32 %v8407_v5  ;;  %v8408_v43 = vmul.f32 -1.442695, %v8789_v21  ;;  %v8821_v61 = vadd.f32 %v6586_v4, %v11269_v15 }
0x10b3   :  { %9767 = vpow2.f32 %v8409_v26  ;;  %v8410_v1 = vmul.f32 -1.442695, %v8790_v30  ;;  %v8412_v28 = vmul.f32 -1.442695, %v8822_v32 }
0x10b4   :  { %9769 = vpow2.f32 %v8408_v43 }
0x10b5   :  { %9771 = vpow2.f32 %v8410_v1 }
0x10b6   :  { %9773 = vtanh.f32 %v8819_v25 }
0x10b7   :  { %9775 = vpow2.f32 %v8411_v27 }
0x10b8   :  { %9777 = vpow2.f32 %v8412_v28 }
0x10bc   :  { %v9766_v56 = vpop.eup %9765 }
0x10bd   :  { %v9768_v49 = vpop.eup %9767  ;;  %v6605_v31 = vadd.f32 1.0, %v9766_v56 }
0x10be   :  { %v6617_v47 = vadd.f32 1.0, %v9768_v49  ;;  %v9770_v11 = vpop.eup %9769 }
0x10bf   :  { %9779 = vrcp.f32 %v6605_v31  ;;  %v6606_v6 = vadd.f32 1.0, %v9770_v11  ;;  %v9772_v36 = vpop.eup %9771 }
0x10c0   :  { %9781 = vrcp.f32 %v6617_v47  ;;  %v6618_v22 = vadd.f32 1.0, %v9772_v36  ;;  %v9774_v20 = vpop.eup %9773 }
0x10c1   :  { %9783 = vtanh.f32 %v8821_v61  ;;  %v9776_v35 = vpop.eup %9775 }
0x10c2   :  { %9785 = vrcp.f32 %v6606_v6  ;;  %v9778_v19 = vpop.eup %9777  ;;  %v6631_v48 = vadd.f32 1.0, %v9776_v35 }
0x10c3   :  { %9787 = vrcp.f32 %v6618_v22  ;;  %v6632_v45 = vadd.f32 1.0, %v9778_v19 }
0x10c4   :  { %9789 = vrcp.f32 %v6631_v48 }
0x10c9   :  { %v9780_v33 = vpop.eup %9779 }
0x10ca   :  { %v9782_v41 = vpop.eup %9781  ;;  %v6639_v42 = vmul.f32 %v9780_v33, %v9774_v20 }
0x10cb   :  { %v9784_v44 = vpop.eup %9783  ;;  %v6637_v15 = vmul.f32 %v9782_v41, %v11766_v50 }
0x10cc   :  { %v9786_v13 = vpop.eup %9785 }
0x10cd   :  { %v6640_v29 = vmul.f32 %v9786_v13, %v9784_v44  ;;  %v8542_v37 = vpop.f32.mrb[64].mxu0  ;;  %v6641_v50 = vadd.f32 %v6639_v42, %v6637_v15  ;;  %v9788_v52 = vpop.eup %9787 }
0x10ce   :  { %v6771_v39 = vadd.f32 %v8542_v37, %v11851_v24  ;;  %v6762_v58 = vpop.f32.mrb[65].mxu0  ;;  %v6638_v17 = vmul.f32 %v9788_v52, %v11770_v23  ;;  %v11882_v23 = vld [vmem:[%s12345_s11 + $0x3] ss:$0 sm:$0xff]  ;;  %v9790_v20 = vpop.eup %9789 }
0x10cf   :  { %v6763_v38 = vadd.f32 %v11851_v24, %v6762_v58  ;;  %v8543_v8 = vpop.f32.mrb[66].mxu0  ;;  %9791 = vtanh.f32 %v6641_v50 }
0x10d0   :  { %9793 = vrcp.f32 %v6632_v45  ;;  %v7060_v18 = vmul.f32 %v11861_v53, %v6771_v39  ;;  %v7146_v7 = vmul.f32 %v11856_v51, %v6771_v39  ;;  %v6774_v57 = vadd.f32 %v8543_v8, %v11851_v24  ;;  %v6765_v59 = vpop.f32.mrb[67].mxu0 }
0x10d1   :  { %v11885_v60 = vmul.f32 %v11867_v54, %v6771_v39  ;;  %v7101_v62 = vmul.f32 %v11856_v51, %v6763_v38  ;;  %v6766_v46 = vadd.f32 %v11851_v24, %v6765_v59  ;;  %v6642_v63 = vadd.f32 %v6640_v29, %v6638_v17 }
0x10d2   :  { %v11890_v0 = vadd.f32 %v11873_v40, %v7146_v7  ;;  %v7056_v2 = vmul.f32 %v11867_v54, %v6763_v38  ;;  %v7061_v3 = vmul.f32 %v11861_v53, %v6774_v57  ;;  %v7147_v4 = vmul.f32 %v11856_v51, %v6774_v57 }
0x10d3   :  { %v11896_v5 = vadd.f32 %v11873_v40, %v7101_v62  ;;  %v11899_v21 = vmul.f32 %v11867_v54, %v6774_v57  ;;  %v7016_v16 = vmul.f32 %v11861_v53, %v6766_v46  ;;  %v7102_v34 = vmul.f32 %v11856_v51, %v6766_v46 }
0x10d4   :  { %v7057_v26 = vmul.f32 %v11867_v54, %v6766_v46  ;;  %9795 = vtanh.f32 %v6642_v63  ;;  %v6980_v30 = vmul.f32 %v11882_v23, %v6763_v38  ;;  %v7015_v43 = vmul.f32 %v11861_v53, %v6763_v38 }
0x10d5   :  { %v11907_v1 = vadd.f32 %v11873_v40, %v7147_v4  ;;  %v11910_v9 = vadd.f32 %v11873_v40, %v7102_v34  ;;  %v8546_v32 = vpop.f32.mrb[68].mxu0  ;;  %v7021_v25 = vmul.f32 %v11882_v23, %v6771_v39  ;;  %v6981_v27 = vmul.f32 %v11882_v23, %v6766_v46 }
0x10d6   :  { %v11915_v28 = vadd.f32 %v8546_v32, %v11851_v24  ;;  %v6778_v56 = vpop.f32.mrb[69].mxu0  ;;  %v11918_v49 = vadd.f32 %v11873_v40, %v6980_v30  ;;  %v7017_v31 = vadd.f32 %v11873_v40, %v7015_v43  ;;  %v7018_v61 = vadd.f32 %v11873_v40, %v7016_v16 }
0x10d7   :  { %v6779_v47 = vadd.f32 %v11851_v24, %v6778_v56  ;;  %v8547_v11 = vpop.f32.mrb[70].mxu0  ;;  %v11924_v6 = vadd.f32 %v11873_v40, %v6981_v27  ;;  %v7022_v36 = vmul.f32 %v11882_v23, %v6774_v57  ;;  %v7058_v22 = vadd.f32 %v11873_v40, %v7056_v2 }
0x10d8   :  { %v11930_v35 = vmul.f32 %v11861_v53, %v11915_v28  ;;  %v11934_v19 = vmul.f32 %v11856_v51, %v11915_v28  ;;  %v6790_v33 = vadd.f32 %v8547_v11, %v11851_v24  ;;  %v6781_v41 = vpop.f32.mrb[71].mxu0  ;;  %v7059_v42 = vadd.f32 %v11873_v40, %v7057_v26 }
0x10d9   :  { %v9792_v48 = vpop.eup %9791  ;;  %v11940_v44 = vmul.f32 %v11867_v54, %v11915_v28  ;;  %v7109_v15 = vmul.f32 %v11861_v53, %v6779_v47  ;;  %v7191_v13 = vmul.f32 %v11856_v51, %v6779_v47  ;;  %v6782_v45 = vadd.f32 %v11851_v24, %v6781_v41 }
0x10da   :  { %v9794_v29 = vpop.eup %9793  ;;  %v7150_v37 = vmul.f32 %v11867_v54, %v6779_v47  ;;  %v11947_v50 = vmul.f32 %v11861_v53, %v6790_v33  ;;  %v11950_v52 = vmul.f32 %v11856_v51, %v6790_v33  ;;  %v11952_v39 = vmul.f32 %v9792_v48, %v9790_v20 }
0x10db   :  { %v11955_v58 = vadd.f32 %v11873_v40, %v7191_v13  ;;  %v11958_v17 = vmul.f32 %v11867_v54, %v6790_v33  ;;  %v7110_v38 = vmul.f32 %v11861_v53, %v6782_v45  ;;  %v7192_v8 = vmul.f32 %v11856_v51, %v6782_v45 }
0x10dc   :  { %v8434_v7 = vmul.f32 -1.442695, %v11918_v49  ;;  %v11963_v57 = vadd.f32 %v7021_v25, %v7017_v31  ;;  %v8435_v59 = vmul.f32 -1.442695, %v11924_v6  ;;  %v11966_v62 = vadd.f32 %v7022_v36, %v7018_v61 }
0x10dd   :  { %v7151_v46 = vmul.f32 %v11867_v54, %v6782_v45  ;;  %v8550_v63 = vpop.f32.mrb[72].mxu0  ;;  %v7062_v2 = vadd.f32 %v7060_v18, %v7058_v22  ;;  %v7066_v4 = vmul.f32 %v11882_v23, %v6779_v47  ;;  %v7063_v16 = vadd.f32 %v7061_v3, %v7059_v42 }
0x10de   :  { %v9796_v34 = vpop.eup %9795  ;;  %v7194_v26 = vadd.f32 %v11873_v40, %v7192_v8  ;;  %v6803_v30 = vadd.f32 %v8550_v63, %v11851_v24  ;;  %v6794_v43 = vpop.f32.mrb[73].mxu0  ;;  %9797 = vpow2.f32 %v8434_v7  ;;  %v8438_v32 = vmul.f32 -1.442695, %v11963_v57 }
0x10df   :  { %v6795_v25 = vadd.f32 %v11851_v24, %v6794_v43  ;;  %v8551_v27 = vpop.f32.mrb[74].mxu0  ;;  %v11974_v56 = vmul.f32 %v9796_v34, %v9794_v29  ;;  %9799 = vpow2.f32 %v8435_v59  ;;  %v11976_v31 = vadd.f32 %v7066_v4, %v7062_v2 }
0x10e0   :  { %v7205_v18 = vmul.f32 %v11882_v23, %v6803_v30  ;;  %v11980_v3 = vmul.f32 %v11867_v54, %v6803_v30  ;;  %v6806_v61 = vadd.f32 %v8551_v27, %v11851_v24  ;;  %v6797_v47 = vpop.f32.mrb[75].mxu0  ;;  %v8439_v11 = vmul.f32 -1.442695, %v11966_v62 }
0x10e1   :  { %v11985_v36 = vmul.f32 %v11861_v53, %v6803_v30  ;;  %v11988_v22 = vmul.f32 %v11867_v54, %v6795_v25  ;;  %v7281_v20 = vmul.f32 %v11856_v51, %v6795_v25  ;;  %v6798_v41 = vadd.f32 %v11851_v24, %v6797_v47 }
0x10e2   :  { %v7199_v42 = vmul.f32 %v11861_v53, %v6795_v25  ;;  %v7206_v48 = vmul.f32 %v11882_v23, %v6806_v61  ;;  %v11995_v13 = vmul.f32 %v11867_v54, %v6806_v61  ;;  %v6647_v29 = vpack.c.bf16 %v11974_v56, %v11952_v39 }
0x10e3   :  { %v7200_v8 = vmul.f32 %v11861_v53, %v6798_v41  ;;  %v7241_v7 = vmul.f32 %v11867_v54, %v6798_v41  ;;  %v7282_v59 = vmul.f32 %v11856_v51, %v6798_v41  ;;  %9801 = vpow2.f32 %v8438_v32 }
0x10e4   :  { %8553 = vmatmul.mubr.bf16.gmra.mrb[76].mxu0 %v6647_v29  ;;  %8573 = vmatmul.mubr.bf16.vlgmr.msra.gmra.mrb[64].mxu1 %v6647_v29  ;;  %9803 = vpow2.f32 %v8439_v11  ;;  %v8442_v63 = vmul.f32 -1.442695, %v11976_v31  ;;  %v7067_v2 = vmul.f32 %v11882_v23, %v6782_v45  ;;  %v7107_v4 = vadd.f32 %v11885_v60, %v11896_v5 }
0x10e5   :  { %v7115_v34 = vmul.f32 %v11882_v23, %v11915_v28  ;;  %v7108_v30 = vadd.f32 %v11899_v21, %v11910_v9  ;;  %v7116_v54 = vmul.f32 %v11882_v23, %v6790_v33  ;;  %v7152_v51 = vadd.f32 %v7150_v37, %v11890_v0  ;;  %8592 = vmatprep.mubr.msk.bf16.mxu0 %vm9875_vm0, %v9874_v55 }
0x10e6   :  { %9805 = vpow2.f32 %v8442_v63  ;;  %v12014_v43 = vadd.f32 %v7067_v2, %v7063_v16  ;;  %v7111_v45 = vadd.f32 %v7109_v15, %v7107_v4  ;;  %v7160_v32 = vmul.f32 %v11882_v23, %v6795_v25  ;;  %7606 = vmatprep.mubr.f32.mxu1 %v9874_v55 }
0x10e7   :  { %v7112_v60 = vadd.f32 %v7110_v38, %v7108_v30  ;;  %v7156_v5 = vadd.f32 %v11930_v35, %v7152_v51  ;;  %v7153_v21 = vadd.f32 %v7151_v46, %v11907_v1  ;;  %v7161_v9 = vmul.f32 %v11882_v23, %v6798_v41 }
0x10e8   :  { %v9798_v28 = vpop.eup %9797  ;;  %v8443_v0 = vmul.f32 -1.442695, %v12014_v43  ;;  %v12022_v33 = vadd.f32 %v7115_v34, %v7111_v45  ;;  %v7197_v37 = vadd.f32 %v11940_v44, %v11955_v58  ;;  %v7198_v15 = vadd.f32 %v11958_v17, %v7194_v26 }
0x10e9   :  { %v9800_v16 = vpop.eup %9799  ;;  %v6990_v25 = vadd.f32 1.0, %v9798_v28  ;;  %v12027_v27 = vadd.f32 %v7116_v54, %v7112_v60  ;;  %v12029_v38 = vadd.f32 %v7160_v32, %v7156_v5  ;;  %v7157_v1 = vadd.f32 %v11947_v50, %v7153_v21 }
0x10ea   :  { %v6991_v35 = vadd.f32 1.0, %v9800_v16  ;;  %9807 = vpow2.f32 %v8443_v0  ;;  %v8446_v46 = vmul.f32 -1.442695, %v12022_v33  ;;  %v7201_v47 = vadd.f32 %v7199_v42, %v7197_v37  ;;  %v8440_v16 = vld [vmem:[%s12347_s13 + $0x1] ss:$0 sm:$0xff] }
0x10eb   :  { %9809 = vrcp.f32 %v6990_v25  ;;  %v8447_v11 = vmul.f32 -1.442695, %v12027_v27  ;;  %v8449_v44 = vmul.f32 -1.442695, %v12029_v38  ;;  %v12035_v58 = vadd.f32 %v7161_v9, %v7157_v1 }
0x10ec   :  { %9811 = vrcp.f32 %v6991_v35  ;;  %v12037_v17 = vadd.f32 %v7205_v18, %v7201_v47  ;;  %v7202_v26 = vadd.f32 %v7200_v8, %v7198_v15  ;;  %v7238_v41 = vadd.f32 %v11873_v40, %v11934_v19 }
0x10ed   :  { %v9802_v50 = vpop.eup %9801  ;;  %v7245_v29 = vmul.f32 %v11861_v53, %v6806_v61  ;;  %9813 = vpow2.f32 %v8446_v46  ;;  %v7283_v42 = vadd.f32 %v11873_v40, %v7281_v20  ;;  %v7239_v63 = vadd.f32 %v11873_v40, %v11950_v52 }
0x10ee   :  { %v9804_v2 = vpop.eup %9803  ;;  %v7031_v4 = vadd.f32 1.0, %v9802_v50  ;;  %9815 = vpow2.f32 %v8447_v11  ;;  %v8450_v34 = vmul.f32 -1.442695, %v12035_v58  ;;  %v12046_v18 = vadd.f32 %v7206_v48, %v7202_v26 }
0x10ef   :  { %v7032_v8 = vadd.f32 1.0, %v9804_v2  ;;  %9817 = vpow2.f32 %v8449_v44  ;;  %v7242_v19 = vadd.f32 %v11988_v22, %v7238_v41  ;;  %v12050_v30 = vadd.f32 %v11980_v3, %v7283_v42  ;;  %v8444_v44 = vld [vmem:[%s12347_s13 + $0x2] ss:$0 sm:$0xff] }
0x10f0   :  { %v9806_v61 = vpop.eup %9805  ;;  %9819 = vrcp.f32 %v7031_v4  ;;  %v8452_v20 = vmul.f32 -1.442695, %v12037_v17  ;;  %v7243_v54 = vadd.f32 %v7241_v7, %v7239_v63  ;;  %v7284_v52 = vadd.f32 %v11873_v40, %v7282_v59  ;;  %v8436_v40 = vld [vmem:[%s12347_s13] ss:$0 sm:$0xff] }
0x10f1   :  { %9821 = vrcp.f32 %v7032_v8  ;;  %v7076_v51 = vadd.f32 1.0, %v9806_v61  ;;  %v8453_v45 = vmul.f32 -1.442695, %v12046_v18  ;;  %v12056_v48 = vadd.f32 %v11985_v36, %v7242_v19 }
0x10f2   :  { %9823 = vpow2.f32 %v8450_v34  ;;  %v12058_v32 = vadd.f32 %v7245_v29, %v7243_v54  ;;  %v12061_v3 = vadd.f32 %v11995_v13, %v7284_v52  ;;  %v8451_v52 = vld [vmem:[%s12347_s13 + $0x4] ss:$0 sm:$0xff] }
0x10f3   :  { %9825 = vrcp.f32 %v7076_v51 }
0x10f4   :  { %v9808_v22 = vpop.eup %9807  ;;  %9827 = vpow2.f32 %v8452_v20 }
0x10f5   :  { %v9810_v60 = vpop.eup %9809  ;;  %v7077_v7 = vadd.f32 1.0, %v9808_v22  ;;  %9829 = vpow2.f32 %v8453_v45 }
0x10f6   :  { %v9812_v59 = vpop.eup %9811  ;;  %v6996_v36 = vmul.f32 %v9810_v60, %v11918_v49 }
0x10f7   :  { %v9814_v5 = vpop.eup %9813  ;;  %9831 = vrcp.f32 %v7077_v7  ;;  %v6997_v13 = vmul.f32 %v9812_v59, %v11924_v6 }
0x10f8   :  { %v9816_v21 = vpop.eup %9815  ;;  %v7003_v9 = vmul.f32 %v8436_v40, %v6996_v36  ;;  %v7125_v28 = vadd.f32 1.0, %v9814_v5  ;;  %v8454_v36 = vld [vmem:[%s12347_s13 + $0x5] ss:$0 sm:$0xff] }
0x10f9   :  { %v9818_v0 = vpop.eup %9817  ;;  %v7126_v37 = vadd.f32 1.0, %v9816_v21  ;;  %v7004_v46 = vmul.f32 %v8436_v40, %v6997_v13 }
0x10fa   :  { %v9820_v15 = vpop.eup %9819  ;;  %7005 = vadd.xlane.f32.xlu0 %v7003_v9  ;;  %9833 = vrcp.f32 %v7125_v28  ;;  %v7170_v25 = vadd.f32 1.0, %v9818_v0 }
0x10fb   :  { %v9822_v1 = vpop.eup %9821  ;;  %v7037_v49 = vmul.f32 %v9820_v15, %v11963_v57  ;;  %9835 = vrcp.f32 %v7126_v37 }
0x10fc   :  { %v9824_v35 = vpop.eup %9823  ;;  %9837 = vrcp.f32 %v7170_v25  ;;  %v7038_v11 = vmul.f32 %v9822_v1, %v11966_v62 }
0x10fd   :  { %v9826_v47 = vpop.eup %9825  ;;  %v7044_v6 = vmul.f32 %v8440_v16, %v7037_v49  ;;  %v7171_v26 = vadd.f32 1.0, %v9824_v35 }
0x10fe   :  { %v9828_v41 = vpop.eup %9827  ;;  %7007 = vadd.xlane.f32.xlu0 %v7004_v46  ;;  %v7082_v50 = vmul.f32 %v9826_v47, %v11976_v31  ;;  %v7045_v4 = vmul.f32 %v8440_v16, %v7038_v11  ;;  %v8448_v31 = vld [vmem:[%s12347_s13 + $0x3] ss:$0 sm:$0xff] }
0x10ff   :  { %v9830_v29 = vpop.eup %9829  ;;  %7046 = vadd.xlane.f32.xlu1 %v7044_v6  ;;  %9839 = vrcp.f32 %v7171_v26  ;;  %v7215_v57 = vadd.f32 1.0, %v9828_v41 }
0x1100   :  { %v7089_v42 = vmul.f32 %v8444_v44, %v7082_v50  ;;  %v7216_v63 = vadd.f32 1.0, %v9830_v29 }
0x1101   :  { %v9832_v2 = vpop.eup %9831  ;;  %9841 = vrcp.f32 %v7215_v57 }
0x1102   :  { %7091 = vadd.xlane.f32.xlu0 %v7089_v42  ;;  %v7083_v62 = vmul.f32 %v9832_v2, %v12014_v43  ;;  %9843 = vrcp.f32 %v7216_v63 }
0x1103   :  { %7048 = vadd.xlane.f32.xlu1 %v7045_v4 }
0x1104   :  { %v9834_v34 = vpop.eup %9833  ;;  %v7090_v8 = vmul.f32 %v8444_v44, %v7083_v62 }
0x1105   :  { %v9836_v19 = vpop.eup %9835  ;;  %v7131_v61 = vmul.f32 %v9834_v34, %v12022_v33 }
0x1106   :  { %v9838_v20 = vpop.eup %9837  ;;  %v7132_v54 = vmul.f32 %v9836_v19, %v12027_v27 }
0x1107   :  { %7093 = vadd.xlane.f32.xlu1 %v7090_v8  ;;  %v7138_v43 = vmul.f32 %v8448_v31, %v7131_v61  ;;  %v7176_v51 = vmul.f32 %v9838_v20, %v12029_v38  ;;  %v8457_v8 = vld [vmem:[%s12347_s13 + $0x6] ss:$0 sm:$0xff] }
0x1108   :  { %v7139_v22 = vmul.f32 %v8448_v31, %v7132_v54 }
0x1109   :  { %v9840_v45 = vpop.eup %9839  ;;  %7140 = vadd.xlane.f32.xlu0 %v7138_v43  ;;  %v7183_v60 = vmul.f32 %v8451_v52, %v7176_v51  ;;  %v8460_v51 = vld [vmem:[%s12347_s13 + $0x7] ss:$0 sm:$0xff] }
0x110a   :  { %v7177_v40 = vmul.f32 %v9840_v45, %v12035_v58 }
0x110b   :  { %v9842_v7 = vpop.eup %9841  ;;  %7142 = vadd.xlane.f32.xlu1 %v7139_v22 }
0x110c   :  { %v9844_v33 = vpop.eup %9843  ;;  %v7184_v59 = vmul.f32 %v8451_v52, %v7177_v40  ;;  %v7221_v27 = vmul.f32 %v9842_v7, %v12037_v17  ;;  %v9277_v7 = vld [vmem:[%s12348_s15] sm:$0xff]  }
0x110d   :  { %7185 = vadd.xlane.f32.xlu0 %v7183_v60  ;;  %v7222_v5 = vmul.f32 %v9844_v33, %v12046_v18  ;;  %8577 = vmatpush3.bf16.msra.mxu0 %v9277_v7  ;;  %v9278_v33 = vld [vmem:[%s12348_s15 + $0x8] sm:$0xff]  }
0x110e   :  { %v7228_v38 = vmul.f32 %v8454_v36, %v7221_v27  ;;  %8578 = vmatprep.subr.bf16.mxu0 %v9874_v55  ;;  %v9280_v27 = vld [vmem:[%s12348_s15 + $0x18] sm:$0xff]   ;;  %v7486_v7 = vld [vmem:[%s12349_s17 + $0x48] sm:$0xff] }
0x110f   :  { %7187 = vadd.xlane.f32.xlu1 %v7184_v59  ;;  %v7229_v21 = vmul.f32 %v8454_v36, %v7222_v5  ;;  %v9279_v59 = vld [vmem:[%s12348_s15 + $0x10] sm:$0xff]   ;;  %v9281_v36 = vld [vmem:[%s12348_s15 + $0x20] sm:$0xff]   ;;  %v9282_v5 = vld [vmem:[%s12348_s15 + $0x28] sm:$0xff]  }
0x1111   :  { %7230 = vadd.xlane.f32.xlu0 %v7228_v38  ;;  %8579 = vmatpush3.bf16.msra.mxu0 %v9278_v33 }
0x1112   :  { %8580 = vmatprep.subr.bf16.mxu0 %v9874_v55 }
0x1113   :  { %7232 = vadd.xlane.f32.xlu1 %v7229_v21 }
0x1115   :  { %8581 = vmatpush3.bf16.msra.mxu0 %v9279_v59  ;;  %v7490_v59 = vld [vmem:[%s12349_s17 + $0x68] sm:$0xff] }
0x1116   :  { %8582 = vmatprep.subr.bf16.mxu0 %v9874_v55 }
0x1119   :  { %8583 = vmatpush3.bf16.msra.mxu0 %v9280_v27  ;;  %v7493_v27 = vld [vmem:[%s12349_s17 + $0x80] sm:$0xff] }
0x111a   :  { %8584 = vmatprep.subr.bf16.mxu0 %v9874_v55 }
0x111d   :  { %8585 = vmatpush3.bf16.msra.mxu0 %v9281_v36  ;;  %v8639_v36 = vpack.c.bf16 %v7493_v27, %v7490_v59  ;;  %v7509_v27 = vld [vmem:[%s12349_s17 + $0x100] sm:$0xff] }
0x111e   :  { %8586 = vmatprep.subr.bf16.mxu0 %v9874_v55 }
0x1121   :  { %8587 = vmatpush3.bf16.msra.mxu0 %v9282_v5  ;;  %v7489_v5 = vld [vmem:[%s12349_s17 + $0x60] sm:$0xff] }
0x1122   :  { %8588 = vmatprep.subr.bf16.mxu0 %v9874_v55 }
0x1187   :  { %v7006_v38 = vpop.xlane.xlu0 %7005 }
0x118c   :  { %v7047_v21 = vpop.xlane.xlu1 %7046 }
0x11b7   :  { %v8554_v9 = vpop.f32.mrb[76].mxu0  ;;  %v12093_v58 = vpop.f32.mrb[64].mxu1 }
0x11b8   :  { %v6819_v13 = vadd.f32 %v8554_v9, %v11851_v24  ;;  %v6810_v28 = vpop.f32.mrb[77].mxu0  ;;  %v8574_v0 = vpop.f32.mrb[65].mxu1 }
0x11b9   :  { %v6811_v17 = vadd.f32 %v11851_v24, %v6810_v28  ;;  %v8555_v37 = vpop.f32.mrb[78].mxu0  ;;  %v12097_v15 = vpop.f32.mrb[66].mxu1 }
0x11ba   :  { %v6822_v16 = vadd.f32 %v8555_v37, %v11851_v24  ;;  %v6813_v18 = vpop.f32.mrb[79].mxu0  ;;  %v8575_v25 = vpop.f32.mrb[67].mxu1  ;;  %v7295_v46 = vmul.f32 %v11882_v23, %v6819_v13  ;;  %v8432_v37 = vld [vmem:[#allocation6] ss:$0 sm:$0xff] }
0x11bb   :  { %v7250_v1 = vmul.f32 %v11882_v23, %v6811_v17  ;;  %v7289_v49 = vmul.f32 %v11861_v53, %v6811_v17  ;;  %v6814_v35 = vadd.f32 %v11851_v24, %v6813_v18  ;;  %v7008_v9 = vpop.xlane.xlu0 %7007  ;;  %v7049_v13 = vpop.xlane.xlu1 %7048  ;;  %v7009_v18 = vadd.f32 %v8432_v37, %v7006_v38  ;;  %v7492_v38 = vld [vmem:[%s12349_s17 + $0x78] sm:$0xff] }
0x11bc   :  { %v7296_v26 = vmul.f32 %v11882_v23, %v6822_v16 }
0x11bd   :  { %v7252_v47 = vadd.f32 %v7250_v1, %v12056_v48  ;;  %v7291_v6 = vadd.f32 %v7289_v49, %v12050_v30  ;;  %v7251_v11 = vmul.f32 %v11882_v23, %v6814_v35  ;;  %v7290_v44 = vmul.f32 %v11861_v53, %v6814_v35 }
0x11be   :  { %v7010_v1 = vadd.f32 %v8432_v37, %v7008_v9  ;;  %v7050_v35 = vadd.f32 %v7047_v21, %v7009_v18  ;;  %v8641_v21 = vpack.c.bf16 %v7492_v38, %v7489_v5  ;;  %v7496_v9 = vld [vmem:[%s12349_s17 + $0x98] sm:$0xff]  ;;  %v7505_v18 = vld [vmem:[%s12349_s17 + $0xe0] sm:$0xff] }
0x11bf   :  { %v8455_v41 = vmul.f32 -1.442695, %v7252_v47  ;;  %v7253_v50 = vadd.f32 %v7251_v11, %v12058_v32  ;;  %v7292_v29 = vadd.f32 %v7290_v44, %v12061_v3  ;;  %v7297_v57 = vadd.f32 %v7295_v46, %v7291_v6  ;;  %v7092_v28 = vpop.xlane.xlu0 %7091  ;;  %v7094_v0 = vpop.xlane.xlu1 %7093  ;;  %v7513_v38 = vld [vmem:[%s12349_s17 + $0x120] sm:$0xff] }
0x11c0   :  { %v7051_v46 = vadd.f32 %v7049_v13, %v7010_v1  ;;  %v7499_v13 = vld [vmem:[%s12349_s17 + $0xb0] sm:$0xff]  ;;  %v7501_v1 = vld [vmem:[%s12349_s17 + $0xc0] sm:$0xff] }
0x11c1   :  { %9845 = vpow2.f32 %v8455_v41  ;;  %v8456_v24 = vmul.f32 -1.442695, %v7253_v50  ;;  %v8458_v42 = vmul.f32 -1.442695, %v7297_v57  ;;  %v7298_v63 = vadd.f32 %v7296_v26, %v7292_v29 }
0x11c2   :  { %v7096_v11 = vadd.f32 %v7094_v0, %v7051_v46  ;;  %v7495_v0 = vld [vmem:[%s12349_s17 + $0x90] sm:$0xff]  ;;  %v7508_v46 = vld [vmem:[%s12349_s17 + $0xf8] sm:$0xff] }
0x11c3   :  { %9847 = vpow2.f32 %v8456_v24  ;;  %v8459_v48 = vmul.f32 -1.442695, %v7298_v63  ;;  %v7141_v17 = vpop.xlane.xlu0 %7140  ;;  %v7143_v16 = vpop.xlane.xlu1 %7142 }
0x11c4   :  { %9849 = vpow2.f32 %v8458_v42  ;;  %v7145_v41 = vadd.f32 %v7143_v16, %v7096_v11  ;;  %v7502_v16 = vld [vmem:[%s12349_s17 + $0xc8] sm:$0xff]  ;;  %v7507_v11 = vld [vmem:[%s12349_s17 + $0xf0] sm:$0xff] }
0x11c5   :  { %9851 = vpow2.f32 %v8459_v48 }
0x11c7   :  { %v7186_v25 = vpop.xlane.xlu0 %7185  ;;  %v7188_v49 = vpop.xlane.xlu1 %7187 }
0x11cb   :  { %v9846_v30 = vpop.eup %9845  ;;  %v7231_v6 = vpop.xlane.xlu0 %7230 }
0x11cc   :  { %v7260_v2 = vadd.f32 1.0, %v9846_v30  ;;  %v7233_v26 = vpop.xlane.xlu1 %7232 }
0x11cd   :  { %v9848_v4 = vpop.eup %9847 }
0x11ce   :  { %v9850_v53 = vpop.eup %9849  ;;  %9853 = vrcp.f32 %v7260_v2  ;;  %v7261_v23 = vadd.f32 1.0, %v9848_v4 }
0x11cf   :  { %v9852_v62 = vpop.eup %9851  ;;  %v7305_v34 = vadd.f32 1.0, %v9850_v53 }
0x11d0   :  { %9855 = vrcp.f32 %v7261_v23  ;;  %v7306_v32 = vadd.f32 1.0, %v9852_v62  ;;  %v9283_v62 = vld [vmem:[%s12348_s15 + $0x30] sm:$0xff]  }
0x11d1   :  { %9857 = vrcp.f32 %v7305_v34  ;;  %8589 = vmatpush3.bf16.msra.mxu0 %v9283_v62  ;;  %v9284_v34 = vld [vmem:[%s12348_s15 + $0x38] sm:$0xff]  }
0x11d2   :  { %9859 = vrcp.f32 %v7306_v32  ;;  %8590 = vmatprep.subr.bf16.mxu0 %v9874_v55  ;;  %v7478_v32 = vld [vmem:[%s12349_s17 + $0x8] sm:$0xff] }
0x11d5   :  { %8591 = vmatpush3.bf16.msra.mxu0 %v9284_v34 }
0x11d8   :  { %v9854_v3 = vpop.eup %9853 }
0x11d9   :  { %v7266_v31 = vmul.f32 %v9854_v3, %v7252_v47  ;;  %v7095_v47 = vadd.f32 %v7092_v28, %v7050_v35  ;;  %v7481_v3 = vld [vmem:[%s12349_s17 + $0x20] sm:$0xff]  ;;  %v8643_v28 = vpack.c.bf16 %v7499_v13, %v7496_v9  ;;  %v7515_v9 = vld [vmem:[%s12349_s17 + $0x130] sm:$0xff] }
0x11da   :  { %v9856_v19 = vpop.eup %9855 }
0x11db   :  { %v9858_v61 = vpop.eup %9857  ;;  %v7273_v20 = vmul.f32 %v8457_v8, %v7266_v31  ;;  %v7267_v54 = vmul.f32 %v9856_v19, %v7253_v50  ;;  %v7144_v44 = vadd.f32 %v7141_v17, %v7095_v47  ;;  %v8631_v31 = vpack.c.bf16 %v7481_v3, %v7478_v32  ;;  %v7480_v19 = vld [vmem:[%s12349_s17 + $0x18] sm:$0xff]  ;;  %v7498_v17 = vld [vmem:[%s12349_s17 + $0xa8] sm:$0xff]  ;;  %v7511_v47 = vld [vmem:[%s12349_s17 + $0x110] sm:$0xff] }
0x11dc   :  { %v9860_v52 = vpop.eup %9859  ;;  %v12114_v43 = vmul.f32 %v9858_v61, %v7297_v57  ;;  %v7190_v57 = vadd.f32 %v7188_v49, %v7145_v41  ;;  %v7479_v61 = vld [vmem:[%s12349_s17 + $0x10] sm:$0xff]  ;;  %v8645_v37 = vpack.c.bf16 %v7498_v17, %v7495_v0  ;;  %v7504_v49 = vld [vmem:[%s12349_s17 + $0xd8] sm:$0xff]  ;;  %v7514_v41 = vld [vmem:[%s12349_s17 + $0x128] sm:$0xff] }
0x11dd   :  { %7275 = vadd.xlane.f32.xlu0 %v7273_v20  ;;  %v7274_v45 = vmul.f32 %v8457_v8, %v7267_v54  ;;  %v12119_v22 = vmul.f32 %v9860_v52, %v7298_v63  ;;  %v7189_v50 = vadd.f32 %v7186_v25, %v7144_v44  ;;  %v7477_v8 = vld [vmem:[%s12349_s17] sm:$0xff]  ;;  %v7482_v20 = vld [vmem:[%s12349_s17 + $0x28] sm:$0xff]  ;;  %8632 = vmatprep.subr.bf16.mxu1 %v8631_v31  ;;  %v7520_v17 = vld [vmem:[%s12349_s17 + $0x158] sm:$0xff] }
0x11de   :  { %v7318_v60 = vmul.f32 %v8460_v51, %v12114_v43  ;;  %v7235_v63 = vadd.f32 %v7233_v26, %v7190_v57  ;;  %v8633_v54 = vpack.c.bf16 %v7480_v19, %v7477_v8  ;;  %v12172_v52 = vpack.c.bf16 %v7482_v20, %v7479_v61  ;;  %v7510_v44 = vld [vmem:[%s12349_s17 + $0x108] sm:$0xff]  ;;  %v8422_v57 = vld [vmem:[%s12350_s10] ss:$0 sm:$0xff]  ;;  %v7488_v19 = vld [vmem:[%s12349_s17 + $0x58] sm:$0xff] }
0x11df   :  { %7277 = vadd.xlane.f32.xlu1 %v7274_v45  ;;  %v7319_v40 = vmul.f32 %v8460_v51, %v12119_v22  ;;  %v7234_v24 = vadd.f32 %v7231_v6, %v7189_v50  ;;  %v7484_v51 = vld [vmem:[%s12349_s17 + $0x38] sm:$0xff]  ;;  %v7487_v45 = vld [vmem:[%s12349_s17 + $0x50] sm:$0xff]  ;;  %v8647_v25 = vpack.c.bf16 %v7505_v18, %v7502_v16  ;;  %v8649_v35 = vpack.c.bf16 %v7504_v49, %v7501_v1  ;;  %v7517_v50 = vld [vmem:[%s12349_s17 + $0x140] sm:$0xff] }
0x11e0   :  { %8634 = vmatpush1.bf16.msra.mxu1 %v8633_v54  ;;  %8664 = vmatprep.subr.bf16.mxu0 %v12172_v52  ;;  %v8651_v6 = vpack.c.bf16 %v7511_v47, %v7508_v46  ;;  %v8653_v26 = vpack.c.bf16 %v7510_v44, %v7507_v11  ;;  %v7485_v31 = vld [vmem:[%s12349_s17 + $0x40] sm:$0xff]  ;;  %v7519_v16 = vld [vmem:[%s12349_s17 + $0x150] sm:$0xff]  ;;  %v7524_v49 = vld [vmem:[%s12349_s17 + $0x178] sm:$0xff] }
0x11e1   :  { %7320 = vadd.xlane.f32.xlu0 %v7318_v60  ;;  %v7483_v60 = vld [vmem:[%s12349_s17 + $0x30] sm:$0xff]  ;;  %v7521_v1 = vld [vmem:[%s12349_s17 + $0x160] sm:$0xff] }
0x11e2   :  { %v8637_v33 = vpack.c.bf16 %v7486_v7, %v7483_v60  ;;  %v7497_v60 = vld [vmem:[%s12349_s17 + $0xa0] sm:$0xff]  ;;  %v8691_v46 = vpack.c.bf16 %v7524_v49, %v7521_v1 }
0x11e3   :  { %7322 = vadd.xlane.f32.xlu1 %v7319_v40  ;;  %v8635_v40 = vpack.c.bf16 %v7487_v45, %v7484_v51  ;;  %v8667_v51 = vpack.c.bf16 %v7488_v19, %v7485_v31  ;;  %v8463_v47 = vld [vmem:[%s12351_s16] ss:$0 sm:$0xff] }
0x11e5   :  { %8636 = vmatprep.subr.bf16.mxu1 %v8635_v40  ;;  %v7500_v40 = vld [vmem:[%s12349_s17 + $0xb8] sm:$0xff] }
0x11e6   :  { %8638 = vmatpush1.bf16.msra.mxu1 %v8637_v33  ;;  %v8675_v7 = vpack.c.bf16 %v7500_v40, %v7497_v60  ;;  %v7503_v33 = vld [vmem:[%s12349_s17 + $0xd0] sm:$0xff] }
0x11e7   :  { %8640 = vmatprep.subr.bf16.mxu1 %v8639_v36  ;;  %v7512_v36 = vld [vmem:[%s12349_s17 + $0x118] sm:$0xff] }
0x11e8   :  { %v8683_v5 = vpack.c.bf16 %v7512_v36, %v7509_v27 }
0x11ea   :  { %8642 = vmatpush1.bf16.msra.mxu1 %v8641_v21  ;;  %v7516_v21 = vld [vmem:[%s12349_s17 + $0x138] sm:$0xff] }
0x11eb   :  { %8644 = vmatprep.subr.bf16.mxu1 %v8643_v28  ;;  %v8657_v13 = vpack.c.bf16 %v7516_v21, %v7513_v38  ;;  %v7518_v28 = vld [vmem:[%s12349_s17 + $0x148] sm:$0xff] }
0x11ec   :  { %v8687_v0 = vpack.c.bf16 %v7518_v28, %v7515_v9 }
0x11ee   :  { %8646 = vmatpush1.bf16.msra.mxu1 %v8645_v37  ;;  %v7523_v37 = vld [vmem:[%s12349_s17 + $0x170] sm:$0xff] }
0x11ef   :  { %8648 = vmatprep.subr.bf16.mxu1 %v8647_v25  ;;  %v8659_v18 = vpack.c.bf16 %v7523_v37, %v7520_v17  ;;  %v7522_v25 = vld [vmem:[%s12349_s17 + $0x168] sm:$0xff] }
0x11f2   :  { %8650 = vmatpush1.bf16.msra.mxu1 %v8649_v35  ;;  %v8661_v35 = vpack.c.bf16 %v7522_v25, %v7519_v16 }
0x11f3   :  { %8652 = vmatprep.subr.bf16.mxu1 %v8651_v6 }
0x11f6   :  { %8654 = vmatpush1.bf16.msra.mxu1 %v8653_v26 }
0x126a   :  { %v7276_v29 = vpop.xlane.xlu0 %7275 }
0x126b   :  { %v7279_v48 = vadd.f32 %v7276_v29, %v7234_v24  ;;  %v8655_v29 = vpack.c.bf16 %v7517_v50, %v7514_v41  ;;  %v6948_v24 = vadd.f32 %v8422_v57, %v12093_v58 }
0x126c   :  { %v7278_v42 = vpop.xlane.xlu1 %7277 }
0x126d   :  { %v7280_v2 = vadd.f32 %v7278_v42, %v7235_v63  ;;  %8656 = vmatprep.subr.bf16.mxu1 %v8655_v29  ;;  %v6951_v42 = vadd.f32 %v8422_v57, %v12097_v15  ;;  %v8461_v63 = vmul.f32 -1.442695, %v6948_v24 }
0x126e   :  { %v7321_v30 = vpop.xlane.xlu0 %7320  ;;  %8658 = vmatpush1.bf16.msra.mxu1 %v8657_v13 }
0x126f   :  { %v7324_v4 = vadd.f32 %v7321_v30, %v7279_v48  ;;  %v8462_v48 = vmul.f32 -1.442695, %v6951_v42  ;;  %9861 = vpow2.f32 %v8461_v63  ;;  %8660 = vmatprep.subr.bf16.mxu1 %v8659_v18 }
0x1270   :  { %v7323_v53 = vpop.xlane.xlu1 %7322 }
0x1271   :  { %v7325_v23 = vadd.f32 %v7323_v53, %v7280_v2  ;;  %7328 = vperm.xlu0 %8954, %v7324_v4   ;;  %9863 = vpow2.f32 %v8462_v48 }
0x1272   :  { %8662 = vmatpush1.bf16.msra.mxu1 %v8661_v35 }
0x1273   :  { %7333 = vperm.xlu1 %8955, %v7325_v23  }
0x1279   :  { %v9862_v30 = vpop.eup %9861 }
0x127a   :  { %v7344_v4 = vadd.f32 1.0, %v9862_v30  ;;  %v7525_v30 = vld [vmem:[%s12352_s18] sm:$0x7] }
0x127b   :  { %v9864_v2 = vpop.eup %9863 }
0x127c   :  { %v7345_v53 = vadd.f32 1.0, %v9864_v2  ;;  %9865 = vrcp.f32 %v7344_v4  ;;  %v7530_v2 = vrot.slane %v7525_v30, %v10350_v12  ;;  %v7538_v4 = vrot.slane %v7525_v30, %v12374_v10 }
0x127e   :  { %9867 = vrcp.f32 %v7345_v53 }
0x1286   :  { %v9866_v23 = vpop.eup %9865 }
0x1287   :  { %v7350_v8 = vmul.f32 %v9866_v23, %v6948_v24 }
0x1288   :  { %v9868_v62 = vpop.eup %9867 }
0x1289   :  { %v7351_v58 = vmul.f32 %v9868_v62, %v6951_v42 }
0x12f0   :  { %v7329_v34 = vpop.permute.xlu0 %7328 }
0x12f1   :  { %v7336_v32 = vmul.f32 %v7329_v34, %v12114_v43  ;;  %v7491_v43 = vld [vmem:[%s12349_s17 + $0x70] sm:$0xff] }
0x12f2   :  { %v7334_v3 = vpop.permute.xlu1 %7333 }
0x12f3   :  { %v7337_v15 = vmul.f32 %v7334_v3, %v12119_v22  ;;  %v7352_v61 = vmul.f32 %v7350_v8, %v7336_v32  ;;  %v7494_v22 = vld [vmem:[%s12349_s17 + $0x88] sm:$0xff] }
0x12f4   :  { %v8671_v45 = vpack.c.bf16 %v7494_v22, %v7491_v43  ;;  %v7534_v22 = vrot.slane %v7525_v30, %v10356_v14 }
0x12f5   :  { %v7353_v20 = vmul.f32 %v7351_v58, %v7337_v15 }
0x12f7   :  { %v7354_v54 = vpack.c.bf16 %v7353_v20, %v7352_v61 }
0x12f9   :  { %8593 = vmatmul.mubr.bf16.vlgmr.msra.gmra.mrb[80].mxu0 %v7354_v54  ;;  %v12375_v54 = vlaneseq }
0x12fa   :  { %8666 = vmatpush3.bf16.msra.mxu0 %v12172_v52  ;;  %v7506_v52 = vld [vmem:[%s12349_s17 + $0xe8] sm:$0xff] }
0x12fb   :  { %8668 = vmatprep.subr.bf16.mxu0 %v8667_v51  ;;  %v8679_v59 = vpack.c.bf16 %v7506_v52, %v7503_v33 }
0x12fe   :  { %8670 = vmatpush3.bf16.msra.mxu0 %v8667_v51  ;;  %v7717_v51 = vand.u32 127, %v12375_v54 }
0x12ff   :  { %8672 = vmatprep.subr.bf16.mxu0 %v8671_v45 }
0x1300   :  { %v7718_v43 = vadd.s32 128, %v7717_v51 }
0x1302   :  { %8674 = vmatpush3.bf16.msra.mxu0 %v8671_v45  ;;  %vm7720_vm2 = vcmp.eq.s32.totalorder %v7718_v43, 129 }
0x1303   :  { %8676 = vmatprep.subr.bf16.mxu0 %v8675_v7 }
0x1306   :  { %8678 = vmatpush3.bf16.msra.mxu0 %v8675_v7 }
0x1307   :  { %8680 = vmatprep.subr.bf16.mxu0 %v8679_v59 }
0x130a   :  { %8682 = vmatpush3.bf16.msra.mxu0 %v8679_v59 }
0x130b   :  { %8684 = vmatprep.subr.bf16.mxu0 %v8683_v5 }
0x130e   :  { %8686 = vmatpush3.bf16.msra.mxu0 %v8683_v5 }
0x130f   :  { %8688 = vmatprep.subr.bf16.mxu0 %v8687_v0 }
0x1312   :  { %8690 = vmatpush3.bf16.msra.mxu0 %v8687_v0 }
0x1313   :  { %8692 = vmatprep.subr.bf16.mxu0 %v8691_v46 }
0x1316   :  { %8694 = vmatpush3.bf16.msra.mxu0 %v8691_v46 }
0x13cc   :  { %v7460_v6 = vpop.f32.mrb[80].mxu0 }
0x13cd   :  { %v7461_v11 = vadd.f32 %v8463_v47, %v7460_v6  ;;  %v8594_v44 = vpop.f32.mrb[81].mxu0 }
0x13ce   :  { %v7463_v26 = vpop.f32.mrb[82].mxu0 }
0x13cf   :  { %v7467_v41 = vmul.f32 0.2, %v7461_v11  ;;  %v7464_v50 = vadd.f32 %v8463_v47, %v7463_v26  ;;  %v8595_v29 = vpop.f32.mrb[83].mxu0 }
0x13d1   :  { %v7469_v57 = vadd.f32 %v7467_v41, %v11952_v39  ;;  %v7468_v24 = vmul.f32 0.2, %v7464_v50 }
0x13d3   :  { %v7470_v42 = vadd.f32 %v7468_v24, %v11974_v56  ;;  %7607 = vmatmul.mubr.f32.vlgmr.msra.gmra.mrb[68].mxu1 %v7469_v57  ;;  %8628 = vmatprep.mubr.f32.mxu0 %v7469_v57  ;;  %v7471_v63 = vmul.f32 %v7469_v57, %v7469_v57 }
0x13d4   :  { %7612 = vmatprep.mubr.f32.mxu1 %v9874_v55 }
0x13d5   :  { %7473 = vadd.xlane.f32.xlu1 %v7471_v63  ;;  %8629 = vmatmul.mubr.f32.vlgmr.msra.gmra.mrb[84].mxu0 %v7470_v42  ;;  %v7472_v48 = vmul.f32 %v7470_v42, %v7470_v42 }
0x13d7   :  { %7613 = vmatmul.mubr.f32.gmra.mrb[70].mxu1 %v7470_v42  ;;  %7475 = vadd.xlane.f32.xlu0 %v7472_v48 }
0x1462   :  { %v7474_v3 = vpop.xlane.xlu1 %7473 }
0x1464   :  { %v7476_v31 = vpop.xlane.xlu0 %7475 }
0x14a6   :  { %v7608_v39 = vpop.f32.mrb[68].mxu1 }
0x14a7   :  { %v7609_v56 = vadd.f32 %v7608_v39, %v7530_v2  ;;  %v7610_v53 = vpop.f32.mrb[69].mxu1 }
0x14a8   :  { %v8630_v23 = vpop.f32.mrb[84].mxu0  ;;  %v7611_v7 = vadd.f32 %v7610_v53, %v7534_v22 }
0x14a9   :  { %7725 = vst [vmem:[%s12353_s19] sm:$0xff] %v7609_v56  ;;  %v7685_v55 = vpop.f32.mrb[85].mxu0  ;;  %v7691_v62 = vadd.f32 %v8630_v23, %v7538_v4 }
0x14aa   :  { %v7686_v34 = vadd.f32 %v7685_v55, %v7538_v4  ;;  %v7614_v32 = vpop.f32.mrb[70].mxu1 }
0x14ab   :  { %v7615_v8 = vadd.f32 %v7614_v32, %v7530_v2  ;;  %v7616_v58 = vpop.f32.mrb[71].mxu1  ;;  %v7695_v10 = vadd.f32 %v7691_v62, %v7476_v31 }
0x14ac   :  { %v7694_v15 = vadd.f32 %v7686_v34, %v7474_v3  ;;  %v7617_v38 = vadd.f32 %v7616_v58, %v7534_v22 }
0x14ad   :  { %7727 = vst [vmem:[%s12353_s19 + $0x10] sm:$0xff] %v7615_v8  ;;  %v7697_v19 = vmax.f32 %v7695_v10, 0.0 }
0x14ae   :  { %v7696_v12 = vmax.f32 %v7694_v15, 0.0 }
0x14b0   :  { %7698 = vmin.xlane.f32.xlu1 %v7696_v12 }
0x14b4   :  { %7700 = vmin.xlane.f32.xlu1 %v7697_v19 }
0x153d   :  { %v7699_v61 = vpop.xlane.xlu1 %7698 }
0x153e   :  { %9869 = vrsqrt.f32 %v7699_v61  ;;  %vm7704_vm1 = vcmp.eq.f32.partialorder %v7699_v61, inf  ;;  %v7707_v40 = vand.u32 2147483648, %v7699_v61  ;;  %vm7706_vm3 = vcmp.eq.f32.partialorder %v7699_v61, 0.0 }
0x1541   :  { %v7701_v20 = vpop.xlane.xlu1 %7700 }
0x1542   :  { %9871 = vrsqrt.f32 %v7701_v20  ;;  %vm7711_vm4 = vcmp.eq.f32.partialorder %v7701_v20, inf  ;;  %v7714_v5 = vand.u32 2147483648, %v7701_v20  ;;  %vm7713_vm5 = vcmp.eq.f32.partialorder %v7701_v20, 0.0 }
0x1548   :  { %v9870_v45 = vpop.eup %9869 }
0x1549   :  { %v7703_v60 = vmul.f32 %v9870_v45, %v7699_v61 }
0x154b   :  { %v7705_v33 = vsel %vm7704_vm1, %v7699_v61, %v7703_v60 }
0x154c   :  { %v9872_v52 = vpop.eup %9871  ;;  %v7708_v59 = vsel %vm7706_vm3, %v7707_v40, %v7705_v33 }
0x154d   :  { %v7722_v27 = vsel %vm7720_vm2, %v7708_v59, %v7611_v7  ;;  %v7710_v36 = vmul.f32 %v9872_v52, %v7701_v20 }
0x154e   :  { %7726 = vst [vmem:[%s12353_s19 + $0x8] sm:$0xff] %v7722_v27 }
0x154f   :  { %v7712_v14 = vsel %vm7711_vm4, %v7701_v20, %v7710_v36 }
0x1550   :  { %v7715_v21 = vsel %vm7713_vm5, %v7714_v5, %v7712_v14 }
0x1551   :  { %v7724_v9 = vsel %vm7720_vm2, %v7715_v21, %v7617_v38 }
0x1552   :  { %7728 = vst [vmem:[%s12353_s19 + $0x18] sm:$0xff] %v7724_v9 }

</bundles_post_ra>
